<compile_context>
chip_gen: v6e
topology: v6e:2x2x1
jax: 0.10.0
libtpu: 0.0.40
codegen_flags: <defaults>
</compile_context>

<pallas_src>
import numpy as np
import jax
import jax.numpy as jnp
from jax.experimental import pallas as pl
from jax.experimental.pallas import tpu as pltpu


def _round_up(x, m):
    return (x + m - 1) // m * m


# ----------------------------------------------------------------------------
# Fused direct-conv kernel:
#   out = prelu( sum_t  A_t @ W[t]  + shift  [+ res] , alpha )
# A_t = tap-t shifted [Ho, Wo, Cin] window of the padded input block, reshaped
# to [Ho*Wo, Cin].  bf16 MXU operands, f32 accumulation, single store.
# ----------------------------------------------------------------------------
def _make_conv_kernel(taps, out_hw, has_alpha, has_res):
    Ho, Wo = out_hw

    def kernel(*refs):
        x_ref, w_ref, shift_ref = refs[0], refs[1], refs[2]
        idx = 3
        alpha_ref = refs[idx] if has_alpha else None
        idx += int(has_alpha)
        res_ref = refs[idx] if has_res else None
        idx += int(has_res)
        o_ref = refs[idx]

        cin = x_ref.shape[-1]
        tn = o_ref.shape[-1]
        m = Ho * Wo

        acc = jnp.zeros((m, tn), jnp.float32)
        for t, (ro, co) in enumerate(taps):          # static 9-tap unroll
            a = x_ref[pl.ds(ro, Ho), pl.ds(co, Wo), :]        # [Ho, Wo, Cin]
            acc = acc + jnp.dot(a.reshape(m, cin), w_ref[t],
                                preferred_element_type=jnp.float32)

        y = acc + shift_ref[...]
        if has_res:
            y = y + res_ref[...].astype(jnp.float32)
        if has_alpha:
            y = jnp.where(y >= 0, y, alpha_ref[...] * y)
        o_ref[...] = y.astype(o_ref.dtype)

    return kernel


def conv_bn_act(xin, taps, out_hw, w_taps, shift, alpha=None, res=None,
                out_dtype=jnp.bfloat16):
    """xin: [N, Hx, Wx, Cp] bf16 (spatially + channel padded),
    w_taps: [T, Cp, Np] bf16 (BN scale folded), shift/alpha: [1, Np] f32,
    res: [N, Ho*Wo, Np] bf16 or None.  Returns [N, Ho*Wo, Np] in out_dtype."""
    has_alpha, has_res = alpha is not None, res is not None
    # PReLU-after-residual would not match any composition of this block.
    assert not (has_alpha and has_res)

    N, Hx, Wx, Cp = xin.shape
    T, Cw, Np = w_taps.shape
    assert Cw == Cp and T == len(taps) and Np % 128 == 0
    Ho, Wo = out_hw
    M = Ho * Wo

    # Whole Cout in one tile when it fits; otherwise the largest 128-multiple.
    if Np <= 512:
        tn = Np
    else:
        tn = 512 if Np % 512 == 0 else (256 if Np % 256 == 0 else 128)

    operands = [xin, w_taps, shift]
    in_specs = [
        pl.BlockSpec((None, Hx, Wx, Cp), lambda n, j: (n, 0, 0, 0)),
        pl.BlockSpec((T, Cp, tn), lambda n, j: (0, 0, j)),
        pl.BlockSpec((1, tn), lambda n, j: (0, j)),
    ]
    if has_alpha:
        operands.append(alpha)
        in_specs.append(pl.BlockSpec((1, tn), lambda n, j: (0, j)))
    if has_res:
        operands.append(res)
        in_specs.append(pl.BlockSpec((None, M, tn), lambda n, j: (n, 0, j)))

    return pl.pallas_call(
        _make_conv_kernel(taps, out_hw, has_alpha, has_res),
        out_shape=jax.ShapeDtypeStruct((N, M, Np), out_dtype),
        grid_spec=pltpu.PrefetchScalarGridSpec(
            num_scalar_prefetch=0,
            grid=(N, Np // tn),
            in_specs=in_specs,
            out_specs=pl.BlockSpec((None, M, tn), lambda n, j: (n, 0, j)),
        ),
        compiler_params=pltpu.CompilerParams(
            dimension_semantics=("parallel", "parallel"),
            vmem_limit_bytes=48 * 1024 * 1024),
    )(*operands)


# ----------------------------------------------------------------------------
# Glue: BN folding, weight layout, conv-input construction (pad / phase split)
# ----------------------------------------------------------------------------
def bn_fold(bn, eps=1e-5):
    scale = bn["gamma"] / jnp.sqrt(bn["var"] + eps)
    shift = bn["beta"] - bn["mean"] * scale
    return scale, shift                                   # each [C]


def pad_vec(v, n):
    return jnp.pad(v.astype(jnp.float32), (0, n - v.shape[0])).reshape(1, n)


def conv_w_to_taps(w_oihw, out_scale, cin_p, cout_p):
    """PyTorch conv weight [O, I, kh, kw] -> [kh*kw, cin_p, cout_p] bf16 with
    the per-output-channel BN scale folded in and channels zero-padded."""
    O, I, kh, kw = w_oihw.shape
    w = jnp.transpose(w_oihw, (2, 3, 1, 0)) * out_scale   # [kh, kw, I, O]
    w = w.reshape(kh * kw, I, O)
    w = jnp.pad(w, ((0, 0), (0, cin_p - I), (0, cout_p - O)))
    return w.astype(jnp.bfloat16)


def build_conv3x3_input(x_nhwc, stride, c_pad):
    """Spatially pad (p=1), channel-pad and bf16-cast a 3x3-conv input.
    Returns (xin, taps, (Ho, Wo)) where taps[t] = (row_off, col_off) such that
    xin[:, ro:ro+Ho, co:co+Wo, :] is exactly the tap-t window.  For stride=2
    the padded input is split into its 4 row/col parity phases (stacked along
    the row axis) so every tap window is unstrided."""
    N, H, W, C = x_nhwc.shape
    Ho = (H - 1) // stride + 1
    Wo = (W - 1) // stride + 1
    if stride == 1:
        xin = jnp.pad(x_nhwc, ((0, 0), (1, 1), (1, 1), (0, c_pad - C))
                      ).astype(jnp.bfloat16)
        taps = [(ki, kj) for ki in range(3) for kj in range(3)]
        return xin, taps, (Ho, Wo)
    assert stride == 2, "BasicBlockIR only uses stride 1 or 2"
    Hp = H + 2 + (H % 2)                 # round padded extent up to even
    Wp = W + 2 + (W % 2)
    xp = jnp.pad(x_nhwc, ((0, 0), (1, Hp - H - 1), (1, Wp - W - 1),
                          (0, c_pad - C))).astype(jnp.bfloat16)
    Hh, Wh = Hp // 2, Wp // 2
    phases = [xp[:, pi::2, pj::2, :] for pi in range(2) for pj in range(2)]
    xin = jnp.concatenate(phases, axis=1)                 # [N, 4*Hh, Wh, Cp]
    taps = [((2 * (ki % 2) + (kj % 2)) * Hh + ki // 2, kj // 2)
            for ki in range(3) for kj in range(3)]
    return xin, taps, (Ho, Wo)


# ----------------------------------------------------------------------------
# BasicBlockIR forward (Pallas-backed)
# ----------------------------------------------------------------------------
def basic_block_ir_forward(x_nchw, params, in_channel, depth, stride):
    # TODO(synk): keep NHWC + 128-padded channels end-to-end across stacked
    #             blocks; the boundary transposes / final channel slice exist
    #             only so the public interface matches the NCHW PyTorch module.
    x = jnp.transpose(x_nchw, (0, 2, 3, 1)).astype(jnp.float32)   # NHWC
    N, H, W, _ = x.shape
    cin_p = _round_up(in_channel, 128)
    dp = _round_up(depth, 128)
    Ho = (H - 1) // stride + 1
    Wo = (W - 1) // stride + 1

    # BN0 — elementwise; XLA fuses it with the pad + bf16 cast below.  (Cannot
    # be folded into conv1's weights: conv1 zero-pads AFTER BN0.)
    s0, b0 = bn_fold(params["bn0"])
    x_bn = x * s0 + b0

    # res head: conv3x3 s1 p1 + BN1(scale folded) + PReLU  -> bf16 [N, H*W, dp]
    xin1, taps1, (H1, W1) = build_conv3x3_input(x_bn, 1, cin_p)
    s1, b1 = bn_fold(params["bn1"])
    w1 = conv_w_to_taps(params["conv1_w"], s1, cin_p, dp)
    h = conv_bn_act(xin1, taps1, (H1, W1), w1, pad_vec(b1, dp),
                    alpha=pad_vec(params["prelu_alpha"], dp),
                    out_dtype=jnp.bfloat16)
    h_nhwc = h.reshape(N, H1, W1, dp)

    # shortcut -> bf16 [N, Ho*Wo, dp] (fused into conv2's residual epilogue)
    xs = x[:, ::stride, ::stride, :]                       # raw x, subsampled
    if in_channel == depth:
        # MaxPool2d(kernel=1, stride) == strided subsample of the raw input
        sc = jnp.pad(xs, ((0, 0), (0, 0), (0, 0), (0, dp - depth))
                     ).astype(jnp.bfloat16).reshape(N, Ho * Wo, dp)
    else:
        # Conv2d 1x1 stride + BN == subsample then a 1-tap fused conv kernel
        xs_p = jnp.pad(xs, ((0, 0), (0, 0), (0, 0), (0, cin_p - in_channel))
                       ).astype(jnp.bfloat16)
        ssc, bsc = bn_fold(params["bn_sc"])
        wsc = conv_w_to_taps(params["conv_sc_w"], ssc, cin_p, dp)
        sc = conv_bn_act(xs_p, [(0, 0)], (Ho, Wo), wsc, pad_vec(bsc, dp),
                         out_dtype=jnp.bfloat16)

    # res tail: conv3x3 stride p1 + BN2, fused with the residual add -> f32
    xin2, taps2, (Ho2, Wo2) = build_conv3x3_input(h_nhwc, stride, dp)
    assert (Ho2, Wo2) == (Ho, Wo)
    s2, b2 = bn_fold(params["bn2"])
    w2 = conv_w_to_taps(params["conv2_w"], s2, dp, dp)
    out = conv_bn_act(xin2, taps2, (Ho, Wo), w2, pad_vec(b2, dp),
                      res=sc, out_dtype=jnp.float32)

    out = out.reshape(N, Ho, Wo, dp)[..., :depth]
    return jnp.transpose(out, (0, 3, 1, 2))                # back to NCHW


# ----------------------------------------------------------------------------
# Reference (lax.conv) with the same bf16-operand / f32-accumulate precision
# ----------------------------------------------------------------------------
def reference_forward(x_nchw, params, in_channel, depth, stride):
    x = jnp.transpose(x_nchw, (0, 2, 3, 1)).astype(jnp.float32)

    def conv(inp_bf16, w_oihw, scale, s, pad):
        w = jnp.transpose(w_oihw, (2, 3, 1, 0)) * scale[None, None, None, :]
        return jax.lax.conv_general_dilated(
            inp_bf16, w.astype(jnp.bfloat16), (s, s), [(pad, pad), (pad, pad)],
            dimension_numbers=("NHWC", "HWIO", "NHWC"),
            preferred_element_type=jnp.float32)

    s0, b0 = bn_fold(params["bn0"])
    h = (x * s0 + b0).astype(jnp.bfloat16)
    s1, b1 = bn_fold(params["bn1"])
    h = conv(h, params["conv1_w"], s1, 1, 1) + b1
    a = params["prelu_alpha"]
    h = jnp.where(h >= 0, h, a * h)
    s2, b2 = bn_fold(params["bn2"])
    r = conv(h.astype(jnp.bfloat16), params["conv2_w"], s2, stride, 1) + b2

    if in_channel == depth:
        sc = x[:, ::stride, ::stride, :]
    else:
        ssc, bsc = bn_fold(params["bn_sc"])
        sc = conv(x.astype(jnp.bfloat16), params["conv_sc_w"], ssc, stride, 0) + bsc

    return jnp.transpose(r + sc, (0, 3, 1, 2))


# ----------------------------------------------------------------------------
# Deterministic parameter init (shapes from BasicBlockIR.__init__)
# ----------------------------------------------------------------------------
def init_params(key, in_channel, depth):
    ks = jax.random.split(key, 8)

    def rn(k, shape, s=0.2):
        return s * jax.random.normal(k, shape, jnp.float32)

    def bn(k, c):
        k1, k2, k3, k4 = jax.random.split(k, 4)
        return dict(gamma=1.0 + rn(k1, (c,), 0.1),
                    beta=rn(k2, (c,), 0.1),
                    mean=rn(k3, (c,), 0.1),
                    var=1.0 + 0.5 * jax.random.uniform(k4, (c,), jnp.float32))

    p = {
        "bn0": bn(ks[0], in_channel),
        "conv1_w": rn(ks[1], (depth, in_channel, 3, 3)),
        "bn1": bn(ks[2], depth),
        "prelu_alpha": 0.25 + rn(ks[3], (depth,), 0.05),
        "conv2_w": rn(ks[4], (depth, depth, 3, 3)),
        "bn2": bn(ks[5], depth),
    }
    if in_channel != depth:
        p["conv_sc_w"] = rn(ks[6], (depth, in_channel, 1, 1))
        p["bn_sc"] = bn(ks[7], depth)
    return p


if __name__ == "__main__":
    key = jax.random.PRNGKey(0)
    fwd = jax.jit(basic_block_ir_forward, static_argnums=(2, 3, 4))
    ref_fwd = jax.jit(reference_forward, static_argnums=(2, 3, 4))

    # config 1: projection shortcut, stride 2
    # config 2: identity/MaxPool shortcut, stride 2
    # config 3: identity shortcut, stride 1 (no downsampling)
    for (in_channel, depth, stride) in [(4, 8, 2), (8, 8, 2), (8, 8, 1)]:
        N, H, W = 2, 16, 16
        key, kx, kp = jax.random.split(key, 3)
        x = jax.random.normal(kx, (N, in_channel, H, W), jnp.float32)
        params = init_params(kp, in_channel, depth)

        out = jax.block_until_ready(fwd(x, params, in_channel, depth, stride))
        ref = jax.block_until_ready(ref_fwd(x, params, in_channel, depth, stride))

        assert out.shape == (N, depth, H // stride, W // stride), out.shape
        np.testing.assert_allclose(np.asarray(out), np.asarray(ref),
                                   rtol=1e-2, atol=1e-2)

    print("KERNEL_OK")
</pallas_src>

<mosaic_0001>
module attributes {stable_mosaic.version = 11 : i64} {
  func.func @kernel(%arg0: i32, %arg1: i32, %arg2: memref<1x18x18x128xbf16, #tpu.memory_space<vmem>>, %arg3: memref<9x128x128xbf16, #tpu.memory_space<vmem>>, %arg4: memref<1x128xf32, #tpu.memory_space<vmem>>, %arg5: memref<1x128xf32, #tpu.memory_space<vmem>>, %arg6: memref<1x256x128xbf16, #tpu.memory_space<vmem>>) attributes {dimension_semantics = [#tpu.dimension_semantics<parallel>, #tpu.dimension_semantics<parallel>], iteration_bounds = array<i64: 2, 1>, scalar_prefetch = 0 : i64, scratch_operands = 0 : i64, tpu.core_type = #tpu.core_type<tc>, window_params = [{transform_indices = @transform_0, window_bounds = array<i64: 1, 18, 18, 128>}, {transform_indices = @transform_1, window_bounds = array<i64: 9, 128, 128>}, {transform_indices = @transform_2, window_bounds = array<i64: 1, 128>}, {transform_indices = @transform_3, window_bounds = array<i64: 1, 128>}, {transform_indices = @transform_4, window_bounds = array<i64: 1, 256, 128>}]} {
    %cst = arith.constant 0.000000e+00 : f32
    %0 = vector.broadcast %cst : f32 to vector<256x128xf32>
    %c0 = arith.constant 0 : index
    %c0_0 = arith.constant 0 : index
    %c0_1 = arith.constant 0 : index
    %c0_2 = arith.constant 0 : index
    %1 = vector.load %arg2[%c0, %c0_0, %c0_1, %c0_2] : memref<1x18x18x128xbf16, #tpu.memory_space<vmem>>, vector<1x16x16x128xbf16>
    %2 = vector.shape_cast %1 : vector<1x16x16x128xbf16> to vector<16x16x128xbf16>
    %3 = vector.shape_cast %2 : vector<16x16x128xbf16> to vector<256x128xbf16>
    %c0_3 = arith.constant 0 : index
    %c0_4 = arith.constant 0 : index
    %c0_5 = arith.constant 0 : index
    %4 = vector.load %arg3[%c0_3, %c0_4, %c0_5] : memref<9x128x128xbf16, #tpu.memory_space<vmem>>, vector<1x128x128xbf16>
    %5 = vector.shape_cast %4 : vector<1x128x128xbf16> to vector<128x128xbf16>
    %cst_6 = arith.constant dense<0.000000e+00> : vector<256x128xf32>
    %6 = tpu.matmul %3, %5, %cst_6 {dimension_numbers = #tpu.dot_dimension_numbers<[1], [0], [0], [1], [0, 0, 1, 1], [], []>} : vector<256x128xbf16>, vector<128x128xbf16>, vector<256x128xf32> -> vector<256x128xf32>
    %7 = arith.addf %0, %6 : vector<256x128xf32>
    %c0_7 = arith.constant 0 : index
    %c0_8 = arith.constant 0 : index
    %c1 = arith.constant 1 : index
    %c0_9 = arith.constant 0 : index
    %8 = vector.load %arg2[%c0_7, %c0_8, %c1, %c0_9] : memref<1x18x18x128xbf16, #tpu.memory_space<vmem>>, vector<1x16x16x128xbf16>
    %9 = vector.shape_cast %8 : vector<1x16x16x128xbf16> to vector<16x16x128xbf16>
    %10 = vector.shape_cast %9 : vector<16x16x128xbf16> to vector<256x128xbf16>
    %c1_10 = arith.constant 1 : index
    %c0_11 = arith.constant 0 : index
    %c0_12 = arith.constant 0 : index
    %11 = vector.load %arg3[%c1_10, %c0_11, %c0_12] : memref<9x128x128xbf16, #tpu.memory_space<vmem>>, vector<1x128x128xbf16>
    %12 = vector.shape_cast %11 : vector<1x128x128xbf16> to vector<128x128xbf16>
    %cst_13 = arith.constant dense<0.000000e+00> : vector<256x128xf32>
    %13 = tpu.matmul %10, %12, %cst_13 {dimension_numbers = #tpu.dot_dimension_numbers<[1], [0], [0], [1], [0, 0, 1, 1], [], []>} : vector<256x128xbf16>, vector<128x128xbf16>, vector<256x128xf32> -> vector<256x128xf32>
    %14 = arith.addf %7, %13 : vector<256x128xf32>
    %c0_14 = arith.constant 0 : index
    %c0_15 = arith.constant 0 : index
    %c2 = arith.constant 2 : index
    %c0_16 = arith.constant 0 : index
    %15 = vector.load %arg2[%c0_14, %c0_15, %c2, %c0_16] : memref<1x18x18x128xbf16, #tpu.memory_space<vmem>>, vector<1x16x16x128xbf16>
    %16 = vector.shape_cast %15 : vector<1x16x16x128xbf16> to vector<16x16x128xbf16>
    %17 = vector.shape_cast %16 : vector<16x16x128xbf16> to vector<256x128xbf16>
    %c2_17 = arith.constant 2 : index
    %c0_18 = arith.constant 0 : index
    %c0_19 = arith.constant 0 : index
    %18 = vector.load %arg3[%c2_17, %c0_18, %c0_19] : memref<9x128x128xbf16, #tpu.memory_space<vmem>>, vector<1x128x128xbf16>
    %19 = vector.shape_cast %18 : vector<1x128x128xbf16> to vector<128x128xbf16>
    %cst_20 = arith.constant dense<0.000000e+00> : vector<256x128xf32>
    %20 = tpu.matmul %17, %19, %cst_20 {dimension_numbers = #tpu.dot_dimension_numbers<[1], [0], [0], [1], [0, 0, 1, 1], [], []>} : vector<256x128xbf16>, vector<128x128xbf16>, vector<256x128xf32> -> vector<256x128xf32>
    %21 = arith.addf %14, %20 : vector<256x128xf32>
    %c0_21 = arith.constant 0 : index
    %c1_22 = arith.constant 1 : index
    %c0_23 = arith.constant 0 : index
    %c0_24 = arith.constant 0 : index
    %22 = vector.load %arg2[%c0_21, %c1_22, %c0_23, %c0_24] : memref<1x18x18x128xbf16, #tpu.memory_space<vmem>>, vector<1x16x16x128xbf16>
    %23 = vector.shape_cast %22 : vector<1x16x16x128xbf16> to vector<16x16x128xbf16>
    %24 = vector.shape_cast %23 : vector<16x16x128xbf16> to vector<256x128xbf16>
    %c3 = arith.constant 3 : index
    %c0_25 = arith.constant 0 : index
    %c0_26 = arith.constant 0 : index
    %25 = vector.load %arg3[%c3, %c0_25, %c0_26] : memref<9x128x128xbf16, #tpu.memory_space<vmem>>, vector<1x128x128xbf16>
    %26 = vector.shape_cast %25 : vector<1x128x128xbf16> to vector<128x128xbf16>
    %cst_27 = arith.constant dense<0.000000e+00> : vector<256x128xf32>
    %27 = tpu.matmul %24, %26, %cst_27 {dimension_numbers = #tpu.dot_dimension_numbers<[1], [0], [0], [1], [0, 0, 1, 1], [], []>} : vector<256x128xbf16>, vector<128x128xbf16>, vector<256x128xf32> -> vector<256x128xf32>
    %28 = arith.addf %21, %27 : vector<256x128xf32>
    %c0_28 = arith.constant 0 : index
    %c1_29 = arith.constant 1 : index
    %c1_30 = arith.constant 1 : index
    %c0_31 = arith.constant 0 : index
    %29 = vector.load %arg2[%c0_28, %c1_29, %c1_30, %c0_31] : memref<1x18x18x128xbf16, #tpu.memory_space<vmem>>, vector<1x16x16x128xbf16>
    %30 = vector.shape_cast %29 : vector<1x16x16x128xbf16> to vector<16x16x128xbf16>
    %31 = vector.shape_cast %30 : vector<16x16x128xbf16> to vector<256x128xbf16>
    %c4 = arith.constant 4 : index
    %c0_32 = arith.constant 0 : index
    %c0_33 = arith.constant 0 : index
    %32 = vector.load %arg3[%c4, %c0_32, %c0_33] : memref<9x128x128xbf16, #tpu.memory_space<vmem>>, vector<1x128x128xbf16>
    %33 = vector.shape_cast %32 : vector<1x128x128xbf16> to vector<128x128xbf16>
    %cst_34 = arith.constant dense<0.000000e+00> : vector<256x128xf32>
    %34 = tpu.matmul %31, %33, %cst_34 {dimension_numbers = #tpu.dot_dimension_numbers<[1], [0], [0], [1], [0, 0, 1, 1], [], []>} : vector<256x128xbf16>, vector<128x128xbf16>, vector<256x128xf32> -> vector<256x128xf32>
    %35 = arith.addf %28, %34 : vector<256x128xf32>
    %c0_35 = arith.constant 0 : index
    %c1_36 = arith.constant 1 : index
    %c2_37 = arith.constant 2 : index
    %c0_38 = arith.constant 0 : index
    %36 = vector.load %arg2[%c0_35, %c1_36, %c2_37, %c0_38] : memref<1x18x18x128xbf16, #tpu.memory_space<vmem>>, vector<1x16x16x128xbf16>
    %37 = vector.shape_cast %36 : vector<1x16x16x128xbf16> to vector<16x16x128xbf16>
    %38 = vector.shape_cast %37 : vector<16x16x128xbf16> to vector<256x128xbf16>
    %c5 = arith.constant 5 : index
    %c0_39 = arith.constant 0 : index
    %c0_40 = arith.constant 0 : index
    %39 = vector.load %arg3[%c5, %c0_39, %c0_40] : memref<9x128x128xbf16, #tpu.memory_space<vmem>>, vector<1x128x128xbf16>
    %40 = vector.shape_cast %39 : vector<1x128x128xbf16> to vector<128x128xbf16>
    %cst_41 = arith.constant dense<0.000000e+00> : vector<256x128xf32>
    %41 = tpu.matmul %38, %40, %cst_41 {dimension_numbers = #tpu.dot_dimension_numbers<[1], [0], [0], [1], [0, 0, 1, 1], [], []>} : vector<256x128xbf16>, vector<128x128xbf16>, vector<256x128xf32> -> vector<256x128xf32>
    %42 = arith.addf %35, %41 : vector<256x128xf32>
    %c0_42 = arith.constant 0 : index
    %c2_43 = arith.constant 2 : index
    %c0_44 = arith.constant 0 : index
    %c0_45 = arith.constant 0 : index
    %43 = vector.load %arg2[%c0_42, %c2_43, %c0_44, %c0_45] : memref<1x18x18x128xbf16, #tpu.memory_space<vmem>>, vector<1x16x16x128xbf16>
    %44 = vector.shape_cast %43 : vector<1x16x16x128xbf16> to vector<16x16x128xbf16>
    %45 = vector.shape_cast %44 : vector<16x16x128xbf16> to vector<256x128xbf16>
    %c6 = arith.constant 6 : index
    %c0_46 = arith.constant 0 : index
    %c0_47 = arith.constant 0 : index
    %46 = vector.load %arg3[%c6, %c0_46, %c0_47] : memref<9x128x128xbf16, #tpu.memory_space<vmem>>, vector<1x128x128xbf16>
    %47 = vector.shape_cast %46 : vector<1x128x128xbf16> to vector<128x128xbf16>
    %cst_48 = arith.constant dense<0.000000e+00> : vector<256x128xf32>
    %48 = tpu.matmul %45, %47, %cst_48 {dimension_numbers = #tpu.dot_dimension_numbers<[1], [0], [0], [1], [0, 0, 1, 1], [], []>} : vector<256x128xbf16>, vector<128x128xbf16>, vector<256x128xf32> -> vector<256x128xf32>
    %49 = arith.addf %42, %48 : vector<256x128xf32>
    %c0_49 = arith.constant 0 : index
    %c2_50 = arith.constant 2 : index
    %c1_51 = arith.constant 1 : index
    %c0_52 = arith.constant 0 : index
    %50 = vector.load %arg2[%c0_49, %c2_50, %c1_51, %c0_52] : memref<1x18x18x128xbf16, #tpu.memory_space<vmem>>, vector<1x16x16x128xbf16>
    %51 = vector.shape_cast %50 : vector<1x16x16x128xbf16> to vector<16x16x128xbf16>
    %52 = vector.shape_cast %51 : vector<16x16x128xbf16> to vector<256x128xbf16>
    %c7 = arith.constant 7 : index
    %c0_53 = arith.constant 0 : index
    %c0_54 = arith.constant 0 : index
    %53 = vector.load %arg3[%c7, %c0_53, %c0_54] : memref<9x128x128xbf16, #tpu.memory_space<vmem>>, vector<1x128x128xbf16>
    %54 = vector.shape_cast %53 : vector<1x128x128xbf16> to vector<128x128xbf16>
    %cst_55 = arith.constant dense<0.000000e+00> : vector<256x128xf32>
    %55 = tpu.matmul %52, %54, %cst_55 {dimension_numbers = #tpu.dot_dimension_numbers<[1], [0], [0], [1], [0, 0, 1, 1], [], []>} : vector<256x128xbf16>, vector<128x128xbf16>, vector<256x128xf32> -> vector<256x128xf32>
    %56 = arith.addf %49, %55 : vector<256x128xf32>
    %c0_56 = arith.constant 0 : index
    %c2_57 = arith.constant 2 : index
    %c2_58 = arith.constant 2 : index
    %c0_59 = arith.constant 0 : index
    %57 = vector.load %arg2[%c0_56, %c2_57, %c2_58, %c0_59] : memref<1x18x18x128xbf16, #tpu.memory_space<vmem>>, vector<1x16x16x128xbf16>
    %58 = vector.shape_cast %57 : vector<1x16x16x128xbf16> to vector<16x16x128xbf16>
    %59 = vector.shape_cast %58 : vector<16x16x128xbf16> to vector<256x128xbf16>
    %c8 = arith.constant 8 : index
    %c0_60 = arith.constant 0 : index
    %c0_61 = arith.constant 0 : index
    %60 = vector.load %arg3[%c8, %c0_60, %c0_61] : memref<9x128x128xbf16, #tpu.memory_space<vmem>>, vector<1x128x128xbf16>
    %61 = vector.shape_cast %60 : vector<1x128x128xbf16> to vector<128x128xbf16>
    %cst_62 = arith.constant dense<0.000000e+00> : vector<256x128xf32>
    %62 = tpu.matmul %59, %61, %cst_62 {dimension_numbers = #tpu.dot_dimension_numbers<[1], [0], [0], [1], [0, 0, 1, 1], [], []>} : vector<256x128xbf16>, vector<128x128xbf16>, vector<256x128xf32> -> vector<256x128xf32>
    %63 = arith.addf %56, %62 : vector<256x128xf32>
    %c0_63 = arith.constant 0 : index
    %c0_64 = arith.constant 0 : index
    %64 = vector.load %arg4[%c0_63, %c0_64] : memref<1x128xf32, #tpu.memory_space<vmem>>, vector<1x128xf32>
    %65 = vector.broadcast %64 : vector<1x128xf32> to vector<256x128xf32>
    %66 = arith.addf %63, %65 : vector<256x128xf32>
    %cst_65 = arith.constant 0.000000e+00 : f32
    %67 = vector.broadcast %cst_65 : f32 to vector<256x128xf32>
    %68 = arith.cmpf oge, %66, %67 : vector<256x128xf32>
    %c0_66 = arith.constant 0 : index
    %c0_67 = arith.constant 0 : index
    %69 = vector.load %arg5[%c0_66, %c0_67] : memref<1x128xf32, #tpu.memory_space<vmem>>, vector<1x128xf32>
    %70 = vector.broadcast %69 : vector<1x128xf32> to vector<256x128xf32>
    %71 = arith.mulf %70, %66 : vector<256x128xf32>
    %72 = arith.select %68, %66, %71 : vector<256x128xi1>, vector<256x128xf32>
    %73 = arith.truncf %72 : vector<256x128xf32> to vector<256x128xbf16>
    %c0_68 = arith.constant 0 : index
    %c0_69 = arith.constant 0 : index
    %c0_70 = arith.constant 0 : index
    %74 = vector.load %arg6[%c0_68, %c0_69, %c0_70] : memref<1x256x128xbf16, #tpu.memory_space<vmem>>, vector<1x256x128xbf16>
    %75 = vector.shape_cast %74 : vector<1x256x128xbf16> to vector<256x128xbf16>
    %76 = vector.shape_cast %73 : vector<256x128xbf16> to vector<1x256x128xbf16>
    tpu.vector_store %arg6[%c0_68, %c0_69, %c0_70], %76 {strides = array<i32>} : memref<1x256x128xbf16, #tpu.memory_space<vmem>>, vector<1x256x128xbf16>,
    return
  }
  func.func @transform_0(%arg0: i32, %arg1: i32) -> (i32, i32, i32, i32) {
    %c0_i32 = arith.constant 0 : i32
    %c0_i32_0 = arith.constant 0 : i32
    %c0_i32_1 = arith.constant 0 : i32
    %c0_i32_2 = arith.constant 0 : i32
    return %arg0, %c0_i32, %c0_i32_0, %c0_i32_1 : i32, i32, i32, i32
  }
  func.func @transform_1(%arg0: i32, %arg1: i32) -> (i32, i32, i32) {
    %c0_i32 = arith.constant 0 : i32
    %c0_i32_0 = arith.constant 0 : i32
    %c0_i32_1 = arith.constant 0 : i32
    return %c0_i32, %c0_i32_0, %arg1 : i32, i32, i32
  }
  func.func @transform_2(%arg0: i32, %arg1: i32) -> (i32, i32) {
    %c0_i32 = arith.constant 0 : i32
    %c0_i32_0 = arith.constant 0 : i32
    return %c0_i32, %arg1 : i32, i32
  }
  func.func @transform_3(%arg0: i32, %arg1: i32) -> (i32, i32) {
    %c0_i32 = arith.constant 0 : i32
    %c0_i32_0 = arith.constant 0 : i32
    return %c0_i32, %arg1 : i32, i32
  }
  func.func @transform_4(%arg0: i32, %arg1: i32) -> (i32, i32, i32) {
    %c0_i32 = arith.constant 0 : i32
    %c0_i32_0 = arith.constant 0 : i32
    return %arg0, %c0_i32, %arg1 : i32, i32, i32
  }
}

module attributes {stable_mosaic.version = 11 : i64} {
  func.func @kernel(%arg0: i32, %arg1: i32, %arg2: memref<1x8x8x128xbf16, #tpu.memory_space<vmem>>, %arg3: memref<1x128x128xbf16, #tpu.memory_space<vmem>>, %arg4: memref<1x128xf32, #tpu.memory_space<vmem>>, %arg5: memref<1x64x128xbf16, #tpu.memory_space<vmem>>) attributes {dimension_semantics = [#tpu.dimension_semantics<parallel>, #tpu.dimension_semantics<parallel>], iteration_bounds = array<i64: 2, 1>, scalar_prefetch = 0 : i64, scratch_operands = 0 : i64, tpu.core_type = #tpu.core_type<tc>, window_params = [{transform_indices = @transform_0, window_bounds = array<i64: 1, 8, 8, 128>}, {transform_indices = @transform_1, window_bounds = array<i64: 1, 128, 128>}, {transform_indices = @transform_2, window_bounds = array<i64: 1, 128>}, {transform_indices = @transform_3, window_bounds = array<i64: 1, 64, 128>}]} {
    %cst = arith.constant 0.000000e+00 : f32
    %0 = vector.broadcast %cst : f32 to vector<64x128xf32>
    %c0 = arith.constant 0 : index
    %c0_0 = arith.constant 0 : index
    %c0_1 = arith.constant 0 : index
    %c0_2 = arith.constant 0 : index
    %1 = vector.load %arg2[%c0, %c0_0, %c0_1, %c0_2] : memref<1x8x8x128xbf16, #tpu.memory_space<vmem>>, vector<1x8x8x128xbf16>
    %2 = vector.shape_cast %1 : vector<1x8x8x128xbf16> to vector<8x8x128xbf16>
    %3 = vector.shape_cast %2 : vector<8x8x128xbf16> to vector<64x128xbf16>
    %c0_3 = arith.constant 0 : index
    %c0_4 = arith.constant 0 : index
    %c0_5 = arith.constant 0 : index
    %4 = vector.load %arg3[%c0_3, %c0_4, %c0_5] : memref<1x128x128xbf16, #tpu.memory_space<vmem>>, vector<1x128x128xbf16>
    %5 = vector.shape_cast %4 : vector<1x128x128xbf16> to vector<128x128xbf16>
    %cst_6 = arith.constant dense<0.000000e+00> : vector<64x128xf32>
    %6 = tpu.matmul %3, %5, %cst_6 {dimension_numbers = #tpu.dot_dimension_numbers<[1], [0], [0], [1], [0, 0, 1, 1], [], []>} : vector<64x128xbf16>, vector<128x128xbf16>, vector<64x128xf32> -> vector<64x128xf32>
    %7 = arith.addf %0, %6 : vector<64x128xf32>
    %c0_7 = arith.constant 0 : index
    %c0_8 = arith.constant 0 : index
    %8 = vector.load %arg4[%c0_7, %c0_8] : memref<1x128xf32, #tpu.memory_space<vmem>>, vector<1x128xf32>
    %9 = vector.broadcast %8 : vector<1x128xf32> to vector<64x128xf32>
    %10 = arith.addf %7, %9 : vector<64x128xf32>
    %11 = arith.truncf %10 : vector<64x128xf32> to vector<64x128xbf16>
    %c0_9 = arith.constant 0 : index
    %c0_10 = arith.constant 0 : index
    %c0_11 = arith.constant 0 : index
    %12 = vector.load %arg5[%c0_9, %c0_10, %c0_11] : memref<1x64x128xbf16, #tpu.memory_space<vmem>>, vector<1x64x128xbf16>
    %13 = vector.shape_cast %12 : vector<1x64x128xbf16> to vector<64x128xbf16>
    %14 = vector.shape_cast %11 : vector<64x128xbf16> to vector<1x64x128xbf16>
    tpu.vector_store %arg5[%c0_9, %c0_10, %c0_11], %14 {strides = array<i32>} : memref<1x64x128xbf16, #tpu.memory_space<vmem>>, vector<1x64x128xbf16>,
    return
  }
  func.func @transform_0(%arg0: i32, %arg1: i32) -> (i32, i32, i32, i32) {
    %c0_i32 = arith.constant 0 : i32
    %c0_i32_0 = arith.constant 0 : i32
    %c0_i32_1 = arith.constant 0 : i32
    %c0_i32_2 = arith.constant 0 : i32
    return %arg0, %c0_i32, %c0_i32_0, %c0_i32_1 : i32, i32, i32, i32
  }
  func.func @transform_1(%arg0: i32, %arg1: i32) -> (i32, i32, i32) {
    %c0_i32 = arith.constant 0 : i32
    %c0_i32_0 = arith.constant 0 : i32
    %c0_i32_1 = arith.constant 0 : i32
    return %c0_i32, %c0_i32_0, %arg1 : i32, i32, i32
  }
  func.func @transform_2(%arg0: i32, %arg1: i32) -> (i32, i32) {
    %c0_i32 = arith.constant 0 : i32
    %c0_i32_0 = arith.constant 0 : i32
    return %c0_i32, %arg1 : i32, i32
  }
  func.func @transform_3(%arg0: i32, %arg1: i32) -> (i32, i32, i32) {
    %c0_i32 = arith.constant 0 : i32
    %c0_i32_0 = arith.constant 0 : i32
    return %arg0, %c0_i32, %arg1 : i32, i32, i32
  }
}

module attributes {stable_mosaic.version = 11 : i64} {
  func.func @kernel(%arg0: i32, %arg1: i32, %arg2: memref<1x36x9x128xbf16, #tpu.memory_space<vmem>>, %arg3: memref<9x128x128xbf16, #tpu.memory_space<vmem>>, %arg4: memref<1x128xf32, #tpu.memory_space<vmem>>, %arg5: memref<1x64x128xbf16, #tpu.memory_space<vmem>>, %arg6: memref<1x64x128xf32, #tpu.memory_space<vmem>>) attributes {dimension_semantics = [#tpu.dimension_semantics<parallel>, #tpu.dimension_semantics<parallel>], iteration_bounds = array<i64: 2, 1>, scalar_prefetch = 0 : i64, scratch_operands = 0 : i64, tpu.core_type = #tpu.core_type<tc>, window_params = [{transform_indices = @transform_0, window_bounds = array<i64: 1, 36, 9, 128>}, {transform_indices = @transform_1, window_bounds = array<i64: 9, 128, 128>}, {transform_indices = @transform_2, window_bounds = array<i64: 1, 128>}, {transform_indices = @transform_3, window_bounds = array<i64: 1, 64, 128>}, {transform_indices = @transform_4, window_bounds = array<i64: 1, 64, 128>}]} {
    %cst = arith.constant 0.000000e+00 : f32
    %0 = vector.broadcast %cst : f32 to vector<64x128xf32>
    %c0 = arith.constant 0 : index
    %c0_0 = arith.constant 0 : index
    %c0_1 = arith.constant 0 : index
    %c0_2 = arith.constant 0 : index
    %1 = vector.load %arg2[%c0, %c0_0, %c0_1, %c0_2] : memref<1x36x9x128xbf16, #tpu.memory_space<vmem>>, vector<1x8x8x128xbf16>
    %2 = vector.shape_cast %1 : vector<1x8x8x128xbf16> to vector<8x8x128xbf16>
    %3 = vector.shape_cast %2 : vector<8x8x128xbf16> to vector<64x128xbf16>
    %c0_3 = arith.constant 0 : index
    %c0_4 = arith.constant 0 : index
    %c0_5 = arith.constant 0 : index
    %4 = vector.load %arg3[%c0_3, %c0_4, %c0_5] : memref<9x128x128xbf16, #tpu.memory_space<vmem>>, vector<1x128x128xbf16>
    %5 = vector.shape_cast %4 : vector<1x128x128xbf16> to vector<128x128xbf16>
    %cst_6 = arith.constant dense<0.000000e+00> : vector<64x128xf32>
    %6 = tpu.matmul %3, %5, %cst_6 {dimension_numbers = #tpu.dot_dimension_numbers<[1], [0], [0], [1], [0, 0, 1, 1], [], []>} : vector<64x128xbf16>, vector<128x128xbf16>, vector<64x128xf32> -> vector<64x128xf32>
    %7 = arith.addf %0, %6 : vector<64x128xf32>
    %c0_7 = arith.constant 0 : index
    %c9 = arith.constant 9 : index
    %c0_8 = arith.constant 0 : index
    %c0_9 = arith.constant 0 : index
    %8 = vector.load %arg2[%c0_7, %c9, %c0_8, %c0_9] : memref<1x36x9x128xbf16, #tpu.memory_space<vmem>>, vector<1x8x8x128xbf16>
    %9 = vector.shape_cast %8 : vector<1x8x8x128xbf16> to vector<8x8x128xbf16>
    %10 = vector.shape_cast %9 : vector<8x8x128xbf16> to vector<64x128xbf16>
    %c1 = arith.constant 1 : index
    %c0_10 = arith.constant 0 : index
    %c0_11 = arith.constant 0 : index
    %11 = vector.load %arg3[%c1, %c0_10, %c0_11] : memref<9x128x128xbf16, #tpu.memory_space<vmem>>, vector<1x128x128xbf16>
    %12 = vector.shape_cast %11 : vector<1x128x128xbf16> to vector<128x128xbf16>
    %cst_12 = arith.constant dense<0.000000e+00> : vector<64x128xf32>
    %13 = tpu.matmul %10, %12, %cst_12 {dimension_numbers = #tpu.dot_dimension_numbers<[1], [0], [0], [1], [0, 0, 1, 1], [], []>} : vector<64x128xbf16>, vector<128x128xbf16>, vector<64x128xf32> -> vector<64x128xf32>
    %14 = arith.addf %7, %13 : vector<64x128xf32>
    %c0_13 = arith.constant 0 : index
    %c0_14 = arith.constant 0 : index
    %c1_15 = arith.constant 1 : index
    %c0_16 = arith.constant 0 : index
    %15 = vector.load %arg2[%c0_13, %c0_14, %c1_15, %c0_16] : memref<1x36x9x128xbf16, #tpu.memory_space<vmem>>, vector<1x8x8x128xbf16>
    %16 = vector.shape_cast %15 : vector<1x8x8x128xbf16> to vector<8x8x128xbf16>
    %17 = vector.shape_cast %16 : vector<8x8x128xbf16> to vector<64x128xbf16>
    %c2 = arith.constant 2 : index
    %c0_17 = arith.constant 0 : index
    %c0_18 = arith.constant 0 : index
    %18 = vector.load %arg3[%c2, %c0_17, %c0_18] : memref<9x128x128xbf16, #tpu.memory_space<vmem>>, vector<1x128x128xbf16>
    %19 = vector.shape_cast %18 : vector<1x128x128xbf16> to vector<128x128xbf16>
    %cst_19 = arith.constant dense<0.000000e+00> : vector<64x128xf32>
    %20 = tpu.matmul %17, %19, %cst_19 {dimension_numbers = #tpu.dot_dimension_numbers<[1], [0], [0], [1], [0, 0, 1, 1], [], []>} : vector<64x128xbf16>, vector<128x128xbf16>, vector<64x128xf32> -> vector<64x128xf32>
    %21 = arith.addf %14, %20 : vector<64x128xf32>
    %c0_20 = arith.constant 0 : index
    %c18 = arith.constant 18 : index
    %c0_21 = arith.constant 0 : index
    %c0_22 = arith.constant 0 : index
    %22 = vector.load %arg2[%c0_20, %c18, %c0_21, %c0_22] : memref<1x36x9x128xbf16, #tpu.memory_space<vmem>>, vector<1x8x8x128xbf16>
    %23 = vector.shape_cast %22 : vector<1x8x8x128xbf16> to vector<8x8x128xbf16>
    %24 = vector.shape_cast %23 : vector<8x8x128xbf16> to vector<64x128xbf16>
    %c3 = arith.constant 3 : index
    %c0_23 = arith.constant 0 : index
    %c0_24 = arith.constant 0 : index
    %25 = vector.load %arg3[%c3, %c0_23, %c0_24] : memref<9x128x128xbf16, #tpu.memory_space<vmem>>, vector<1x128x128xbf16>
    %26 = vector.shape_cast %25 : vector<1x128x128xbf16> to vector<128x128xbf16>
    %cst_25 = arith.constant dense<0.000000e+00> : vector<64x128xf32>
    %27 = tpu.matmul %24, %26, %cst_25 {dimension_numbers = #tpu.dot_dimension_numbers<[1], [0], [0], [1], [0, 0, 1, 1], [], []>} : vector<64x128xbf16>, vector<128x128xbf16>, vector<64x128xf32> -> vector<64x128xf32>
    %28 = arith.addf %21, %27 : vector<64x128xf32>
    %c0_26 = arith.constant 0 : index
    %c27 = arith.constant 27 : index
    %c0_27 = arith.constant 0 : index
    %c0_28 = arith.constant 0 : index
    %29 = vector.load %arg2[%c0_26, %c27, %c0_27, %c0_28] : memref<1x36x9x128xbf16, #tpu.memory_space<vmem>>, vector<1x8x8x128xbf16>
    %30 = vector.shape_cast %29 : vector<1x8x8x128xbf16> to vector<8x8x128xbf16>
    %31 = vector.shape_cast %30 : vector<8x8x128xbf16> to vector<64x128xbf16>
    %c4 = arith.constant 4 : index
    %c0_29 = arith.constant 0 : index
    %c0_30 = arith.constant 0 : index
    %32 = vector.load %arg3[%c4, %c0_29, %c0_30] : memref<9x128x128xbf16, #tpu.memory_space<vmem>>, vector<1x128x128xbf16>
    %33 = vector.shape_cast %32 : vector<1x128x128xbf16> to vector<128x128xbf16>
    %cst_31 = arith.constant dense<0.000000e+00> : vector<64x128xf32>
    %34 = tpu.matmul %31, %33, %cst_31 {dimension_numbers = #tpu.dot_dimension_numbers<[1], [0], [0], [1], [0, 0, 1, 1], [], []>} : vector<64x128xbf16>, vector<128x128xbf16>, vector<64x128xf32> -> vector<64x128xf32>
    %35 = arith.addf %28, %34 : vector<64x128xf32>
    %c0_32 = arith.constant 0 : index
    %c18_33 = arith.constant 18 : index
    %c1_34 = arith.constant 1 : index
    %c0_35 = arith.constant 0 : index
    %36 = vector.load %arg2[%c0_32, %c18_33, %c1_34, %c0_35] : memref<1x36x9x128xbf16, #tpu.memory_space<vmem>>, vector<1x8x8x128xbf16>
    %37 = vector.shape_cast %36 : vector<1x8x8x128xbf16> to vector<8x8x128xbf16>
    %38 = vector.shape_cast %37 : vector<8x8x128xbf16> to vector<64x128xbf16>
    %c5 = arith.constant 5 : index
    %c0_36 = arith.constant 0 : index
    %c0_37 = arith.constant 0 : index
    %39 = vector.load %arg3[%c5, %c0_36, %c0_37] : memref<9x128x128xbf16, #tpu.memory_space<vmem>>, vector<1x128x128xbf16>
    %40 = vector.shape_cast %39 : vector<1x128x128xbf16> to vector<128x128xbf16>
    %cst_38 = arith.constant dense<0.000000e+00> : vector<64x128xf32>
    %41 = tpu.matmul %38, %40, %cst_38 {dimension_numbers = #tpu.dot_dimension_numbers<[1], [0], [0], [1], [0, 0, 1, 1], [], []>} : vector<64x128xbf16>, vector<128x128xbf16>, vector<64x128xf32> -> vector<64x128xf32>
    %42 = arith.addf %35, %41 : vector<64x128xf32>
    %c0_39 = arith.constant 0 : index
    %c1_40 = arith.constant 1 : index
    %c0_41 = arith.constant 0 : index
    %c0_42 = arith.constant 0 : index
    %43 = vector.load %arg2[%c0_39, %c1_40, %c0_41, %c0_42] : memref<1x36x9x128xbf16, #tpu.memory_space<vmem>>, vector<1x8x8x128xbf16>
    %44 = vector.shape_cast %43 : vector<1x8x8x128xbf16> to vector<8x8x128xbf16>
    %45 = vector.shape_cast %44 : vector<8x8x128xbf16> to vector<64x128xbf16>
    %c6 = arith.constant 6 : index
    %c0_43 = arith.constant 0 : index
    %c0_44 = arith.constant 0 : index
    %46 = vector.load %arg3[%c6, %c0_43, %c0_44] : memref<9x128x128xbf16, #tpu.memory_space<vmem>>, vector<1x128x128xbf16>
    %47 = vector.shape_cast %46 : vector<1x128x128xbf16> to vector<128x128xbf16>
    %cst_45 = arith.constant dense<0.000000e+00> : vector<64x128xf32>
    %48 = tpu.matmul %45, %47, %cst_45 {dimension_numbers = #tpu.dot_dimension_numbers<[1], [0], [0], [1], [0, 0, 1, 1], [], []>} : vector<64x128xbf16>, vector<128x128xbf16>, vector<64x128xf32> -> vector<64x128xf32>
    %49 = arith.addf %42, %48 : vector<64x128xf32>
    %c0_46 = arith.constant 0 : index
    %c10 = arith.constant 10 : index
    %c0_47 = arith.constant 0 : index
    %c0_48 = arith.constant 0 : index
    %50 = vector.load %arg2[%c0_46, %c10, %c0_47, %c0_48] : memref<1x36x9x128xbf16, #tpu.memory_space<vmem>>, vector<1x8x8x128xbf16>
    %51 = vector.shape_cast %50 : vector<1x8x8x128xbf16> to vector<8x8x128xbf16>
    %52 = vector.shape_cast %51 : vector<8x8x128xbf16> to vector<64x128xbf16>
    %c7 = arith.constant 7 : index
    %c0_49 = arith.constant 0 : index
    %c0_50 = arith.constant 0 : index
    %53 = vector.load %arg3[%c7, %c0_49, %c0_50] : memref<9x128x128xbf16, #tpu.memory_space<vmem>>, vector<1x128x128xbf16>
    %54 = vector.shape_cast %53 : vector<1x128x128xbf16> to vector<128x128xbf16>
    %cst_51 = arith.constant dense<0.000000e+00> : vector<64x128xf32>
    %55 = tpu.matmul %52, %54, %cst_51 {dimension_numbers = #tpu.dot_dimension_numbers<[1], [0], [0], [1], [0, 0, 1, 1], [], []>} : vector<64x128xbf16>, vector<128x128xbf16>, vector<64x128xf32> -> vector<64x128xf32>
    %56 = arith.addf %49, %55 : vector<64x128xf32>
    %c0_52 = arith.constant 0 : index
    %c1_53 = arith.constant 1 : index
    %c1_54 = arith.constant 1 : index
    %c0_55 = arith.constant 0 : index
    %57 = vector.load %arg2[%c0_52, %c1_53, %c1_54, %c0_55] : memref<1x36x9x128xbf16, #tpu.memory_space<vmem>>, vector<1x8x8x128xbf16>
    %58 = vector.shape_cast %57 : vector<1x8x8x128xbf16> to vector<8x8x128xbf16>
    %59 = vector.shape_cast %58 : vector<8x8x128xbf16> to vector<64x128xbf16>
    %c8 = arith.constant 8 : index
    %c0_56 = arith.constant 0 : index
    %c0_57 = arith.constant 0 : index
    %60 = vector.load %arg3[%c8, %c0_56, %c0_57] : memref<9x128x128xbf16, #tpu.memory_space<vmem>>, vector<1x128x128xbf16>
    %61 = vector.shape_cast %60 : vector<1x128x128xbf16> to vector<128x128xbf16>
    %cst_58 = arith.constant dense<0.000000e+00> : vector<64x128xf32>
    %62 = tpu.matmul %59, %61, %cst_58 {dimension_numbers = #tpu.dot_dimension_numbers<[1], [0], [0], [1], [0, 0, 1, 1], [], []>} : vector<64x128xbf16>, vector<128x128xbf16>, vector<64x128xf32> -> vector<64x128xf32>
    %63 = arith.addf %56, %62 : vector<64x128xf32>
    %c0_59 = arith.constant 0 : index
    %c0_60 = arith.constant 0 : index
    %64 = vector.load %arg4[%c0_59, %c0_60] : memref<1x128xf32, #tpu.memory_space<vmem>>, vector<1x128xf32>
    %65 = vector.broadcast %64 : vector<1x128xf32> to vector<64x128xf32>
    %66 = arith.addf %63, %65 : vector<64x128xf32>
    %c0_61 = arith.constant 0 : index
    %c0_62 = arith.constant 0 : index
    %c0_63 = arith.constant 0 : index
    %67 = vector.load %arg5[%c0_61, %c0_62, %c0_63] : memref<1x64x128xbf16, #tpu.memory_space<vmem>>, vector<1x64x128xbf16>
    %68 = vector.shape_cast %67 : vector<1x64x128xbf16> to vector<64x128xbf16>
    %69 = arith.extf %68 : vector<64x128xbf16> to vector<64x128xf32>
    %70 = arith.addf %66, %69 : vector<64x128xf32>
    %c0_64 = arith.constant 0 : index
    %c0_65 = arith.constant 0 : index
    %c0_66 = arith.constant 0 : index
    %71 = vector.load %arg6[%c0_64, %c0_65, %c0_66] : memref<1x64x128xf32, #tpu.memory_space<vmem>>, vector<1x64x128xf32>
    %72 = vector.shape_cast %71 : vector<1x64x128xf32> to vector<64x128xf32>
    %73 = vector.shape_cast %70 : vector<64x128xf32> to vector<1x64x128xf32>
    tpu.vector_store %arg6[%c0_64, %c0_65, %c0_66], %73 {strides = array<i32>} : memref<1x64x128xf32, #tpu.memory_space<vmem>>, vector<1x64x128xf32>,
    return
  }
  func.func @transform_0(%arg0: i32, %arg1: i32) -> (i32, i32, i32, i32) {
    %c0_i32 = arith.constant 0 : i32
    %c0_i32_0 = arith.constant 0 : i32
    %c0_i32_1 = arith.constant 0 : i32
    %c0_i32_2 = arith.constant 0 : i32
    return %arg0, %c0_i32, %c0_i32_0, %c0_i32_1 : i32, i32, i32, i32
  }
  func.func @transform_1(%arg0: i32, %arg1: i32) -> (i32, i32, i32) {
    %c0_i32 = arith.constant 0 : i32
    %c0_i32_0 = arith.constant 0 : i32
    %c0_i32_1 = arith.constant 0 : i32
    return %c0_i32, %c0_i32_0, %arg1 : i32, i32, i32
  }
  func.func @transform_2(%arg0: i32, %arg1: i32) -> (i32, i32) {
    %c0_i32 = arith.constant 0 : i32
    %c0_i32_0 = arith.constant 0 : i32
    return %c0_i32, %arg1 : i32, i32
  }
  func.func @transform_3(%arg0: i32, %arg1: i32) -> (i32, i32, i32) {
    %c0_i32 = arith.constant 0 : i32
    %c0_i32_0 = arith.constant 0 : i32
    return %arg0, %c0_i32, %arg1 : i32, i32, i32
  }
  func.func @transform_4(%arg0: i32, %arg1: i32) -> (i32, i32, i32) {
    %c0_i32 = arith.constant 0 : i32
    %c0_i32_0 = arith.constant 0 : i32
    return %arg0, %c0_i32, %arg1 : i32, i32, i32
  }
}

</mosaic_0001>

<bundles_post_ra>
// kernel: basic_block_ir_forward.4
= control target key start
LH: loop header
LB: loop body
LE: loop exit
PB: predicated region body
PF: predicated region fallthrough
CT: control target
= control target key end

     0   :  { %s735_s12 = smov 0   ;;  %s737_s13 = smov 0   ;;  %s808_s0 = inlined_call_operand.vmem [shape: bf16[2,8,8,128], index: 0, kind: input, shape index: {}]   ;;  %s809_s1 = inlined_call_operand.vmem [shape: bf16[1,128,128], index: 1, kind: input, shape index: {}]   ;;  %s810_s2 = inlined_call_operand.vmem [shape: f32[1,128], index: 2, kind: input, shape index: {}]   ;;  %s811_s3 = inlined_call_operand.vmem [shape: bf16[2,64,128], index: 3, kind: output, shape index: {}]  }
   0x1   :  { %s739_s14 = smov 0  }
   0x2 LB: > { %s25_s15 = sadd.s32 1, %s709_s13  ;;  %p542_p0 = scmp.ge.s32.totalorder %s713_s14, 1  ;;  %s713_s14 = sphi %s739_s14, %s13_s14   ;;  %s709_s13 = sphi %s737_s13, %s813_s13   ;;  %s705_s12 = sphi %s735_s12, %s812_s12  }
   0x3   : > { %p27_p1 = scmp.ge.s32.totalorder %s25_s15, 2  ;;  %p168_p2 = scmp.lt.s32.totalorder %s713_s14, 3 }
   0x5   : > { %s815_s15 = smov (%p27_p1, %s25_s15), 0  ;;  %p169_p3 = pnand %p542_p0, %p168_p2 }
   0x6   : > { %p202_p4 = scmp.lt.s32.totalorder (!%p169_p3), %s705_s12, 1 }
   0x7   : > { %172 = sbr.rel (%p169_p3) target bundleno = 249 (0xf9), region = 32 }
   0xc   : > { %v679_v0 = vld [vmem:[%s809_s1 + $0x38] sm:$0xff]   ;;  %v680_v1 = vld [vmem:[%s809_s1 + $0x30] sm:$0xff]   ;;  %s817_s12 = smov (!%p202_p4, %s705_s12), 1  ;;  %v681_v2 = vld [vmem:[%s809_s1 + $0x28] sm:$0xff]  }
   0xd   : > { %615 = vmatprep.subr.bf16.mxu0 %v679_v0  ;;  %639 = vmatprep.subr.bf16.mxu1 %v679_v0  ;;  %s570_s22 = sshll.u32 %s817_s12, 5  ;;  %v682_v3 = vld [vmem:[%s809_s1 + $0x20] sm:$0xff]   ;;  %v683_v6 = vld [vmem:[%s809_s1 + $0x18] sm:$0xff]   ;;  %v684_v7 = vld [vmem:[%s809_s1 + $0x10] sm:$0xff]  }
   0xe   : > { %616 = vmatpush3.bf16.msra.mxu0 %v679_v0  ;;  %647 = vmatpush3.bf16.msra.mxu1 %v679_v0  ;;  %s770_s25 = scalar_lea.vmem %s808_s0, %s570_s22  ;;  %v685_v8 = vld [vmem:[%s809_s1 + $0x8] sm:$0xff]   ;;  %v686_v9 = vld [vmem:[%s809_s1] sm:$0xff]   ;;  %s221_s17 = scalar_lea.vmem %s811_s3, %s570_s22 }
   0xf   : > { %617 = vmatprep.subr.bf16.mxu0 %v680_v1  ;;  %640 = vmatprep.subr.bf16.mxu1 %v680_v1  ;;  %v687_v4 = vld [vmem:[%s770_s25] sm:$0xff]   ;;  %v688_v5 = vld [vmem:[%s770_s25 + $0x10] sm:$0xff]   ;;  %v689_v10 = vld [vmem:[%s770_s25 + $0x8] sm:$0xff]  }
  0x10   : > { %631 = vmatprep.mubr.bf16.mxu0 %v687_v4  ;;  %635 = vmatprep.mubr.bf16.mxu1 %v688_v5  ;;  %v690_v11 = vld [vmem:[%s770_s25 + $0x18] sm:$0xff]   ;;  %v547_v14 = vld [vmem:[%s810_s2] ss:$0 sm:$0xff] }
  0x12   : > { %618 = vmatpush3.bf16.msra.mxu0 %v680_v1  ;;  %648 = vmatpush3.bf16.msra.mxu1 %v680_v1 }
  0x13   : > { %619 = vmatprep.subr.bf16.mxu0 %v681_v2  ;;  %641 = vmatprep.subr.bf16.mxu1 %v681_v2 }
  0x16   : > { %620 = vmatpush3.bf16.msra.mxu0 %v681_v2  ;;  %649 = vmatpush3.bf16.msra.mxu1 %v681_v2 }
  0x17   : > { %621 = vmatprep.subr.bf16.mxu0 %v682_v3  ;;  %642 = vmatprep.subr.bf16.mxu1 %v682_v3 }
  0x1a   : > { %622 = vmatpush3.bf16.msra.mxu0 %v682_v3  ;;  %650 = vmatpush3.bf16.msra.mxu1 %v682_v3 }
  0x1b   : > { %623 = vmatprep.subr.bf16.mxu0 %v683_v6  ;;  %643 = vmatprep.subr.bf16.mxu1 %v683_v6 }
  0x1e   : > { %624 = vmatpush3.bf16.msra.mxu0 %v683_v6  ;;  %651 = vmatpush3.bf16.msra.mxu1 %v683_v6 }
  0x1f   : > { %625 = vmatprep.subr.bf16.mxu0 %v684_v7  ;;  %644 = vmatprep.subr.bf16.mxu1 %v684_v7 }
  0x22   : > { %626 = vmatpush3.bf16.msra.mxu0 %v684_v7  ;;  %652 = vmatpush3.bf16.msra.mxu1 %v684_v7 }
  0x23   : > { %627 = vmatprep.subr.bf16.mxu0 %v685_v8  ;;  %645 = vmatprep.subr.bf16.mxu1 %v685_v8 }
  0x26   : > { %628 = vmatpush3.bf16.msra.mxu0 %v685_v8  ;;  %653 = vmatpush3.bf16.msra.mxu1 %v685_v8 }
  0x27   : > { %629 = vmatprep.subr.bf16.mxu0 %v686_v9  ;;  %646 = vmatprep.subr.bf16.mxu1 %v686_v9 }
  0x2a   : > { %630 = vmatpush3.bf16.msra.mxu0 %v686_v9  ;;  %654 = vmatpush3.bf16.msra.mxu1 %v686_v9 }
  0x2d   : > { %632 = vmatmul.mubr.bf16.vlgmr.msra.gmra.mxu0 %v689_v10  ;;  %636 = vmatmul.mubr.bf16.vlgmr.msra.gmra.mxu1 %v690_v11 }
  0xed   : > { %v633_v12 = vpop.f32.mrf.mxu0  ;;  %v637_v13 = vpop.f32.mrf.mxu1 }
  0xee   : > { %v369_v19 = vadd.f32 %v633_v12, %v547_v14  ;;  %v385_v20 = vadd.f32 %v637_v13, %v547_v14 }
  0xef   : > { %v360_v15 = vpop.f32.mrf.mxu0  ;;  %v376_v16 = vpop.f32.mrf.mxu1 }
  0xf0   : > { %v361_v23 = vadd.f32 %v547_v14, %v360_v15  ;;  %v377_v24 = vadd.f32 %v547_v14, %v376_v16 }
  0xf1   : > { %v634_v17 = vpop.f32.mrf.mxu0  ;;  %v638_v18 = vpop.f32.mrf.mxu1 }
  0xf2   : > { %v372_v21 = vadd.f32 %v634_v17, %v547_v14  ;;  %v388_v22 = vadd.f32 %v638_v18, %v547_v14 }
  0xf3   : > { %v363_v25 = vpop.f32.mrf.mxu0  ;;  %v379_v26 = vpop.f32.mrf.mxu1 }
  0xf4   : > { %v588_v27 = vpack.c.bf16 %v372_v21, %v369_v19  ;;  %v598_v28 = vpack.c.bf16 %v388_v22, %v385_v20  ;;  %v364_v29 = vadd.f32 %v547_v14, %v363_v25  ;;  %v380_v30 = vadd.f32 %v547_v14, %v379_v26 }
  0xf6   : > { %600 = vst [vmem:[%s221_s17 + $0x8] sm:$0xff] %v588_v27   ;;  %602 = vst [vmem:[%s221_s17 + $0x18] sm:$0xff] %v598_v28   ;;  %v583_v31 = vpack.c.bf16 %v364_v29, %v361_v23  ;;  %v593_v32 = vpack.c.bf16 %v380_v30, %v377_v24 }
  0xf8   : > { %584 = vst [vmem:[%s221_s17] sm:$0xff] %v583_v31   ;;  %601 = vst [vmem:[%s221_s17 + $0x10] sm:$0xff] %v593_v32  }
  0xf9 PF: > { %s13_s14 = sadd.s32 1, %s713_s14   ;;  %s812_s12 = smov %s709_s13 }
  0xfa   : > { %p10_p5 = scmp.ge.s32.totalorder %s13_s14, 4   ;;  %s813_s13 = smov %s815_s15 }
  0xfc   :  { %12 = sbr.rel (!%p10_p5) target bundleno = 2 (0x2), region = 68 }

// kernel: basic_block_ir_forward.3
= control target key start
LH: loop header
LB: loop body
LE: loop exit
PB: predicated region body
PF: predicated region fallthrough
CT: control target
= control target key end

     0   :  { %s7118_s15 = smov 0   ;;  %s7120_s16 = smov 0   ;;  %s9844_s0 = inlined_call_operand.vmem [shape: bf16[2,18,18,128], index: 0, kind: input, shape index: {}]   ;;  %s9845_s1 = inlined_call_operand.vmem [shape: bf16[9,128,128], index: 1, kind: input, shape index: {}]   ;;  %s9846_s2 = inlined_call_operand.vmem [shape: f32[1,128], index: 2, kind: input, shape index: {}]   ;;  %s9847_s3 = inlined_call_operand.vmem [shape: f32[1,128], index: 3, kind: input, shape index: {}]   ;;  %s9848_s4 = inlined_call_operand.vmem [shape: bf16[2,256,128], index: 4, kind: output, shape index: {}]  }
   0x1   :  { %s7122_s17 = smov 0  }
   0x2 LB: > { %s26_s18 = sadd.s32 1, %s7087_s16  ;;  %p5499_p0 = scmp.ge.s32.totalorder %s7091_s17, 1  ;;  %s7091_s17 = sphi %s7122_s17, %s14_s17   ;;  %s7087_s16 = sphi %s7120_s16, %s10041_s16   ;;  %s7083_s15 = sphi %s7118_s15, %s10040_s15  }
   0x3   : > { %p28_p1 = scmp.ge.s32.totalorder %s26_s18, 2  ;;  %p201_p2 = scmp.lt.s32.totalorder %s7091_s17, 3 }
   0x5   : > { %s10043_s18 = smov (%p28_p1, %s26_s18), 0  ;;  %p202_p3 = pnand %p5499_p0, %p201_p2 }
   0x7   : > { %205 = sbr.rel (%p202_p3) target bundleno = 560 (0x230), region = 36 }
   0xc   : > { %v6940_v0 = vld [vmem:[%s9845_s1 + $0x78] sm:$0xff]   ;;  %p240_p4 = scmp.lt.s32.totalorder %s7083_s15, 1  ;;  %v6941_v1 = vld [vmem:[%s9845_s1 + $0x70] sm:$0xff]   ;;  %v6942_v2 = vld [vmem:[%s9845_s1 + $0x68] sm:$0xff]   ;;  %vm328_vm0 = vsmask.f32 3328 }
   0xd   : > { %6467 = vmatprep.subr.bf16.mxu0 %v6940_v0  ;;  %6899 = vmatprep.subr.bf16.mxu1 %v6940_v0  ;;  %v6943_v3 = vld [vmem:[%s9845_s1 + $0x60] sm:$0xff]   ;;  %vm329_vm1 = vsmask.f32 7440  ;;  %v6944_v17 = vld [vmem:[%s9845_s1 + $0x58] sm:$0xff]   ;;  %v6945_v33 = vld [vmem:[%s9845_s1 + $0x50] sm:$0xff]   ;;  %vm1358_vm3 = vcmask 1042432  }
   0xe   : > { %s10045_s15 = smov (!%p240_p4, %s7083_s15), 1  ;;  %6468 = vmatpush3.bf16.msra.mxu0 %v6940_v0  ;;  %6907 = vmatpush3.bf16.msra.mxu1 %v6940_v0  ;;  %vm7182_vm2 = vmor %vm328_vm0, %vm329_vm1  ;;  %v6946_v58 = vld [vmem:[%s9845_s1 + $0x48] sm:$0xff]   ;;  %vm1359_vm4 = vcmask 1046532  }
   0xf   : > { %6469 = vmatprep.subr.bf16.mxu0 %v6941_v1  ;;  %6900 = vmatprep.subr.bf16.mxu1 %v6941_v1  ;;  %s6915_s25 = smul.u32 216, %s10045_s15  ;;  %vm7493_vm5 = vmor %vm1358_vm3, %vm1359_vm4  ;;  %s6123_s22 = sshll.u32 %s10045_s15, 7 }
  0x10   : > { %s9710_s24 = scalar_lea.vmem %s9848_s4, %s6123_s22 }
  0x11   : > { %s7151_s28 = scalar_lea.vmem %s9844_s0, %s6915_s25 }
  0x12   : > { %6470 = vmatpush3.bf16.msra.mxu0 %v6941_v1  ;;  %6908 = vmatpush3.bf16.msra.mxu1 %v6941_v1  ;;  %v7157_v4 = vld [vmem:[%s7151_s28] sm:$0xf]  ;;  %v7160_v5 = vld [vmem:[%s7151_s28 + $0x4] sm:$0xf]  ;;  %v7163_v6 = vld [vmem:[%s7151_s28 + $0x8] sm:$0x1] }
  0x13   : > { %6471 = vmatprep.subr.bf16.mxu0 %v6942_v2  ;;  %6901 = vmatprep.subr.bf16.mxu1 %v6942_v2  ;;  %v332_v7 = vshrl.u32 %v7157_v4, 16  ;;  %v335_v8 = vshll.u32 %v7157_v4, 16  ;;  %v341_v9 = vshll.u32 %v7160_v5, 16  ;;  %v345_v10 = vshrl.u32 %v7160_v5, 16  ;;  %v280_v12 = vld [vmem:[%s7151_s28 + $0x60] sm:$0xf] }
  0x14   : > { %v351_v11 = vshll.u32 %v7163_v6, 16  ;;  %v281_v15 = vld [vmem:[%s7151_s28 + $0x64] sm:$0xf]  ;;  %v320_v16 = vld [vmem:[%s7151_s28 + $0x68] sm:$0x1]  ;;  %v524_v21 = vshrl.u32 %v280_v12, 16 }
  0x15   : > { %v334_v13 = vrot.slane %v332_v7, 4  ;;  %v337_v14 = vrot.slane %v335_v8, 5  ;;  %v343_v18 = vrot.slane %v341_v9, 5  ;;  %v347_v19 = vrot.slane %v345_v10, 4  ;;  %v7178_v26 = vld [vmem:[%s7151_s28 + $0xc] sm:$0xf] }
  0x16   : > { %6472 = vmatpush3.bf16.msra.mxu0 %v6942_v2  ;;  %6909 = vmatpush3.bf16.msra.mxu1 %v6942_v2  ;;  %v527_v23 = vshll.u32 %v280_v12, 16  ;;  %v533_v24 = vshll.u32 %v281_v15, 16  ;;  %v537_v25 = vshrl.u32 %v281_v15, 16  ;;  %v353_v29 = vrot.slane %v351_v11, 5  ;;  %v7187_v32 = vld [vmem:[%s7151_s28 + $0x10] sm:$0xf] }
  0x17   : > { %6473 = vmatprep.subr.bf16.mxu0 %v6943_v3  ;;  %6902 = vmatprep.subr.bf16.mxu1 %v6943_v3  ;;  %v338_v22 = vor.u32 %v337_v14, %v334_v13  ;;  %v348_v28 = vor.u32 %v347_v19, %v343_v18  ;;  %v526_v30 = vrot.slane %v524_v21, 4  ;;  %v543_v31 = vshll.u32 %v320_v16, 16  ;;  %v7193_v40 = vld [vmem:[%s7151_s28 + $0x14] sm:$0x1]  ;;  %v282_v47 = vld [vmem:[%s7151_s28 + $0x6c] sm:$0xf] }
  0x18   : > { %v529_v35 = vrot.slane %v527_v23, 5  ;;  %v535_v36 = vrot.slane %v533_v24, 5  ;;  %v539_v37 = vrot.slane %v537_v25, 4  ;;  %v356_v41 = vshrl.u32 %v7178_v26, 16  ;;  %v283_v52 = vld [vmem:[%s7151_s28 + $0x70] sm:$0xf] }
  0x19   : > { %v339_v34 = vrot.slane %v338_v22, 4  ;;  %v349_v38 = vrot.slane %v348_v28, 4  ;;  %v545_v39 = vrot.slane %v543_v31, 5  ;;  %v359_v42 = vshll.u32 %v7178_v26, 16  ;;  %v321_v57 = vld [vmem:[%s7151_s28 + $0x74] sm:$0x1] }
  0x1a   : > { %6474 = vmatpush3.bf16.msra.mxu0 %v6943_v3  ;;  %6910 = vmatpush3.bf16.msra.mxu1 %v6943_v3  ;;  %v530_v44 = vor.u32 %v529_v35, %v526_v30  ;;  %v540_v45 = vor.u32 %v539_v37, %v535_v36  ;;  %v365_v46 = vshll.u32 %v7187_v32, 16  ;;  %v358_v49 = vrot.slane %v356_v41, 4  ;;  %v7216_v14 = vld [vmem:[%s7151_s28 + $0x18] sm:$0xf]  ;;  %v6947_v15 = vld [vmem:[%s9845_s1 + $0x40] sm:$0xff]  }
  0x1b   : > { %6475 = vmatprep.subr.bf16.mxu0 %v6944_v17  ;;  %6903 = vmatprep.subr.bf16.mxu1 %v6944_v17  ;;  %v344_v43 = vsel %vm7182_vm2, %v339_v34, %v343_v18  ;;  %v354_v48 = vsel %vm7182_vm2, %v349_v38, %v353_v29  ;;  %v361_v50 = vrot.slane %v359_v42, 5  ;;  %v369_v51 = vshrl.u32 %v7187_v32, 16  ;;  %v7224_v19 = vld [vmem:[%s7151_s28 + $0x1c] sm:$0xf]  ;;  %v7229_v25 = vld [vmem:[%s7151_s28 + $0x20] sm:$0x1] }
  0x1c   : > { %v5519_v53 = vcombine.low %v344_v43, %v354_v48  ;;  %v531_v54 = vrot.slane %v530_v44, 4  ;;  %v541_v55 = vrot.slane %v540_v45, 4  ;;  %v367_v56 = vrot.slane %v365_v46, 5  ;;  %v284_v34 = vld [vmem:[%s7151_s28 + $0x78] sm:$0xf] }
  0x1d   : > { %v362_v59 = vor.u32 %v361_v50, %v358_v49  ;;  %v371_v60 = vrot.slane %v369_v51, 4  ;;  %v375_v61 = vshll.u32 %v7193_v40, 16  ;;  %v548_v1 = vshrl.u32 %v282_v47, 16  ;;  %v6948_v41 = vld [vmem:[%s9845_s1 + $0x38] sm:$0xff]   ;;  %v322_v49 = vld [vmem:[%s7151_s28 + $0x80] sm:$0x1] }
  0x1e   : > { %6476 = vmatpush3.bf16.msra.mxu0 %v6944_v17  ;;  %6911 = vmatpush3.bf16.msra.mxu1 %v6944_v17  ;;  %v536_v63 = vsel %vm7182_vm2, %v531_v54, %v535_v36  ;;  %v546_v0 = vsel %vm7182_vm2, %v541_v55, %v545_v39  ;;  %v551_v2 = vshll.u32 %v282_v47, 16  ;;  %v557_v12 = vshll.u32 %v283_v52, 16  ;;  %v7238_v39 = vld [vmem:[%s7151_s28 + $0x7c] sm:$0xf] }
  0x1f   : > { %6477 = vmatprep.subr.bf16.mxu0 %v6945_v33  ;;  %6904 = vmatprep.subr.bf16.mxu1 %v6945_v33  ;;  %v5527_v3 = vcombine.low %v536_v63, %v546_v0  ;;  %v363_v7 = vrot.slane %v362_v59, 4  ;;  %v372_v8 = vor.u32 %v371_v60, %v367_v56  ;;  %v377_v9 = vrot.slane %v375_v61, 5  ;;  %v6949_v42 = vld [vmem:[%s9845_s1 + $0xb8] sm:$0xff]   ;;  %v6951_v59 = vld [vmem:[%s9845_s1 + $0xb0] sm:$0xff]   ;;  %v7265_v0 = vld [vmem:[%s7151_s28 + $0x28] sm:$0xf] }
  0x20   : > { %6483 = vmatprep.mubr.bf16.mxu0 %v5519_v53  ;;  %v550_v10 = vrot.slane %v548_v1, 4  ;;  %v553_v11 = vrot.slane %v551_v2, 5  ;;  %v561_v13 = vshrl.u32 %v283_v52, 16  ;;  %v567_v18 = vshll.u32 %v321_v57, 16  ;;  %v6950_v52 = vld [vmem:[%s9845_s1 + $0x30] sm:$0xff]  }
  0x21   : > { %v368_v16 = vsel %vm7182_vm2, %v363_v7, %v367_v56  ;;  %v373_v17 = vrot.slane %v372_v8, 4  ;;  %6499 = vmatprep.mubr.bf16.mxu1 %v5527_v3  ;;  %v559_v23 = vrot.slane %v557_v12, 5  ;;  %v380_v28 = vshrl.u32 %v7216_v14, 16  ;;  %v7256_v57 = vld [vmem:[%s7151_s28 + $0x24] sm:$0xf] }
  0x22   : > { %6478 = vmatpush3.bf16.msra.mxu0 %v6945_v33  ;;  %6912 = vmatpush3.bf16.msra.mxu1 %v6945_v33  ;;  %v554_v22 = vor.u32 %v553_v11, %v550_v10  ;;  %v563_v24 = vrot.slane %v561_v13, 4  ;;  %v569_v30 = vrot.slane %v567_v18, 5  ;;  %v383_v31 = vshll.u32 %v7216_v14, 16  ;;  %v7268_v8 = vld [vmem:[%s7151_s28 + $0x2c] sm:$0x1] }
  0x23   : > { %6479 = vmatprep.subr.bf16.mxu0 %v6946_v58  ;;  %6905 = vmatprep.subr.bf16.mxu1 %v6946_v58  ;;  %v378_v29 = vsel %vm7182_vm2, %v373_v17, %v377_v9  ;;  %v389_v33 = vshll.u32 %v7224_v19, 16  ;;  %v382_v38 = vrot.slane %v380_v28, 4  ;;  %v393_v45 = vshrl.u32 %v7224_v19, 16  ;;  %v7272_v13 = vld [vmem:[%s7151_s28 + $0x84] sm:$0xf] }
  0x24   : > { %v5520_v35 = vcombine.low %v368_v16, %v378_v29  ;;  %v555_v36 = vrot.slane %v554_v22, 4  ;;  %v564_v37 = vor.u32 %v563_v24, %v559_v23  ;;  %v385_v43 = vrot.slane %v383_v31, 5  ;;  %v7279_v22 = vld [vmem:[%s7151_s28 + $0x88] sm:$0xf] }
  0x25   : > { %v391_v44 = vrot.slane %v389_v33, 5  ;;  %v399_v46 = vshll.u32 %v7229_v25, 16  ;;  %v572_v50 = vshrl.u32 %v284_v34, 16  ;;  %v575_v51 = vshll.u32 %v284_v34, 16 }
  0x26   : > { %6480 = vmatpush3.bf16.msra.mxu0 %v6946_v58  ;;  %6913 = vmatpush3.bf16.msra.mxu1 %v6946_v58  ;;  %v560_v47 = vsel %vm7182_vm2, %v555_v36, %v559_v23  ;;  %v565_v48 = vrot.slane %v564_v37, 4  ;;  %v386_v53 = vor.u32 %v385_v43, %v382_v38  ;;  %v395_v54 = vrot.slane %v393_v45, 4  ;;  %v7288_v36 = vld [vmem:[%s7151_s28 + $0x8c] sm:$0x1] }
  0x27   : > { %6481 = vmatprep.subr.bf16.mxu0 %v6947_v15  ;;  %6906 = vmatprep.subr.bf16.mxu1 %v6947_v15  ;;  %v401_v55 = vrot.slane %v399_v46, 5  ;;  %v581_v56 = vshll.u32 %v7238_v39, 16  ;;  %v574_v60 = vrot.slane %v572_v50, 4  ;;  %v577_v61 = vrot.slane %v575_v51, 5  ;;  %v6953_v37 = vld [vmem:[%s9845_s1 + $0xa8] sm:$0xff]  }
  0x28   : > { %v570_v58 = vsel %vm7182_vm2, %v565_v48, %v569_v30  ;;  %v585_v63 = vshrl.u32 %v7238_v39, 16  ;;  %v387_v2 = vrot.slane %v386_v53, 4  ;;  %v396_v3 = vor.u32 %v395_v54, %v391_v44  ;;  %v6952_v30 = vld [vmem:[%s9845_s1 + $0x28] sm:$0xff]   ;;  %v7303_v53 = vld [vmem:[%s7151_s28 + $0x30] sm:$0xf] }
  0x29   : > { %v5528_v1 = vcombine.low %v560_v47, %v570_v58  ;;  %v583_v7 = vrot.slane %v581_v56, 5  ;;  %v578_v9 = vor.u32 %v577_v61, %v574_v60  ;;  %v591_v11 = vshll.u32 %v322_v49, 16  ;;  %v7312_v60 = vld [vmem:[%s7151_s28 + $0x34] sm:$0xf] }
  0x2a   : > { %6482 = vmatpush3.bf16.msra.mxu0 %v6947_v15  ;;  %6914 = vmatpush3.bf16.msra.mxu1 %v6947_v15  ;;  %v587_v10 = vrot.slane %v585_v63, 4  ;;  %v404_v12 = vshrl.u32 %v7256_v57, 16  ;;  %v392_v15 = vsel %vm7182_vm2, %v387_v2, %v391_v44  ;;  %v397_v16 = vrot.slane %v396_v3, 4 }
  0x2b   : > { %6515 = vmatprep.subr.bf16.mxu1 %v6948_v41  ;;  %6563 = vmatprep.subr.bf16.mxu0 %v6949_v42  ;;  %v407_v17 = vshll.u32 %v7256_v57, 16  ;;  %v413_v18 = vshll.u32 %v7265_v0, 16  ;;  %v579_v23 = vrot.slane %v578_v9, 4  ;;  %v593_v28 = vrot.slane %v591_v11, 5 }
  0x2c   : > { %v588_v24 = vor.u32 %v587_v10, %v583_v7  ;;  %v406_v29 = vrot.slane %v404_v12, 4  ;;  %v402_v31 = vsel %vm7182_vm2, %v397_v16, %v401_v55  ;;  %v423_v43 = vshll.u32 %v7268_v8, 16  ;;  %v7320_v16 = vld [vmem:[%s7151_s28 + $0x38] sm:$0x1] }
  0x2d   : > { %6484 = vmatmul.mubr.bf16.vlgmr.msra.gmra.mxu0 %v5520_v35  ;;  %6500 = vmatmul.mubr.bf16.vlgmr.msra.gmra.mxu1 %v5528_v1  ;;  %v409_v33 = vrot.slane %v407_v17, 5  ;;  %v415_v34 = vrot.slane %v413_v18, 5  ;;  %v417_v35 = vshrl.u32 %v7265_v0, 16  ;;  %v5521_v38 = vcombine.low %v392_v15, %v402_v31  ;;  %v7324_v18 = vld [vmem:[%s7151_s28 + $0x90] sm:$0xf] }
  0x2e   : > { %6516 = vmatpush3.bf16.msra.mxu1 %v6948_v41  ;;  %6564 = vmatpush3.bf16.msra.mxu0 %v6949_v42  ;;  %v584_v41 = vsel %vm7182_vm2, %v579_v23, %v583_v7  ;;  %v589_v42 = vrot.slane %v588_v24, 4  ;;  %v596_v46 = vshrl.u32 %v7272_v13, 16  ;;  %v599_v47 = vshll.u32 %v7272_v13, 16  ;;  %v7330_v31 = vld [vmem:[%s7151_s28 + $0x94] sm:$0xf] }
  0x2f   : > { %6517 = vmatprep.subr.bf16.mxu1 %v6950_v52  ;;  %6565 = vmatprep.subr.bf16.mxu0 %v6951_v59  ;;  %v410_v44 = vor.u32 %v409_v33, %v406_v29  ;;  %v419_v45 = vrot.slane %v417_v35, 4  ;;  %v425_v49 = vrot.slane %v423_v43, 5  ;;  %v605_v50 = vshll.u32 %v7279_v22, 16 }
  0x30   : > { %v594_v48 = vsel %vm7182_vm2, %v589_v42, %v593_v28  ;;  %v609_v51 = vshrl.u32 %v7279_v22, 16  ;;  %6487 = vmatprep.mubr.bf16.mxu0 %v5521_v38  ;;  %v598_v58 = vrot.slane %v596_v46, 4  ;;  %v601_v61 = vrot.slane %v599_v47, 5  ;;  %v6957_v38 = vld [vmem:[%s9845_s1 + $0x98] sm:$0xff]   ;;  %v6958_v46 = vld [vmem:[%s9845_s1 + $0x10] sm:$0xff]  }
  0x31   : > { %v5529_v54 = vcombine.low %v584_v41, %v594_v48  ;;  %v411_v55 = vrot.slane %v410_v44, 4  ;;  %v420_v56 = vor.u32 %v419_v45, %v415_v34  ;;  %v607_v63 = vrot.slane %v605_v50, 5  ;;  %v7340_v44 = vld [vmem:[%s7151_s28 + $0x98] sm:$0x1] }
  0x32   : > { %6518 = vmatpush3.bf16.msra.mxu1 %v6950_v52  ;;  %6566 = vmatpush3.bf16.msra.mxu0 %v6951_v59  ;;  %v6954_v52 = vld [vmem:[%s9845_s1 + $0x20] sm:$0xff]   ;;  %v611_v1 = vrot.slane %v609_v51, 4  ;;  %v615_v2 = vshll.u32 %v7288_v36, 16  ;;  %v428_v9 = vshrl.u32 %v7303_v53, 16  ;;  %v431_v10 = vshll.u32 %v7303_v53, 16 }
  0x33   : > { %6519 = vmatprep.subr.bf16.mxu1 %v6952_v30  ;;  %v6955_v59 = vld [vmem:[%s9845_s1 + $0xa0] sm:$0xff]   ;;  %6567 = vmatprep.subr.bf16.mxu0 %v6953_v37  ;;  %v416_v3 = vsel %vm7182_vm2, %v411_v55, %v415_v34  ;;  %v421_v7 = vrot.slane %v420_v56, 4  ;;  %v602_v11 = vor.u32 %v601_v61, %v598_v58  ;;  %v437_v17 = vshll.u32 %v7312_v60, 16  ;;  %v7353_v51 = vld [vmem:[%s7151_s28 + $0x3c] sm:$0xf]  ;;  %v6959_v55 = vld [vmem:[%s9845_s1 + $0x90] sm:$0xff]  }
  0x34   : > { %6503 = vmatprep.mubr.bf16.mxu1 %v5529_v54  ;;  %v612_v12 = vor.u32 %v611_v1, %v607_v63  ;;  %v617_v15 = vrot.slane %v615_v2, 5  ;;  %v430_v24 = vrot.slane %v428_v9, 4  ;;  %v433_v28 = vrot.slane %v431_v10, 5  ;;  %v7356_v54 = vld [vmem:[%s7151_s28 + $0x40] sm:$0xf] }
  0x35   : > { %v426_v23 = vsel %vm7182_vm2, %v421_v7, %v425_v49  ;;  %v441_v29 = vshrl.u32 %v7312_v60, 16  ;;  %v603_v34 = vrot.slane %v602_v11, 4  ;;  %v447_v43 = vshll.u32 %v7320_v16, 16  ;;  %v7363_v7 = vld [vmem:[%s7151_s28 + $0x44] sm:$0x1] }
  0x36   : > { %6520 = vmatpush3.bf16.msra.mxu1 %v6952_v30  ;;  %6568 = vmatpush3.bf16.msra.mxu0 %v6953_v37  ;;  %v6956_v30 = vld [vmem:[%s9845_s1 + $0x18] sm:$0xff]   ;;  %v5522_v33 = vcombine.low %v416_v3, %v426_v23  ;;  %v613_v35 = vrot.slane %v612_v12, 4  ;;  %v439_v37 = vrot.slane %v437_v17, 5  ;;  %v434_v41 = vor.u32 %v433_v28, %v430_v24  ;;  %v7375_v28 = vld [vmem:[%s7151_s28 + $0xa0] sm:$0xf] }
  0x37   : > { %6521 = vmatprep.subr.bf16.mxu1 %v6954_v52  ;;  %6569 = vmatprep.subr.bf16.mxu0 %v6955_v59  ;;  %v443_v42 = vrot.slane %v441_v29, 4  ;;  %v620_v45 = vshrl.u32 %v7324_v18, 16  ;;  %v608_v47 = vsel %vm7182_vm2, %v603_v34, %v607_v63  ;;  %v623_v49 = vshll.u32 %v7324_v18, 16  ;;  %v7366_v9 = vld [vmem:[%s7151_s28 + $0x9c] sm:$0xf]  ;;  %v6960_v29 = vld [vmem:[%s9845_s1 + $0x8] sm:$0xff]  }
  0x38   : > { %6488 = vmatmul.mubr.bf16.gmra.mxu0 %v5522_v33  ;;  %v618_v48 = vsel %vm7182_vm2, %v613_v35, %v617_v15  ;;  %v629_v50 = vshll.u32 %v7330_v31, 16  ;;  %v435_v58 = vrot.slane %v434_v41, 4  ;;  %v449_v63 = vrot.slane %v447_v43, 5  ;;  %v6961_v41 = vld [vmem:[%s9845_s1 + $0x88] sm:$0xff]  }
  0x39   : > { %v5530_v56 = vcombine.low %v608_v47, %v618_v48  ;;  %v444_v61 = vor.u32 %v443_v42, %v439_v37  ;;  %v625_v1 = vrot.slane %v623_v49, 5  ;;  %v633_v3 = vshrl.u32 %v7330_v31, 16 }
  0x3a   : > { %6522 = vmatpush3.bf16.msra.mxu1 %v6954_v52  ;;  %6570 = vmatpush3.bf16.msra.mxu0 %v6955_v59  ;;  %v622_v52 = vrot.slane %v620_v45, 4  ;;  %v631_v2 = vrot.slane %v629_v50, 5  ;;  %v440_v10 = vsel %vm7182_vm2, %v435_v58, %v439_v37  ;;  %v639_v11 = vshll.u32 %v7340_v44, 16 }
  0x3b   : > { %6523 = vmatprep.subr.bf16.mxu1 %v6956_v30  ;;  %6571 = vmatprep.subr.bf16.mxu0 %v6957_v38  ;;  %v445_v59 = vrot.slane %v444_v61, 4  ;;  %v452_v12 = vshrl.u32 %v7353_v51, 16  ;;  %v635_v17 = vrot.slane %v633_v3, 4  ;;  %v455_v23 = vshll.u32 %v7353_v51, 16  ;;  %v7391_v61 = vld [vmem:[%s7151_s28 + $0xa4] sm:$0x1] }
  0x3c   : > { %6504 = vmatmul.mubr.bf16.gmra.mxu1 %v5530_v56  ;;  %v626_v15 = vor.u32 %v625_v1, %v622_v52  ;;  %v461_v24 = vshll.u32 %v7356_v54, 16  ;;  %v641_v34 = vrot.slane %v639_v11, 5  ;;  %v465_v37 = vshrl.u32 %v7356_v54, 16 }
  0x3d   : > { %v450_v33 = vsel %vm7182_vm2, %v445_v59, %v449_v63  ;;  %v454_v35 = vrot.slane %v452_v12, 4  ;;  %v636_v43 = vor.u32 %v635_v17, %v631_v2  ;;  %v457_v45 = vrot.slane %v455_v23, 5  ;;  %v7396_v59 = vld [vmem:[%s7151_s28 + $0x48] sm:$0xf]  ;;  %v7405_v17 = vld [vmem:[%s7151_s28 + $0x4c] sm:$0xf] }
  0x3e   : > { %6524 = vmatpush3.bf16.msra.mxu1 %v6956_v30  ;;  %6572 = vmatpush3.bf16.msra.mxu0 %v6957_v38  ;;  %v5523_v42 = vcombine.low %v440_v10, %v450_v33  ;;  %v627_v30 = vrot.slane %v626_v15, 4  ;;  %v463_v47 = vrot.slane %v461_v24, 5  ;;  %v467_v48 = vrot.slane %v465_v37, 4 }
  0x3f   : > { %6525 = vmatprep.subr.bf16.mxu1 %v6958_v46  ;;  %6573 = vmatprep.subr.bf16.mxu0 %v6959_v55  ;;  %v471_v49 = vshll.u32 %v7363_v7, 16  ;;  %v644_v50 = vshrl.u32 %v7366_v9, 16  ;;  %v637_v56 = vrot.slane %v636_v43, 4  ;;  %v458_v58 = vor.u32 %v457_v45, %v454_v35 }
  0x40   : > { %6491 = vmatprep.mubr.bf16.mxu0 %v5523_v42  ;;  %v632_v38 = vsel %vm7182_vm2, %v627_v30, %v631_v2  ;;  %v647_v63 = vshll.u32 %v7366_v9, 16  ;;  %v468_v52 = vor.u32 %v467_v48, %v463_v47  ;;  %v653_v10 = vshll.u32 %v7375_v28, 16  ;;  %v6962_v2 = vld [vmem:[%s9845_s1] sm:$0xff]   ;;  %v7414_v30 = vld [vmem:[%s7151_s28 + $0x50] sm:$0x1] }
  0x41   : > { %v473_v1 = vrot.slane %v471_v49, 5  ;;  %v646_v3 = vrot.slane %v644_v50, 4  ;;  %v642_v11 = vsel %vm7182_vm2, %v637_v56, %v641_v34  ;;  %v459_v12 = vrot.slane %v458_v58, 4 }
  0x42   : > { %6526 = vmatpush3.bf16.msra.mxu1 %v6958_v46  ;;  %6574 = vmatpush3.bf16.msra.mxu0 %v6959_v55  ;;  %v649_v15 = vrot.slane %v647_v63, 5  ;;  %v657_v46 = vshrl.u32 %v7375_v28, 16  ;;  %v6963_v55 = vld [vmem:[%s9845_s1 + $0x80] sm:$0xff]   ;;  %v5531_v23 = vcombine.low %v632_v38, %v642_v11  ;;  %v469_v24 = vrot.slane %v468_v52, 4  ;;  %v7422_v38 = vld [vmem:[%s7151_s28 + $0xa8] sm:$0xf] }
  0x43   : > { %6527 = vmatprep.subr.bf16.mxu1 %v6960_v29  ;;  %6575 = vmatprep.subr.bf16.mxu0 %v6961_v41  ;;  %v655_v33 = vrot.slane %v653_v10, 5  ;;  %v663_v35 = vshll.u32 %v7391_v61, 16  ;;  %v464_v34 = vsel %vm7182_vm2, %v459_v12, %v463_v47  ;;  %v476_v43 = vshrl.u32 %v7396_v59, 16  ;;  %9875 = vst [vmem:[#allocation2_spill] sm:$0xff] %v7422_v38  ;;  %v7427_v47 = vld [vmem:[%s9845_s1 + $0xf8] sm:$0xff]  }
  0x44   : > { %v650_v37 = vor.u32 %v649_v15, %v646_v3  ;;  %v659_v42 = vrot.slane %v657_v46, 4  ;;  %6507 = vmatprep.mubr.bf16.mxu1 %v5531_v23  ;;  %v474_v45 = vsel %vm7182_vm2, %v469_v24, %v473_v1  ;;  %v479_v49 = vshll.u32 %v7396_v59, 16  ;;  %v7430_v52 = vld [vmem:[%s7151_s28 + $0xac] sm:$0xf]  ;;  %v7435_v1 = vld [vmem:[%s9845_s1 + $0x138] sm:$0xff]  }
  0x45   : > { %v665_v48 = vrot.slane %v663_v35, 5  ;;  %v485_v50 = vshll.u32 %v7405_v17, 16  ;;  %v478_v63 = vrot.slane %v476_v43, 4  ;;  %v489_v10 = vshrl.u32 %v7405_v17, 16  ;;  %v7440_v12 = vld [vmem:[%s7151_s28 + $0xb0] sm:$0x1] }
  0x46   : > { %6528 = vmatpush3.bf16.msra.mxu1 %v6960_v29  ;;  %6576 = vmatpush3.bf16.msra.mxu0 %v6961_v41  ;;  %v5524_v29 = vcombine.low %v464_v34, %v474_v45  ;;  %v651_v56 = vrot.slane %v650_v37, 4  ;;  %v660_v58 = vor.u32 %v659_v42, %v655_v33  ;;  %v481_v41 = vrot.slane %v479_v49, 5  ;;  %9876 = vst [vmem:[#allocation3_spill] sm:$0xff] %v7440_v12  ;;  %v7443_v15 = vld [vmem:[%s7151_s28 + $0x54] sm:$0xf] }
  0x47   : > { %6529 = vmatprep.subr.bf16.mxu1 %v6962_v2  ;;  %6577 = vmatprep.subr.bf16.mxu0 %v6963_v55  ;;  %v487_v3 = vrot.slane %v485_v50, 5  ;;  %v495_v11 = vshll.u32 %v7414_v30, 16  ;;  %v668_v24 = vshrl.u32 %v7422_v38, 16  ;;  %v671_v35 = vshll.u32 %v7422_v38, 16  ;;  %v7450_v34 = vld [vmem:[%s7151_s28 + $0x58] sm:$0xf] }
  0x48   : > { %6492 = vmatmul.mubr.bf16.gmra.mxu0 %v5524_v29  ;;  %v656_v46 = vsel %vm7182_vm2, %v651_v56, %v655_v33  ;;  %v661_v23 = vrot.slane %v660_v58, 4  ;;  %v482_v37 = vor.u32 %v481_v41, %v478_v63  ;;  %v491_v42 = vrot.slane %v489_v10, 4 }
  0x49   : > { %v497_v43 = vrot.slane %v495_v11, 5  ;;  %v677_v45 = vshll.u32 %v7430_v52, 16  ;;  %v670_v49 = vrot.slane %v668_v24, 4  ;;  %v673_v50 = vrot.slane %v671_v35, 5 }
  0x4a   : > { %6530 = vmatpush3.bf16.msra.mxu1 %v6962_v2  ;;  %6578 = vmatpush3.bf16.msra.mxu0 %v6963_v55  ;;  %v666_v33 = vsel %vm7182_vm2, %v661_v23, %v665_v48  ;;  %v681_v29 = vshrl.u32 %v7430_v52, 16  ;;  %v483_v56 = vrot.slane %v482_v37, 4  ;;  %v492_v58 = vor.u32 %v491_v42, %v487_v3  ;;  %v7459_v55 = vld [vmem:[%s7151_s28 + $0x5c] sm:$0x1]  ;;  %v7464_v48 = vld [vmem:[%s7151_s28 + $0xb4] sm:$0xf] }
  0x4b   : > { %6611 = vmatprep.subr.bf16.mxu1 %v7427_v47  ;;  %6659 = vmatprep.subr.bf16.mxu0 %v7435_v1  ;;  %v5532_v2 = vcombine.low %v656_v46, %v666_v33  ;;  %v679_v63 = vrot.slane %v677_v45, 5  ;;  %v674_v41 = vor.u32 %v673_v50, %v670_v49  ;;  %v687_v11 = vshll.u32 %v7440_v12, 16  ;;  %9877 = vst [vmem:[#allocation4_spill] sm:$0xff] %v7464_v48  ;;  %v7471_v37 = vld [vmem:[%s7151_s28 + $0xb8] sm:$0xf] }
  0x4c   : > { %v683_v10 = vrot.slane %v681_v29, 4  ;;  %v500_v21 = vshrl.u32 %v7443_v15, 16  ;;  %v488_v23 = vsel %vm7182_vm2, %v483_v56, %v487_v3  ;;  %v493_v24 = vrot.slane %v492_v58, 4  ;;  %9878 = vst [vmem:[#allocation5_spill] sm:$0xff] %v7471_v37  ;;  %v7477_v3 = vld [vmem:[%s7151_s28 + $0xbc] sm:$0x1] }
  0x4d   : > { %6508 = vmatmul.mubr.bf16.gmra.mxu1 %v5532_v2  ;;  %v503_v46 = vshll.u32 %v7443_v15, 16  ;;  %v509_v35 = vshll.u32 %v7450_v34, 16  ;;  %v675_v42 = vrot.slane %v674_v41, 4  ;;  %v689_v33 = vrot.slane %v687_v11, 5  ;;  %9879 = vst [vmem:[#allocation6_spill] sm:$0xff] %v7477_v3 }
  0x4e   : > { %v684_v45 = vor.u32 %v683_v10, %v679_v63  ;;  %v502_v49 = vrot.slane %v500_v21, 4  ;;  %v498_v50 = vsel %vm7182_vm2, %v493_v24, %v497_v43  ;;  %v513_v62 = vshrl.u32 %v7450_v34, 16  ;;  %v1310_v10 = vld [vmem:[%s7151_s28] sm:$0xe] }
  0x4f   : > { %v505_v29 = vrot.slane %v503_v46, 5  ;;  %v511_v2 = vrot.slane %v509_v35, 5  ;;  %v5525_v56 = vcombine.low %v488_v23, %v498_v50  ;;  %v680_v58 = vsel %vm7182_vm2, %v675_v42, %v679_v63 }
  0x50   : > { %v685_v20 = vrot.slane %v684_v45, 4  ;;  %v519_v41 = vshll.u32 %v7459_v55, 16  ;;  %v515_v21 = vrot.slane %v513_v62, 4  ;;  %v692_v12 = vshrl.u32 %v7464_v48, 16 }
  0x51   : > { %v506_v11 = vor.u32 %v505_v29, %v502_v49  ;;  %v695_v43 = vshll.u32 %v7464_v48, 16  ;;  %6495 = vmatprep.mubr.bf16.mxu0 %v5525_v56  ;;  %v701_v46 = vshll.u32 %v7471_v37, 16  ;;  %v705_v63 = vshrl.u32 %v7471_v37, 16  ;;  %v1311_v49 = vld [vmem:[%s7151_s28 + $0xc] sm:$0xe] }
  0x52   : > { %v690_v24 = vsel %vm7182_vm2, %v685_v20, %v689_v33  ;;  %v521_v23 = vrot.slane %v519_v41, 5  ;;  %v516_v45 = vor.u32 %v515_v21, %v511_v2  ;;  %v694_v50 = vrot.slane %v692_v12, 4  ;;  %v1312_v20 = vld [vmem:[%s7151_s28 + $0x18] sm:$0xe] }
  0x53   : > { %v5533_v35 = vcombine.low %v680_v58, %v690_v24  ;;  %v507_v42 = vrot.slane %v506_v11, 4  ;;  %v697_v62 = vrot.slane %v695_v43, 5  ;;  %v703_v29 = vrot.slane %v701_v46, 5 }
  0x54   : > { %v707_v38 = vrot.slane %v705_v63, 4  ;;  %v711_v48 = vshll.u32 %v7477_v3, 16  ;;  %v517_v58 = vrot.slane %v516_v45, 4  ;;  %v5567_v41 = vrot.slane %v1310_v10, 9 }
  0x55   : > { %6511 = vmatprep.mubr.bf16.mxu1 %v5533_v35  ;;  %v512_v33 = vsel %vm7182_vm2, %v507_v42, %v511_v2  ;;  %v1363_v12 = vrot.slane %v7160_v5, 5  ;;  %v698_v11 = vor.u32 %v697_v62, %v694_v50  ;;  %v5568_v24 = vrot.slane %v1311_v49, 9 }
  0x56   : > { %v708_v21 = vor.u32 %v707_v38, %v703_v29  ;;  %v713_v43 = vrot.slane %v711_v48, 5  ;;  %v522_v46 = vsel %vm7182_vm2, %v517_v58, %v521_v23  ;;  %v1370_v35 = vrot.slane %v7187_v32, 5 }
  0x57   : > { %v1364_v63 = vsel %vm7493_vm5, %v5567_v41, %v1363_v12  ;;  %v1365_v3 = vrot.slane %v1363_v12, 4  ;;  %v5526_v37 = vcombine.low %v512_v33, %v522_v46  ;;  %v699_v2 = vrot.slane %v698_v11, 4  ;;  %v1314_v12 = vld [vmem:[%s7151_s28 + $0x30] sm:$0xe]  ;;  %v1316_v46 = vld [vmem:[%s7151_s28 + $0x48] sm:$0xe] }
  0x58   : > { %v709_v42 = vrot.slane %v708_v21, 4  ;;  %v5543_v10 = vcombine.low %v7157_v4, %v7160_v5  ;;  %v9882_v38 = vrot.slane %v7163_v6, 5  ;;  %v1372_v45 = vrot.slane %v1370_v35, 4 }
  0x59   : > { %v5569_v23 = vrot.slane %v1312_v20, 9  ;;  %6496 = vmatmul.mubr.bf16.gmra.mxu0 %v5526_v37  ;;  %v704_v50 = vsel %vm7182_vm2, %v699_v2, %v703_v29  ;;  %v1377_v33 = vrot.slane %v7224_v19, 5  ;;  %v1371_v4 = vsel %vm7493_vm5, %v5568_v24, %v1370_v35  ;;  %v1315_v24 = vld [vmem:[%s7151_s28 + $0x3c] sm:$0xe] }
  0x5a   : > { %v1367_v48 = vsel %vm7493_vm5, %v1365_v3, %v9882_v38  ;;  %v714_v49 = vsel %vm7182_vm2, %v709_v42, %v713_v43  ;;  %v9883_v5 = vrot.slane %v7193_v40, 5  ;;  %v1380_v37 = vrot.slane %v7229_v25, 5  ;;  %v1313_v3 = vld [vmem:[%s7151_s28 + $0x24] sm:$0xe]  ;;  %v6971_v25 = vld [vmem:[%s9845_s1 + $0x130] sm:$0xff]  }
  0x5b   : > { %v5599_v62 = vcombine.low %v1364_v63, %v1367_v48  ;;  %v5534_v58 = vcombine.low %v704_v50, %v714_v49  ;;  %v1378_v29 = vsel %vm7493_vm5, %v5569_v23, %v1377_v33  ;;  %v1379_v20 = vrot.slane %v1377_v33, 4  ;;  %v6970_v23 = vld [vmem:[%s9845_s1 + $0xf0] sm:$0xff]  }
  0x5c   : > { %v1374_v6 = vsel %vm7493_vm5, %v1372_v45, %v9883_v5  ;;  %v1384_v41 = vrot.slane %v7265_v0, 5  ;;  %v5570_v21 = vrot.slane %v1313_v3, 9  ;;  %v1391_v43 = vrot.slane %v7312_v60, 5  ;;  %v7568_v3 = vld [vmem:[%s7151_s28 + $0x68] sm:$0x1] }
  0x5d   : > { %6579 = vmatprep.mubr.bf16.mxu0 %v5599_v62  ;;  %6512 = vmatmul.mubr.bf16.gmra.mxu1 %v5534_v58  ;;  %v5600_v11 = vcombine.low %v1371_v4, %v1374_v6  ;;  %v1381_v40 = vsel %vm7493_vm5, %v1379_v20, %v1380_v37  ;;  %v1387_v2 = vrot.slane %v7268_v8, 5  ;;  %v5571_v42 = vrot.slane %v1314_v12, 9  ;;  %v1317_v37 = vld [vmem:[%s7151_s28 + $0x54] sm:$0xe]  ;;  %v7592_v12 = vld [vmem:[%s7151_s28 + $0x60] sm:$0xe] }
  0x5e   : > { %6531 = vmatprep.mubr.bf16.mxu1 %v5543_v10  ;;  %v5601_v63 = vcombine.low %v1378_v29, %v1381_v40  ;;  %v1386_v35 = vrot.slane %v1384_v41, 4  ;;  %v1393_v38 = vrot.slane %v1391_v43, 4  ;;  %v1394_v10 = vrot.slane %v7320_v16, 5 }
  0x5f   : > { %v1398_v48 = vrot.slane %v7356_v54, 5  ;;  %v5545_v45 = vcombine.low %v7216_v14, %v7224_v19  ;;  %v1405_v50 = vrot.slane %v7405_v17, 5  ;;  %v5572_v49 = vrot.slane %v1315_v24, 9  ;;  %v6979_v24 = vld [vmem:[%s9845_s1 + $0x120] sm:$0xff]  }
  0x60   : > { %v1401_v8 = vrot.slane %v7363_v7, 5  ;;  %v5573_v33 = vrot.slane %v1316_v46, 9  ;;  %v1385_v14 = vsel %vm7493_vm5, %v5570_v21, %v1384_v41  ;;  %v1388_v19 = vsel %vm7493_vm5, %v1386_v35, %v1387_v2  ;;  %v7604_v46 = vld [vmem:[%s7151_s28 + $0x78] sm:$0xe]  ;;  %v6978_v2 = vld [vmem:[%s9845_s1 + $0xe0] sm:$0xff]  }
  0x61   : > { %6580 = vmatmul.mubr.bf16.vlgmr.msra.gmra.mxu0 %v5600_v11  ;;  %v1400_v62 = vrot.slane %v1398_v48, 4  ;;  %v1407_v16 = vrot.slane %v1405_v50, 4  ;;  %v1408_v58 = vrot.slane %v7414_v30, 5  ;;  %v1392_v4 = vsel %vm7493_vm5, %v5571_v42, %v1391_v43  ;;  %v7595_v11 = vld [vmem:[%s7151_s28 + $0x6c] sm:$0xe] }
  0x62   : > { %6660 = vmatpush3.bf16.msra.mxu0 %v7435_v1  ;;  %6583 = vmatprep.mubr.bf16.mxu0 %v5601_v63  ;;  %v1395_v7 = vsel %vm7493_vm5, %v1393_v38, %v1394_v10  ;;  %v6975_v1 = vld [vmem:[%s9845_s1 + $0x128] sm:$0xff]   ;;  %v1412_v5 = vrot.slane %v7450_v34, 5  ;;  %v9884_v6 = vcombine.low %v7178_v26, %v7187_v32  ;;  %v5546_v30 = vcombine.low %v7256_v57, %v7265_v0  ;;  %v1321_v63 = vld [vmem:[%s7151_s28 + $0x84] sm:$0xe]  ;;  %v1322_v42 = vld [vmem:[%s7151_s28 + $0x90] sm:$0xe] }
  0x63   : > { %6661 = vmatprep.subr.bf16.mxu0 %v6971_v25  ;;  %v1422_v29 = vrot.slane %v7568_v3, 5  ;;  %v5602_v20 = vcombine.low %v1385_v14, %v1388_v19  ;;  %v7574_v41 = vsel %vm7493_vm5, %v5572_v49, %v1398_v48  ;;  %v7578_v26 = vsel %vm7493_vm5, %v1400_v62, %v1401_v8  ;;  %v6974_v32 = vld [vmem:[%s9845_s1 + $0xe8] sm:$0xff]   ;;  %v7623_v48 = vld [vmem:[%s7151_s28 + $0x64] sm:$0xf]  ;;  %v1323_v49 = vld [vmem:[%s7151_s28 + $0x9c] sm:$0xe] }
  0x64   : > { %v5603_v57 = vcombine.low %v1392_v4, %v1395_v7  ;;  %v7585_v0 = vsel %vm7493_vm5, %v5573_v33, %v1405_v50  ;;  %v5547_v40 = vcombine.low %v7303_v53, %v7312_v60  ;;  %v5574_v21 = vrot.slane %v1317_v37, 9  ;;  %v7645_v4 = vld [vmem:[%s7151_s28 + $0x74] sm:$0x1] }
  0x65   : > { %6532 = vmatmul.mubr.bf16.vlgmr.msra.gmra.mxu1 %v9884_v6  ;;  %v1415_v43 = vrot.slane %v7459_v55, 5  ;;  %v5548_v35 = vcombine.low %v7353_v51, %v7356_v54  ;;  %v5604_v53 = vcombine.low %v7574_v41, %v7578_v26  ;;  %v5549_v60 = vcombine.low %v7396_v59, %v7405_v17  ;;  %v7064_v54 = vld [vmem:[%s7151_s28 + $0x80] sm:$0x1] }
  0x66   : > { %6612 = vmatpush3.bf16.msra.mxu1 %v7427_v47  ;;  %6535 = vmatprep.mubr.bf16.mxu1 %v5545_v45  ;;  %v7589_v47 = vsel %vm7493_vm5, %v1407_v16, %v1408_v58  ;;  %v5550_v55 = vcombine.low %v7443_v15, %v7450_v34  ;;  %v5575_v10 = vrot.slane %v7592_v12, 9  ;;  %v1419_v45 = vrot.slane %v7623_v48, 5  ;;  %v7641_v16 = vld [vmem:[%s7151_s28 + $0x70] sm:$0xf]  ;;  %v7065_v17 = vld [vmem:[%s7151_s28 + $0x60] sm:$0xf] }
  0x67   : > { %6613 = vmatprep.subr.bf16.mxu1 %v6970_v23  ;;  %6662 = vmatpush3.bf16.msra.mxu0 %v6971_v25  ;;  %v1414_v25 = vrot.slane %v1412_v5, 4  ;;  %v5605_v38 = vcombine.low %v7585_v0, %v7589_v47  ;;  %v5576_v62 = vrot.slane %v7595_v11, 9  ;;  %v1440_v8 = vrot.slane %v7279_v22, 5  ;;  %v1324_v0 = vld [vmem:[%s7151_s28 + $0xa8] sm:$0xe]  ;;  %v7825_v15 = vld [vmem:[%s9845_s1 + $0x1b8] sm:$0xff]  }
  0x68   : > { %6663 = vmatprep.subr.bf16.mxu0 %v6975_v1  ;;  %v1443_v33 = vrot.slane %v7288_v36, 5  ;;  %v7634_v14 = vsel %vm7493_vm5, %v5574_v21, %v1412_v5  ;;  %v1426_v58 = vrot.slane %v7641_v16, 5  ;;  %v1429_v7 = vrot.slane %v7645_v4, 5  ;;  %v6982_v36 = vld [vmem:[%s9845_s1 + $0xd8] sm:$0xff]  }
  0x69   : > { %6584 = vmatmul.mubr.bf16.gmra.mxu0 %v5602_v20  ;;  %v7638_v19 = vsel %vm7493_vm5, %v1414_v25, %v1415_v43  ;;  %v5577_v5 = vrot.slane %v7604_v46, 9  ;;  %v1442_v37 = vrot.slane %v1440_v8, 4  ;;  %v5579_v41 = vrot.slane %v1322_v42, 9  ;;  %v5695_v42 = vld [vmem:[%s7151_s28 + $0xc] sm:$0xf] }
  0x6a   : > { %6614 = vmatpush3.bf16.msra.mxu1 %v6970_v23  ;;  %6587 = vmatprep.mubr.bf16.mxu0 %v5603_v57  ;;  %v5578_v23 = vrot.slane %v1321_v63, 9  ;;  %v1447_v26 = vrot.slane %v7330_v31, 5  ;;  %v1450_v57 = vrot.slane %v7340_v44, 5  ;;  %v1433_v47 = vrot.slane %v7238_v39, 5 }
  0x6b   : > { %6615 = vmatprep.subr.bf16.mxu1 %v6974_v32  ;;  %6664 = vmatpush3.bf16.msra.mxu0 %v6975_v1  ;;  %v6983_v1 = vld [vmem:[%s9845_s1 + $0x118] sm:$0xff]   ;;  %v7669_v21 = vsel %vm7493_vm5, %v1442_v37, %v1443_v33  ;;  %v1454_v63 = vrot.slane %v7375_v28, 5  ;;  %v5581_v33 = vrot.slane %v1324_v0, 9  ;;  %v1461_v37 = vrot.slane %v7430_v52, 5  ;;  %v6986_v0 = vld [vmem:[%s9845_s1 + $0xd0] sm:$0xff]  }
  0x6c   : > { %6665 = vmatprep.subr.bf16.mxu0 %v6979_v24  ;;  %v7657_v6 = vsel %vm7493_vm5, %v5578_v23, %v1440_v8  ;;  %v7677_v44 = vsel %vm7493_vm5, %v5579_v41, %v1447_v26  ;;  %v1449_v43 = vrot.slane %v1447_v26, 4  ;;  %v6987_v23 = vld [vmem:[%s9845_s1 + $0x110] sm:$0xff]   ;;  %v1457_v8 = vrot.slane %v7391_v61, 5  ;;  %v9886_v61 = vld [vmem:[#allocation3_spill] sm:$0xff] }
  0x6d   : > { %6536 = vmatmul.mubr.bf16.gmra.mxu1 %v5546_v30  ;;  %v1421_v30 = vrot.slane %v1419_v45, 4  ;;  %v1456_v20 = vrot.slane %v1454_v63, 4  ;;  %v1464_v50 = vrot.slane %v9886_v61, 5  ;;  %v1420_v61 = vsel %vm7493_vm5, %v5575_v10, %v1419_v45  ;;  %v5698_v45 = vld [vmem:[%s7151_s28 + $0x18] sm:$0xf] }
  0x6e   : > { %6539 = vmatprep.mubr.bf16.mxu1 %v5547_v40  ;;  %6616 = vmatpush3.bf16.msra.mxu1 %v6974_v32  ;;  %v5580_v40 = vrot.slane %v1323_v49, 9  ;;  %v7689_v32 = vld [vmem:[%s7151_s28 + $0x10] sm:$0xf]  ;;  %v7693_v41 = vsel %vm7493_vm5, %v1449_v43, %v1450_v57  ;;  %v1463_v57 = vrot.slane %v1461_v37, 4  ;;  %v2231_v12 = vshrl.u32 %v5695_v42, 16 }
  0x6f   : > { %6617 = vmatprep.subr.bf16.mxu1 %v6978_v2  ;;  %6666 = vmatpush3.bf16.msra.mxu0 %v6979_v24  ;;  %v9885_v24 = vld [vmem:[#allocation2_spill] sm:$0xff]  ;;  %v9888_v43 = vld [vmem:[#allocation4_spill] sm:$0xff]  ;;  %v2234_v10 = vshll.u32 %v5695_v42, 16  ;;  %v1428_v51 = vrot.slane %v1426_v58, 4  ;;  %v2240_v59 = vshll.u32 %v7689_v32, 16  ;;  %v1434_v4 = vsel %vm7493_vm5, %v5577_v5, %v1433_v47 }
  0x70   : > { %6667 = vmatprep.subr.bf16.mxu0 %v6983_v1  ;;  %v7697_v26 = vsel %vm7493_vm5, %v5580_v40, %v1454_v63  ;;  %v9887_v40 = vld [vmem:[#allocation5_spill] sm:$0xff]  ;;  %v7763_v42 = vld [vmem:[%s7151_s28 + $0x14] sm:$0x1]  ;;  %v2233_v63 = vrot.slane %v2231_v12, 4  ;;  %v9890_v5 = vld [vmem:[#allocation6_spill] sm:$0xff] }
  0x71   : > { %6588 = vmatmul.mubr.bf16.gmra.mxu0 %v5604_v53  ;;  %v2236_v49 = vrot.slane %v2234_v10, 5  ;;  %v5701_v53 = vld [vmem:[%s7151_s28 + $0x24] sm:$0xf]  ;;  %v1430_v11 = vsel %vm7493_vm5, %v1428_v51, %v1429_v7 }
  0x72   : > { %6618 = vmatpush3.bf16.msra.mxu1 %v6978_v2  ;;  %6591 = vmatprep.mubr.bf16.mxu0 %v5605_v38  ;;  %v7707_v2 = vsel %vm7493_vm5, %v5581_v33, %v1461_v37  ;;  %v5606_v38 = vcombine.low %v7634_v14, %v7638_v19  ;;  %v1423_v33 = vsel %vm7493_vm5, %v1421_v30, %v1422_v29  ;;  %v6991_v14 = vld [vmem:[%s9845_s1 + $0x108] sm:$0xff]   ;;  %v6995_v30 = vld [vmem:[%s9845_s1 + $0x100] sm:$0xff]   ;;  %v7782_v19 = vrot.slane %v2240_v59, 5 }
  0x73   : > { %6619 = vmatprep.subr.bf16.mxu1 %v6982_v36  ;;  %6668 = vmatpush3.bf16.msra.mxu0 %v6983_v1  ;;  %v7725_v37 = vsel %vm7493_vm5, %v1456_v20, %v1457_v8  ;;  %v7737_v29 = vsel %vm7493_vm5, %v1463_v57, %v1464_v50  ;;  %v6990_v50 = vld [vmem:[%s9845_s1 + $0xc8] sm:$0xff]   ;;  %v7752_v1 = vld [vmem:[%s7151_s28 + $0xb4] sm:$0xe]  ;;  %v5607_v20 = vcombine.low %v1420_v61, %v1423_v33  ;;  %v2244_v8 = vshrl.u32 %v7689_v32, 16  ;;  %v7780_v61 = vld [vmem:[%s7151_s28 + $0x1c] sm:$0xf] }
  0x74   : > { %6669 = vmatprep.subr.bf16.mxu0 %v6987_v23  ;;  %v7767_v57 = vld [vmem:[%s7151_s28 + $0x6c] sm:$0xf]  ;;  %v2255_v33 = vshrl.u32 %v5698_v45, 16  ;;  %v2264_v51 = vshll.u32 %v7780_v61, 16  ;;  %v2268_v39 = vshrl.u32 %v7780_v61, 16  ;;  %v2279_v59 = vshrl.u32 %v5701_v53, 16 }
  0x75   : > { %6540 = vmatmul.mubr.bf16.gmra.mxu1 %v5548_v35  ;;  %v1436_v35 = vrot.slane %v7064_v54, 5  ;;  %v5552_v54 = vcombine.low %v7767_v57, %v7641_v16  ;;  %v2246_v3 = vrot.slane %v2244_v8, 4  ;;  %v2282_v46 = vshll.u32 %v5701_v53, 16  ;;  %v7068_v8 = vld [vmem:[%s7151_s28 + $0x7c] sm:$0xf] }
  0x76   : > { %6543 = vmatprep.mubr.bf16.mxu1 %v5549_v60  ;;  %6620 = vmatpush3.bf16.msra.mxu1 %v6982_v36  ;;  %v5551_v60 = vcombine.low %v7065_v17, %v7623_v48  ;;  %v1435_v36 = vrot.slane %v1433_v47, 4  ;;  %v7777_v48 = vsel %vm7493_vm5, %v5576_v62, %v1426_v58  ;;  %v2258_v17 = vshll.u32 %v5698_v45, 16  ;;  %v6994_v58 = vld [vmem:[%s9845_s1 + $0xc0] sm:$0xff]   ;;  %v7807_v45 = vld [vmem:[%s7151_s28 + $0x28] sm:$0xf] }
  0x77   : > { %6621 = vmatprep.subr.bf16.mxu1 %v6986_v0  ;;  %6670 = vmatpush3.bf16.msra.mxu0 %v6987_v23  ;;  %v9858_v62 = vrot.slane %v9887_v40, 5  ;;  %v7794_v23 = vld [vmem:[%s7151_s28 + $0x20] sm:$0x1]  ;;  %v2257_v12 = vrot.slane %v2255_v33, 4  ;;  %9889 = vst [vmem:[#allocation2_spill] sm:$0xff] %v7807_v45  ;;  %v5608_v34 = vcombine.low %v7777_v48, %v1430_v11  ;;  %v2288_v53 = vshll.u32 %v7807_v45, 16 }
  0x78   : > { %6671 = vmatprep.subr.bf16.mxu0 %v6991_v14  ;;  %v2260_v10 = vrot.slane %v2258_v17, 5  ;;  %v1437_v7 = vsel %vm7493_vm5, %v1435_v36, %v1436_v35  ;;  %v2237_v35 = vor.u32 %v2236_v49, %v2233_v63  ;;  %v7820_v36 = vld [vmem:[%s9845_s1 + $0x178] sm:$0xff]   ;;  %v5704_v63 = vld [vmem:[%s7151_s28 + $0x30] sm:$0xf]  ;;  %v7841_v48 = vld [vmem:[%s7151_s28 + $0x34] sm:$0xf] }
  0x79   : > { %6592 = vmatmul.mubr.bf16.gmra.mxu0 %v5606_v38  ;;  %v2250_v38 = vshll.u32 %v7763_v42, 16  ;;  %v5609_v17 = vcombine.low %v1434_v4, %v1437_v7  ;;  %9892 = vst [vmem:[#allocation5_spill] sm:$0xff] %v7841_v48  ;;  %v7843_v11 = vrot.slane %v2264_v51, 5  ;;  %v2284_v47 = vrot.slane %v2282_v46, 5  ;;  %v7862_v46 = vld [vmem:[%s7151_s28 + $0x40] sm:$0xf] }
  0x7a   : > { %6622 = vmatpush3.bf16.msra.mxu1 %v6986_v0  ;;  %6595 = vmatprep.mubr.bf16.mxu0 %v5607_v20  ;;  %v2247_v20 = vor.u32 %v2246_v3, %v7782_v19  ;;  %v2261_v49 = vor.u32 %v2260_v10, %v2257_v12  ;;  %v7067_v3 = vld [vmem:[%s7151_s28 + $0x78] sm:$0xf]  ;;  %v2270_v12 = vrot.slane %v2268_v39, 4  ;;  %v2281_v10 = vrot.slane %v2279_v59, 4  ;;  %9893 = vst [vmem:[#allocation4_spill] sm:$0xff] %v7862_v46 }
  0x7b   : > { %6623 = vmatprep.subr.bf16.mxu1 %v6990_v50  ;;  %6672 = vmatpush3.bf16.msra.mxu0 %v6991_v14  ;;  %v2274_v14 = vshll.u32 %v7794_v23, 16  ;;  %v5553_v33 = vcombine.low %v7067_v3, %v7068_v8  ;;  %v7834_v25 = vrot.slane %v2250_v38, 5  ;;  %v7846_v0 = vld [vmem:[%s7151_s28 + $0x38] sm:$0x1]  ;;  %v7848_v4 = vrot.slane %v2237_v35, 4 }
  0x7c   : > { %6673 = vmatprep.subr.bf16.mxu0 %v6995_v30  ;;  %v7850_v7 = vrot.slane %v2247_v20, 4  ;;  %v2303_v3 = vshrl.u32 %v5704_v63, 16  ;;  %v5707_v8 = vld [vmem:[%s7151_s28 + $0x3c] sm:$0xf]  ;;  %v7858_v51 = vrot.slane %v2288_v53, 5  ;;  %v2306_v39 = vshll.u32 %v5704_v63, 16 }
  0x7d   : > { %6544 = vmatmul.mubr.bf16.gmra.mxu1 %v5550_v55  ;;  %v1470_v55 = vrot.slane %v9858_v62, 4  ;;  %v7852_v38 = vrot.slane %v2274_v14, 5  ;;  %v2312_v59 = vshll.u32 %v7841_v48, 16  ;;  %v2316_v20 = vshrl.u32 %v7841_v48, 16 }
  0x7e   : > { %6547 = vmatprep.mubr.bf16.mxu1 %v5551_v60  ;;  %6624 = vmatpush3.bf16.msra.mxu1 %v6990_v50  ;;  %v7837_v60 = vld [vmem:[%s7151_s28 + $0x2c] sm:$0x1]  ;;  %v2292_v50 = vshrl.u32 %v7807_v45, 16  ;;  %v2271_v14 = vor.u32 %v2270_v12, %v7843_v11  ;;  %v2305_v53 = vrot.slane %v2303_v3, 4  ;;  %v2308_v63 = vrot.slane %v2306_v39, 5 }
  0x7f   : > { %6625 = vmatprep.subr.bf16.mxu1 %v6994_v58  ;;  %9891 = vst [vmem:[#allocation3_spill] sm:$0xff] %v7837_v60  ;;  %6674 = vmatpush3.bf16.msra.mxu0 %v6995_v30  ;;  %v7856_v30 = vrot.slane %v2261_v49, 4  ;;  %v2327_v49 = vshrl.u32 %v5707_v8, 16  ;;  %v2330_v62 = vshll.u32 %v5707_v8, 16  ;;  %v2318_v48 = vrot.slane %v2316_v20, 4 }
  0x80   : > { %6755 = vmatprep.subr.bf16.mxu0 %v7825_v15  ;;  %v2294_v35 = vrot.slane %v2292_v50, 4  ;;  %v7872_v50 = vrot.slane %v2312_v59, 5  ;;  %v7875_v45 = vld [vmem:[%s7151_s28 + $0x44] sm:$0x1]  ;;  %v2340_v12 = vshrl.u32 %v7862_v46, 16  ;;  %v9894_v16 = vrot.slane %v9887_v40, 5 }
  0x81   : > { %6596 = vmatmul.mubr.bf16.gmra.mxu0 %v5608_v34  ;;  %v2298_v34 = vshll.u32 %v7837_v60, 16  ;;  %v9895_v57 = vrot.slane %v7752_v1, 9  ;;  %v7896_v39 = vld [vmem:[%s7151_s28 + $0x4c] sm:$0xf]  ;;  %v2329_v59 = vrot.slane %v2327_v49, 4  ;;  %v2332_v20 = vrot.slane %v2330_v62, 5 }
  0x82   : > { %6626 = vmatpush3.bf16.msra.mxu1 %v6994_v58  ;;  %6599 = vmatprep.mubr.bf16.mxu0 %v5609_v17  ;;  %v2285_v58 = vor.u32 %v2284_v47, %v2281_v10  ;;  %v2322_v17 = vshll.u32 %v7846_v0, 16  ;;  %v2336_v47 = vshll.u32 %v7862_v46, 16  ;;  %v5710_v10 = vld [vmem:[%s7151_s28 + $0x48] sm:$0xf]  ;;  %v2295_v8 = vor.u32 %v2294_v35, %v7858_v51 }
  0x83   : > { %6707 = vmatprep.subr.bf16.mxu1 %v7820_v36  ;;  %v2342_v1 = vrot.slane %v2340_v12, 4  ;;  %v7900_v46 = vrot.slane %v2271_v14, 4  ;;  %v2243_v62 = vsel %vm7182_vm2, %v7848_v4, %v7782_v19  ;;  %v2253_v35 = vsel %vm7182_vm2, %v7850_v7, %v7834_v25  ;;  %v5713_v4 = vld [vmem:[%s7151_s28 + $0x54] sm:$0xf] }
  0x84   : > { %v7898_v60 = vrot.slane %v2336_v47, 5  ;;  %v2354_v14 = vshll.u32 %v5710_v10, 16  ;;  %v2346_v49 = vshll.u32 %v7875_v45, 16  ;;  %v2364_v19 = vshrl.u32 %v7896_v39, 16 }
  0x85   : > { %6548 = vmatmul.mubr.bf16.gmra.mxu1 %v5552_v54  ;;  %v7886_v54 = vsel %vm7493_vm5, %v9895_v57, %v9894_v16  ;;  %v7902_v16 = vrot.slane %v2285_v58, 4  ;;  %v7904_v57 = vrot.slane %v2298_v34, 5  ;;  %v2360_v58 = vshll.u32 %v7896_v39, 16 }
  0x86   : > { %6551 = vmatprep.mubr.bf16.mxu1 %v5553_v33  ;;  %v9896_v33 = vrot.slane %v9890_v5, 5  ;;  %v2351_v5 = vshrl.u32 %v5710_v10, 16  ;;  %v9898_v34 = vcombine.low %v7677_v44, %v7693_v41  ;;  %v7925_v47 = vrot.slane %v2295_v8, 4  ;;  %v7931_v10 = vld [vmem:[%s7151_s28 + $0x58] sm:$0xf] }
  0x87   : > { %v7927_v12 = vrot.slane %v2322_v17, 5  ;;  %v2333_v25 = vor.u32 %v2332_v20, %v2329_v59  ;;  %v2343_v7 = vor.u32 %v2342_v1, %v7898_v60  ;;  %v9899_v44 = vcombine.low %v7272_v13, %v7279_v22  ;;  %v7937_v41 = vld [vmem:[%s7151_s28 + $0x50] sm:$0x1] }
  0x88   : > { %v7892_v3 = vsel %vm7493_vm5, %v1470_v55, %v9896_v33  ;;  %v9897_v55 = vcombine.low %v7657_v6, %v7669_v21  ;;  %v2309_v6 = vor.u32 %v2308_v63, %v2305_v53  ;;  %v2319_v21 = vor.u32 %v2318_v48, %v7872_v50 }
  0x89   : > { %v2353_v48 = vrot.slane %v2351_v5, 4  ;;  %v2356_v53 = vrot.slane %v2354_v14, 5  ;;  %v7939_v63 = vrot.slane %v2360_v58, 5  ;;  %v2366_v17 = vrot.slane %v2364_v19, 4  ;;  %v5716_v5 = vld [vmem:[%s7151_s28 + $0x60] sm:$0xf] }
  0x8a   : > { %6600 = vmatmul.mubr.bf16.gmra.mxu0 %v9897_v55  ;;  %v9900_v33 = vcombine.low %v7324_v18, %v7330_v31  ;;  %v2375_v8 = vshrl.u32 %v5713_v4, 16  ;;  %v2378_v59 = vshll.u32 %v5713_v4, 16  ;;  %v7944_v20 = vrot.slane %v2309_v6, 4  ;;  %v7961_v31 = vld [vmem:[%s7151_s28 + $0x64] sm:$0xf] }
  0x8b   : > { %6603 = vmatprep.mubr.bf16.mxu0 %v9898_v34  ;;  %v7946_v1 = vrot.slane %v2319_v21, 4  ;;  %v7948_v13 = vrot.slane %v2346_v49, 5  ;;  %v2384_v22 = vshll.u32 %v7931_v10, 16  ;;  %v5614_v55 = vcombine.low %v7886_v54, %v7892_v3  ;;  %v7957_v34 = vld [vmem:[%s7151_s28 + $0x5c] sm:$0x1] }
  0x8c   : > { %v5759_v14 = vcombine.low %v2243_v62, %v2253_v35  ;;  %v7954_v58 = vrot.slane %v2333_v25, 4  ;;  %v2388_v18 = vshrl.u32 %v7931_v10, 16  ;;  %v7963_v6 = vrot.slane %v2343_v7, 4 }
  0x8d   : > { %6552 = vmatmul.mubr.bf16.gmra.mxu1 %v9899_v44  ;;  %v2370_v21 = vshll.u32 %v7937_v41, 16  ;;  %v2399_v49 = vshrl.u32 %v5716_v5, 16  ;;  %v2402_v19 = vshll.u32 %v5716_v5, 16  ;;  %v9901_v4 = vcombine.low %v7697_v26, %v7725_v37 }
  0x8e   : > { %6555 = vmatprep.mubr.bf16.mxu1 %v9900_v33  ;;  %v2357_v54 = vor.u32 %v2356_v53, %v2353_v48  ;;  %v2367_v3 = vor.u32 %v2366_v17, %v7939_v63  ;;  %v2377_v62 = vrot.slane %v2375_v8, 4  ;;  %v2380_v35 = vrot.slane %v2378_v59, 5  ;;  %v8001_v8 = vld [vmem:[%s7151_s28 + $0x70] sm:$0xf] }
  0x8f   : > { %v9902_v25 = vcombine.low %v7707_v2, %v7737_v29  ;;  %v7973_v7 = vrot.slane %v2384_v22, 5  ;;  %v2390_v44 = vrot.slane %v2388_v18, 4  ;;  %v2394_v33 = vshll.u32 %v7957_v34, 16 }
  0x90   : > { %v2408_v26 = vshll.u32 %v7961_v31, 16  ;;  %v2267_v37 = vsel %vm7182_vm2, %v7856_v30, %v7843_v11  ;;  %v2277_v2 = vsel %vm7182_vm2, %v7900_v46, %v7852_v38  ;;  %v2401_v29 = vrot.slane %v2399_v49, 4  ;;  %v5719_v46 = vld [vmem:[%s7151_s28 + $0x6c] sm:$0xf] }
  0x91   : > { %v2404_v48 = vrot.slane %v2402_v19, 5  ;;  %v9903_v53 = vcombine.low %v7366_v9, %v7375_v28  ;;  %v2291_v17 = vsel %vm7182_vm2, %v7902_v16, %v7858_v51  ;;  %v2301_v11 = vsel %vm7182_vm2, %v7925_v47, %v7904_v57  ;;  %v8009_v16 = vld [vmem:[%s7151_s28 + $0x68] sm:$0x1] }
  0x92   : > { %6604 = vmatmul.mubr.bf16.gmra.mxu0 %v9901_v4  ;;  %v7996_v30 = vrot.slane %v2370_v21, 5  ;;  %v2412_v38 = vshrl.u32 %v7961_v31, 16  ;;  %v9904_v9 = vcombine.low %v9885_v24, %v7430_v52  ;;  %v8006_v28 = vrot.slane %v2357_v54, 4  ;;  %v6996_v52 = vld [vmem:[%s7151_s28 + $0xc] sm:$0xff]  }
  0x93   : > { %6607 = vmatprep.mubr.bf16.mxu0 %v9902_v25  ;;  %v2381_v51 = vor.u32 %v2380_v35, %v2377_v62  ;;  %v2423_v59 = vshrl.u32 %v5719_v46, 16  ;;  %v2426_v57 = vshll.u32 %v5719_v46, 16  ;;  %v8011_v47 = vrot.slane %v2367_v3, 4  ;;  %v8022_v62 = vld [vmem:[%s7151_s28 + $0x74] sm:$0x1] }
  0x94   : > { %v2391_v22 = vor.u32 %v2390_v44, %v7973_v7  ;;  %v8014_v5 = vrot.slane %v2394_v33, 5  ;;  %v2432_v18 = vshll.u32 %v8001_v8, 16  ;;  %v2405_v24 = vor.u32 %v2404_v48, %v2401_v29  ;;  %v5722_v25 = vld [vmem:[%s7151_s28 + $0x78] sm:$0xf]  ;;  %v8026_v44 = vld [vmem:[%s7151_s28 + $0x7c] sm:$0xf] }
  0x95   : > { %6556 = vmatmul.mubr.bf16.gmra.mxu1 %v9903_v53  ;;  %v8018_v21 = vrot.slane %v2408_v26, 5  ;;  %v2414_v49 = vrot.slane %v2412_v38, 4  ;;  %v2436_v19 = vshrl.u32 %v8001_v8, 16  ;;  %v5760_v4 = vcombine.low %v2267_v37, %v2277_v2  ;;  %v8033_v26 = vld [vmem:[%s7151_s28 + $0x80] sm:$0x1] }
  0x96   : > { %6559 = vmatprep.mubr.bf16.mxu1 %v9904_v9  ;;  %v5761_v54 = vcombine.low %v2291_v17, %v2301_v11  ;;  %v2425_v3 = vrot.slane %v2423_v59, 4  ;;  %v2428_v35 = vrot.slane %v2426_v57, 5  ;;  %v8028_v33 = vrot.slane %v2381_v51, 4 }
  0x97   : > { %v8030_v53 = vrot.slane %v2432_v18, 5  ;;  %v2438_v29 = vrot.slane %v2436_v19, 4  ;;  %v2447_v48 = vshrl.u32 %v5722_v25, 16  ;;  %v2418_v37 = vshll.u32 %v8009_v16, 16  ;;  %v5725_v19 = vld [vmem:[%s7151_s28 + $0x84] sm:$0xf] }
  0x98   : > { %v2450_v2 = vshll.u32 %v5722_v25, 16  ;;  %v2456_v17 = vshll.u32 %v8026_v44, 16  ;;  %v2460_v11 = vshrl.u32 %v8026_v44, 16  ;;  %v8038_v38 = vrot.slane %v2391_v22, 4  ;;  %v7000_v25 = vld [vmem:[%s7151_s28 + $0x24] sm:$0xff]  }
  0x99   : > { %v8040_v46 = vrot.slane %v2405_v24, 4  ;;  %v2449_v9 = vrot.slane %v2447_v48, 4  ;;  %v9905_v51 = vcombine.low %v9888_v43, %v9887_v40  ;;  %v2315_v22 = vsel %vm7182_vm2, %v7944_v20, %v7872_v50 }
  0x9a   : > { %6608 = vmatmul.mubr.bf16.gmra.mxu0 %v5614_v55  ;;  %v2415_v55 = vor.u32 %v2414_v49, %v8018_v21  ;;  %v2452_v59 = vrot.slane %v2450_v2, 5  ;;  %v8046_v57 = vrot.slane %v2456_v17, 5  ;;  %v2462_v18 = vrot.slane %v2460_v11, 4  ;;  %v8095_v17 = vld [vmem:[%s7151_s28 + $0x8c] sm:$0x1] }
  0x9b   : > { %6675 = vmatprep.mubr.bf16.mxu0 %v5759_v14  ;;  %v2429_v14 = vor.u32 %v2428_v35, %v2425_v3  ;;  %v2439_v24 = vor.u32 %v2438_v29, %v8030_v53  ;;  %v2442_v49 = vshll.u32 %v8022_v62, 16  ;;  %v2466_v40 = vshll.u32 %v8033_v26, 16  ;;  %v8069_v3 = vld [vmem:[%s7151_s28 + $0x88] sm:$0xf]  ;;  %v6997_v35 = vld [vmem:[%s7151_s28 + $0x18] sm:$0xff]  }
  0x9c   : > { %v2325_v43 = vsel %vm7182_vm2, %v7946_v1, %v7927_v12  ;;  %v2349_v50 = vsel %vm7182_vm2, %v7963_v6, %v7948_v13  ;;  %v2453_v20 = vor.u32 %v2452_v59, %v2449_v9  ;;  %v7003_v12 = vld [vmem:[%s9845_s1 + $0x1b0] sm:$0xff]   ;;  %v8076_v1 = vrot.slane %v2418_v37, 5  ;;  %v8100_v11 = vld [vmem:[%s9845_s1 + $0x1a8] sm:$0xff]  }
  0x9d   : > { %6560 = vmatmul.mubr.bf16.gmra.mxu1 %v9905_v51  ;;  %v2474_v29 = vshll.u32 %v5725_v19, 16  ;;  %v7002_v13 = vld [vmem:[%s9845_s1 + $0x170] sm:$0xff]   ;;  %v2363_v6 = vsel %vm7182_vm2, %v8006_v28, %v7939_v63  ;;  %v2373_v48 = vsel %vm7182_vm2, %v8011_v47, %v7996_v30  ;;  %v8090_v37 = vrot.slane %v2415_v55, 4 }
  0x9e   : > { %6627 = vmatprep.mubr.bf16.mxu1 %v6996_v52  ;;  %v2339_v52 = vsel %vm7182_vm2, %v7954_v58, %v7898_v60  ;;  %v2463_v60 = vor.u32 %v2462_v18, %v8046_v57  ;;  %v2471_v58 = vshrl.u32 %v5725_v19, 16  ;;  %v8092_v2 = vrot.slane %v2429_v14, 4  ;;  %v5728_v14 = vld [vmem:[%s7151_s28 + $0x90] sm:$0xf]  ;;  %v8123_v59 = vld [vmem:[%s7151_s28 + $0x94] sm:$0xf] }
  0x9f   : > { %v8102_v63 = vrot.slane %v2439_v24, 4  ;;  %v8104_v28 = vrot.slane %v2442_v49, 5  ;;  %v2480_v30 = vshll.u32 %v8069_v3, 16  ;;  %v2484_v47 = vshrl.u32 %v8069_v3, 16  ;;  %9906 = vst [vmem:[#allocation6_spill] sm:$0xff] %v8123_v59 }
  0xa0   : > { %v2397_v55 = vsel %vm7182_vm2, %v8038_v38, %v8014_v5  ;;  %v8117_v9 = vrot.slane %v2453_v20, 4  ;;  %v8119_v51 = vrot.slane %v2466_v40, 5  ;;  %v2476_v18 = vrot.slane %v2474_v29, 5  ;;  %v7006_v5 = vld [vmem:[%s9845_s1 + $0x168] sm:$0xff]  }
  0xa1   : > { %v2498_v38 = vshll.u32 %v5728_v14, 16  ;;  %v2504_v24 = vshll.u32 %v8123_v59, 16  ;;  %v2508_v49 = vshrl.u32 %v8123_v59, 16  ;;  %v5762_v40 = vcombine.low %v2315_v22, %v2325_v43 }
  0xa2   : > { %6676 = vmatmul.mubr.bf16.vlgmr.msra.gmra.mxu0 %v5760_v4  ;;  %v2387_v4 = vsel %vm7182_vm2, %v8028_v33, %v7973_v7  ;;  %v2490_v7 = vshll.u32 %v8095_v17, 16  ;;  %v2495_v33 = vshrl.u32 %v5728_v14, 16  ;;  %v5763_v20 = vcombine.low %v2339_v52, %v2349_v50 }
  0xa3   : > { %6756 = vmatpush3.bf16.msra.mxu0 %v7825_v15  ;;  %6679 = vmatprep.mubr.bf16.mxu0 %v5761_v54  ;;  %v8125_v15 = vrot.slane %v2463_v60, 4  ;;  %v2473_v54 = vrot.slane %v2471_v58, 4  ;;  %v8134_v19 = vrot.slane %v2480_v30, 5  ;;  %v7001_v60 = vld [vmem:[%s7151_s28 + $0x30] sm:$0xff]   ;;  %v7011_v58 = vld [vmem:[%s9845_s1 + $0x1a0] sm:$0xff]   ;;  %v2500_v14 = vrot.slane %v2498_v38, 5 }
  0xa4   : > { %6757 = vmatprep.subr.bf16.mxu0 %v7003_v12  ;;  %v2497_v29 = vrot.slane %v2495_v33, 4  ;;  %v2510_v22 = vrot.slane %v2508_v49, 4  ;;  %v8142_v43 = vcombine.low %v2363_v6, %v2373_v48  ;;  %v8145_v52 = vcombine.low %v2387_v4, %v2397_v55  ;;  %v5731_v30 = vld [vmem:[%s7151_s28 + $0x9c] sm:$0xf]  ;;  %v8167_v4 = vld [vmem:[%s7151_s28 + $0xa4] sm:$0x1] }
  0xa5   : > { %6628 = vmatmul.mubr.bf16.vlgmr.msra.gmra.mxu1 %v6997_v35  ;;  %v2486_v35 = vrot.slane %v2484_v47, 4  ;;  %v2477_v48 = vor.u32 %v2476_v18, %v2473_v54  ;;  %v8164_v47 = vld [vmem:[%s7151_s28 + $0xa0] sm:$0xf]  ;;  %9909 = vst [vmem:[#allocation9_spill] sm:$0xff] %v8167_v4  ;;  %v2519_v55 = vshrl.u32 %v5731_v30, 16  ;;  %v2522_v33 = vshll.u32 %v5731_v30, 16 }
  0xa6   : > { %6708 = vmatpush3.bf16.msra.mxu1 %v7820_v36  ;;  %6631 = vmatprep.mubr.bf16.mxu1 %v7000_v25  ;;  %v8140_v36 = vrot.slane %v2504_v24, 5  ;;  %v2421_v25 = vsel %vm7182_vm2, %v8090_v37, %v8076_v1  ;;  %9908 = vst [vmem:[#allocation8_spill] sm:$0xff] %v8164_v47  ;;  %v7004_v38 = vld [vmem:[%s7151_s28 + $0x3c] sm:$0xff]   ;;  %v2528_v37 = vshll.u32 %v8164_v47, 16  ;;  %v2532_v24 = vshrl.u32 %v8164_v47, 16 }
  0xa7   : > { %6709 = vmatprep.subr.bf16.mxu1 %v7002_v13  ;;  %6758 = vmatpush3.bf16.msra.mxu0 %v7003_v12  ;;  %v8156_v12 = vld [vmem:[%s7151_s28 + $0x98] sm:$0x1]  ;;  %v2487_v1 = vor.u32 %v2486_v35, %v8134_v19  ;;  %v7010_v54 = vld [vmem:[%s9845_s1 + $0x160] sm:$0xff]   ;;  %v2501_v18 = vor.u32 %v2500_v14, %v2497_v29  ;;  %v2521_v30 = vrot.slane %v2519_v55, 4  ;;  %v2524_v49 = vrot.slane %v2522_v33, 5 }
  0xa8   : > { %6759 = vmatprep.subr.bf16.mxu0 %v8100_v11  ;;  %9907 = vst [vmem:[#allocation7_spill] sm:$0xff] %v8156_v12  ;;  %v2514_v35 = vshll.u32 %v8156_v12, 16  ;;  %v2534_v6 = vrot.slane %v2532_v24, 4  ;;  %v2538_v50 = vshll.u32 %v8167_v4, 16  ;;  %v5734_v47 = vld [vmem:[%s7151_s28 + $0xa8] sm:$0xf] }
  0xa9   : > { %v7014_v29 = vld [vmem:[%s9845_s1 + $0x158] sm:$0xff]   ;;  %v8190_v14 = vrot.slane %v2477_v48, 4  ;;  %v2543_v55 = vshrl.u32 %v5734_v47, 16  ;;  %v2546_v33 = vshll.u32 %v5734_v47, 16  ;;  %v8203_v4 = vld [vmem:[%s7151_s28 + $0xb0] sm:$0x1] }
  0xaa   : > { %6680 = vmatmul.mubr.bf16.gmra.mxu0 %v5762_v40  ;;  %6710 = vmatpush3.bf16.msra.mxu1 %v7002_v13  ;;  %v7015_v13 = vld [vmem:[%s9845_s1 + $0x198] sm:$0xff]   ;;  %v2511_v40 = vor.u32 %v2510_v22, %v8140_v36  ;;  %v8192_v22 = vrot.slane %v2490_v7, 5  ;;  %v7005_v48 = vld [vmem:[%s7151_s28 + $0x48] sm:$0xff]   ;;  %v8206_v7 = vrot.slane %v2487_v1, 4  ;;  %v8208_v12 = vrot.slane %v2501_v18, 4 }
  0xab   : > { %6683 = vmatprep.mubr.bf16.mxu0 %v5763_v20  ;;  %6711 = vmatprep.subr.bf16.mxu1 %v7006_v5  ;;  %v8183_v20 = vrot.slane %v2528_v37, 5  ;;  %v2525_v37 = vor.u32 %v2524_v49, %v2521_v30  ;;  %v8210_v59 = vrot.slane %v2514_v35, 5  ;;  %v7018_v49 = vld [vmem:[%s9845_s1 + $0x150] sm:$0xff]   ;;  %v8227_v18 = vrot.slane %v2546_v33, 5 }
  0xac   : > { %6760 = vmatpush3.bf16.msra.mxu0 %v8100_v11  ;;  %v8195_v11 = vld [vmem:[%s7151_s28 + $0xac] sm:$0xf]  ;;  %v2562_v35 = vshll.u32 %v8203_v4, 16 }
  0xad   : > { %6632 = vmatmul.mubr.bf16.gmra.mxu1 %v7001_v60  ;;  %6761 = vmatprep.subr.bf16.mxu0 %v7011_v58  ;;  %9910 = vst [vmem:[#allocation10_spill] sm:$0xff] %v8195_v11  ;;  %v2445_v60 = vsel %vm7182_vm2, %v8102_v63, %v8104_v28  ;;  %v2535_v24 = vor.u32 %v2534_v6, %v8183_v20  ;;  %v2552_v47 = vshll.u32 %v8195_v11, 16  ;;  %v7008_v63 = vld [vmem:[%s7151_s28 + $0x54] sm:$0xff]   ;;  %v8217_v28 = vrot.slane %v2511_v40, 4 }
  0xae   : > { %6635 = vmatprep.mubr.bf16.mxu1 %v7004_v38  ;;  %6712 = vmatpush3.bf16.msra.mxu1 %v7006_v5  ;;  %v7019_v5 = vld [vmem:[%s9845_s1 + $0x190] sm:$0xff]   ;;  %v8219_v6 = vrot.slane %v2538_v50, 5  ;;  %v8221_v38 = vrot.slane %v2543_v55, 4  ;;  %v2556_v1 = vshrl.u32 %v8195_v11, 16  ;;  %v8236_v40 = vrot.slane %v2525_v37, 4 }
  0xaf   : > { %6713 = vmatprep.subr.bf16.mxu1 %v7010_v54  ;;  %v8238_v30 = vrot.slane %v2535_v24, 4  ;;  %v5737_v55 = vld [vmem:[%s7151_s28 + $0xb4] sm:$0xf]  ;;  %v8242_v11 = vld [vmem:[%s7151_s28 + $0xb8] sm:$0xf]  ;;  %v7022_v24 = vld [vmem:[%s9845_s1 + $0x148] sm:$0xff]  }
  0xb0   : > { %6762 = vmatpush3.bf16.msra.mxu0 %v7011_v58  ;;  %v9911_v58 = vsel %vm7182_vm2, %v8040_v46, %v8018_v21  ;;  %9912 = vst [vmem:[#allocation11_spill] sm:$0xff] %v8242_v11  ;;  %v2459_v21 = vsel %vm7182_vm2, %v8117_v9, %v8046_v57  ;;  %v8254_v46 = vrot.slane %v2552_v47, 5  ;;  %v5740_v37 = vld [vmem:[%s7151_s28 + $0xc0] sm:$0xf]  ;;  %v2469_v57 = vsel %vm7182_vm2, %v8125_v15, %v8119_v51  ;;  %v8281_v47 = vld [vmem:[%s7151_s28 + $0xc4] sm:$0xf] }
  0xb1   : > { %6763 = vmatprep.subr.bf16.mxu0 %v7015_v13  ;;  %v5766_v50 = vcombine.low %v9911_v58, %v2421_v25  ;;  %v2567_v25 = vshrl.u32 %v5737_v55, 16  ;;  %v2483_v9 = vsel %vm7182_vm2, %v8190_v14, %v8134_v19  ;;  %9915 = vst [vmem:[#allocation13_spill] sm:$0xff] %v8281_v47  ;;  %v8284_v51 = vld [vmem:[%s7151_s28 + $0xc8] sm:$0x1]  ;;  %v2600_v58 = vshll.u32 %v8281_v47, 16 }
  0xb2   : > { %6684 = vmatmul.mubr.bf16.gmra.mxu0 %v8142_v43  ;;  %6714 = vmatpush3.bf16.msra.mxu1 %v7010_v54  ;;  %v9913_v43 = vsel %vm7182_vm2, %v8092_v2, %v8030_v53  ;;  %v2558_v54 = vrot.slane %v2556_v1, 4  ;;  %v2570_v53 = vshll.u32 %v5737_v55, 16  ;;  %v2576_v2 = vshll.u32 %v8242_v11, 16 }
  0xb3   : > { %6687 = vmatprep.mubr.bf16.mxu0 %v8145_v52  ;;  %v5767_v33 = vcombine.low %v9913_v43, %v2445_v60  ;;  %6715 = vmatprep.subr.bf16.mxu1 %v7014_v29  ;;  %v7023_v52 = vld [vmem:[%s9845_s1 + $0x188] sm:$0xff]   ;;  %v2580_v60 = vshrl.u32 %v8242_v11, 16  ;;  %v2569_v15 = vrot.slane %v2567_v25, 4  ;;  %v9916_v55 = vrot.slane %v7689_v32, 5 }
  0xb4   : > { %6764 = vmatpush3.bf16.msra.mxu0 %v7015_v13  ;;  %v2493_v13 = vsel %vm7182_vm2, %v8206_v7, %v8192_v22  ;;  %v2572_v19 = vrot.slane %v2570_v53, 5  ;;  %v8286_v14 = vrot.slane %v2576_v2, 5  ;;  %v2591_v22 = vshrl.u32 %v5740_v37, 16  ;;  %v7009_v2 = vld [vmem:[%s7151_s28 + $0x60] sm:$0xff]  }
  0xb5   : > { %6636 = vmatmul.mubr.bf16.gmra.mxu1 %v7005_v48  ;;  %6765 = vmatprep.subr.bf16.mxu0 %v7019_v5  ;;  %v8278_v48 = vld [vmem:[%s7151_s28 + $0xbc] sm:$0x1]  ;;  %v2582_v1 = vrot.slane %v2580_v60, 4  ;;  %v2594_v7 = vshll.u32 %v5740_v37, 16  ;;  %v8291_v43 = vrot.slane %v9916_v55, 4  ;;  %v8296_v25 = vrot.slane %v2562_v35, 5 }
  0xb6   : > { %9914 = vst [vmem:[#allocation12_spill] sm:$0xff] %v8278_v48  ;;  %6639 = vmatprep.mubr.bf16.mxu1 %v7008_v63  ;;  %6716 = vmatpush3.bf16.msra.mxu1 %v7014_v29  ;;  %v2549_v63 = vor.u32 %v8227_v18, %v8221_v38  ;;  %v2559_v29 = vor.u32 %v2558_v54, %v8254_v46  ;;  %v2604_v53 = vshrl.u32 %v8281_v47, 16  ;;  %v2586_v60 = vshll.u32 %v8278_v48, 16  ;;  %v7012_v38 = vld [vmem:[%s7151_s28 + $0x6c] sm:$0xff]   ;;  %v8316_v48 = vld [vmem:[%s7151_s28 + $0x18] sm:$0xe] }
  0xb7   : > { %6717 = vmatprep.subr.bf16.mxu1 %v7018_v49  ;;  %v2593_v37 = vrot.slane %v2591_v22, 4  ;;  %v2596_v11 = vrot.slane %v2594_v7, 5  ;;  %v8301_v55 = vrot.slane %v2600_v58, 5  ;;  %v2573_v18 = vor.u32 %v2572_v19, %v2569_v15  ;;  %v7026_v22 = vld [vmem:[%s9845_s1 + $0x140] sm:$0xff]   ;;  %v8313_v58 = vld [vmem:[%s7151_s28 + $0xc] sm:$0xe] }
  0xb8   : > { %6766 = vmatpush3.bf16.msra.mxu0 %v7019_v5  ;;  %v7027_v5 = vld [vmem:[%s9845_s1 + $0x180] sm:$0xff]   ;;  %v2583_v35 = vor.u32 %v2582_v1, %v8286_v14  ;;  %v2606_v54 = vrot.slane %v2604_v53, 4  ;;  %v2610_v47 = vshll.u32 %v8284_v51, 16  ;;  %v5768_v15 = vcombine.low %v2459_v21, %v2469_v57 }
  0xb9   : > { %6767 = vmatprep.subr.bf16.mxu0 %v7023_v52  ;;  %v2597_v7 = vor.u32 %v2596_v11, %v2593_v37  ;;  %v5769_v19 = vcombine.low %v2483_v9, %v2493_v13  ;;  %v8324_v1 = vrot.slane %v2549_v63, 4  ;;  %v8326_v11 = vrot.slane %v2559_v29, 4  ;;  %v7013_v9 = vld [vmem:[%s7151_s28 + $0x78] sm:$0xff]   ;;  %v7016_v37 = vld [vmem:[%s7151_s28 + $0x84] sm:$0xff]  }
  0xba   : > { %6688 = vmatmul.mubr.bf16.gmra.mxu0 %v5766_v50  ;;  %6718 = vmatpush3.bf16.msra.mxu1 %v7018_v49  ;;  %v8321_v49 = vld [vmem:[%s9845_s1 + $0x238] sm:$0xff]   ;;  %v2607_v50 = vor.u32 %v2606_v54, %v8301_v55  ;;  %v8335_v53 = vrot.slane %v2583_v35, 4  ;;  %v8337_v21 = vrot.slane %v2586_v60, 5  ;;  %v8343_v63 = vrot.slane %v2610_v47, 5  ;;  %v5786_v60 = vld [vmem:[%s7151_s28 + $0x30] sm:$0xe] }
  0xbb   : > { %6691 = vmatprep.mubr.bf16.mxu0 %v5767_v33  ;;  %6719 = vmatprep.subr.bf16.mxu1 %v7022_v24  ;;  %v8331_v33 = vld [vmem:[%s9845_s1 + $0x1f8] sm:$0xff]   ;;  %v8341_v13 = vrot.slane %v2597_v7, 4  ;;  %v3005_v29 = vrot.slane %v7763_v42, 5  ;;  %v9917_v35 = vld [vmem:[#allocation2_spill] sm:$0xff]  ;;  %v5802_v47 = vrot.slane %v5786_v60, 9  ;;  %v9920_v60 = vld [vmem:[#allocation3_spill] sm:$0xff] }
  0xbc   : > { %6768 = vmatpush3.bf16.msra.mxu0 %v7023_v52  ;;  %v8333_v52 = vrot.slane %v2573_v18, 4  ;;  %v9918_v7 = vld [vmem:[#allocation5_spill] sm:$0xff]  ;;  %v3026_v18 = vrot.slane %v7846_v0, 5  ;;  %v2541_v0 = vsel %vm7182_vm2, %v8238_v30, %v8219_v6  ;;  %v3040_v30 = vrot.slane %v7937_v41, 5 }
  0xbd   : > { %6640 = vmatmul.mubr.bf16.gmra.mxu1 %v7009_v2  ;;  %6769 = vmatprep.subr.bf16.mxu0 %v7027_v5  ;;  %v3023_v57 = vrot.slane %v9918_v7, 5  ;;  %v9919_v2 = vld [vmem:[#allocation4_spill] sm:$0xff] }
  0xbe   : > { %6643 = vmatprep.mubr.bf16.mxu1 %v7012_v38  ;;  %6720 = vmatpush3.bf16.msra.mxu1 %v7022_v24  ;;  %v8348_v24 = vrot.slane %v2607_v50, 4  ;;  %v3009_v38 = vrot.slane %v7780_v61, 5  ;;  %v2507_v50 = vsel %vm7182_vm2, %v8208_v12, %v8140_v36  ;;  %v3030_v54 = vrot.slane %v9919_v2, 5  ;;  %v5787_v12 = vld [vmem:[%s7151_s28 + $0x3c] sm:$0xe] }
  0xbf   : > { %6721 = vmatprep.subr.bf16.mxu1 %v7026_v22  ;;  %v8370_v7 = vsel %vm7493_vm5, %v5802_v47, %v3023_v57  ;;  %v3025_v36 = vrot.slane %v3023_v57, 4  ;;  %v5803_v2 = vrot.slane %v5787_v12, 9  ;;  %v7017_v47 = vld [vmem:[%s7151_s28 + $0x90] sm:$0xff]   ;;  %v3047_v12 = vrot.slane %v7957_v34, 5 }
  0xc0   : > { %6770 = vmatpush3.bf16.msra.mxu0 %v7027_v5  ;;  %v2517_v5 = vsel %vm7182_vm2, %v8217_v28, %v8210_v59  ;;  %v2531_v59 = vsel %vm7182_vm2, %v8236_v40, %v8183_v20  ;;  %v3032_v28 = vrot.slane %v3030_v54, 4  ;;  %v3037_v20 = vrot.slane %v7896_v39, 5 }
  0xc1   : > { %6851 = vmatprep.subr.bf16.mxu0 %v8321_v49  ;;  %v8384_v57 = vsel %vm7493_vm5, %v3025_v36, %v3026_v18  ;;  %v5771_v18 = vcombine.low %v2531_v59, %v2541_v0  ;;  %v8399_v39 = vsel %vm7493_vm5, %v5803_v2, %v3030_v54  ;;  %v2555_v36 = vsel %vm7182_vm2, %v8324_v1, %v8254_v46  ;;  %v5789_v54 = vld [vmem:[%s7151_s28 + $0x54] sm:$0xe] }
  0xc2   : > { %6692 = vmatmul.mubr.bf16.gmra.mxu0 %v5768_v15  ;;  %6722 = vmatpush3.bf16.msra.mxu1 %v7026_v22  ;;  %v3019_v15 = vrot.slane %v9920_v60, 5  ;;  %v3033_v22 = vrot.slane %v7875_v45, 5  ;;  %v5834_v40 = vcombine.low %v8370_v7, %v8384_v57  ;;  %v5788_v45 = vld [vmem:[%s7151_s28 + $0x48] sm:$0xe]  ;;  %v2565_v46 = vsel %vm7182_vm2, %v8326_v11, %v8296_v25  ;;  %v7037_v7 = vld [vmem:[%s7151_s28 + $0x54] sm:$0xff]  }
  0xc3   : > { %6695 = vmatprep.mubr.bf16.mxu0 %v5769_v19  ;;  %6803 = vmatprep.subr.bf16.mxu1 %v8331_v33  ;;  %v5770_v19 = vcombine.low %v2507_v50, %v2517_v5  ;;  %v3039_v50 = vrot.slane %v3037_v20, 4  ;;  %v7020_v5 = vld [vmem:[%s7151_s28 + $0x9c] sm:$0xff]   ;;  %v3051_v2 = vrot.slane %v7961_v31, 5  ;;  %v2579_v34 = vsel %vm7182_vm2, %v8333_v52, %v8286_v14 }
  0xc4   : > { %v8391_v6 = vsel %vm7493_vm5, %v3032_v28, %v3033_v22  ;;  %v5805_v28 = vrot.slane %v5789_v54, 9  ;;  %v5790_v22 = vld [vmem:[%s7151_s28 + $0x60] sm:$0xe]  ;;  %v3054_v25 = vrot.slane %v8009_v16, 5  ;;  %v2589_v11 = vsel %vm7182_vm2, %v8335_v53, %v8337_v21 }
  0xc5   : > { %6644 = vmatmul.mubr.bf16.gmra.mxu1 %v7013_v9  ;;  %v3044_v9 = vrot.slane %v7931_v10, 5  ;;  %v5835_v41 = vcombine.low %v8399_v39, %v8391_v6  ;;  %v8414_v59 = vsel %vm7493_vm5, %v3039_v50, %v3040_v30  ;;  %v3058_v14 = vrot.slane %v8001_v8, 5  ;;  %v6016_v6 = vld [vmem:[%s7151_s28 + $0x24] sm:$0xe] }
  0xc6   : > { %6647 = vmatprep.mubr.bf16.mxu1 %v7016_v37  ;;  %v5804_v37 = vrot.slane %v5788_v45, 9  ;;  %v3053_v45 = vrot.slane %v3051_v2, 4  ;;  %v5772_v52 = vcombine.low %v2555_v36, %v2565_v46  ;;  %v3061_v8 = vrot.slane %v8022_v62, 5  ;;  %v5792_v36 = vld [vmem:[%s7151_s28 + $0x78] sm:$0xe] }
  0xc7   : > { %v3046_v0 = vrot.slane %v3044_v9, 4  ;;  %v8441_v31 = vsel %vm7493_vm5, %v5805_v28, %v3044_v9  ;;  %v3060_v9 = vrot.slane %v3058_v14, 4  ;;  %v3065_v54 = vrot.slane %v8026_v44, 5 }
  0xc8   : > { %v8410_v10 = vsel %vm7493_vm5, %v5804_v37, %v3037_v20  ;;  %v5806_v20 = vrot.slane %v5790_v22, 9  ;;  %v8453_v53 = vsel %vm7493_vm5, %v3053_v45, %v3054_v25  ;;  %v5773_v37 = vcombine.low %v2579_v34, %v2589_v11 }
  0xc9   : > { %v8469_v46 = vsel %vm7493_vm5, %v3060_v9, %v3061_v8  ;;  %v5808_v62 = vrot.slane %v5792_v36, 9  ;;  %v3072_v28 = vrot.slane %v8069_v3, 5  ;;  %v3067_v44 = vrot.slane %v3065_v54, 4  ;;  %v7028_v8 = vld [vmem:[%s7151_s28 + $0x18] sm:$0xff]   ;;  %v9925_v36 = vld [vmem:[#allocation8_spill] sm:$0xff] }
  0xca   : > { %6696 = vmatmul.mubr.bf16.gmra.mxu0 %v5770_v19  ;;  %v8432_v19 = vsel %vm7493_vm5, %v3046_v0, %v3047_v12  ;;  %v8448_v16 = vsel %vm7493_vm5, %v5806_v20, %v3051_v2  ;;  %v3068_v0 = vrot.slane %v8033_v26, 5  ;;  %v3075_v26 = vrot.slane %v8095_v17, 5  ;;  %v5793_v20 = vld [vmem:[%s7151_s28 + $0x84] sm:$0xe] }
  0xcb   : > { %6699 = vmatprep.mubr.bf16.mxu0 %v5771_v18  ;;  %v5791_v18 = vld [vmem:[%s7151_s28 + $0x6c] sm:$0xe]  ;;  %v2603_v2 = vsel %vm7182_vm2, %v8341_v13, %v8301_v55  ;;  %v8481_v34 = vsel %vm7493_vm5, %v5808_v62, %v3065_v54  ;;  %v2613_v3 = vsel %vm7182_vm2, %v8348_v24, %v8343_v63  ;;  %v5809_v25 = vrot.slane %v5793_v20, 9  ;;  %v9923_v63 = vld [vmem:[#allocation6_spill] sm:$0xff] }
  0xcc   : > { %v5807_v21 = vrot.slane %v5791_v18, 9  ;;  %v8490_v17 = vsel %vm7493_vm5, %v3067_v44, %v3068_v0  ;;  %v3074_v11 = vrot.slane %v3072_v28, 4  ;;  %v9921_v45 = vrot.slane %v7689_v32, 5  ;;  %v5794_v18 = vld [vmem:[%s7151_s28 + $0x90] sm:$0xe]  ;;  %v7040_v62 = vld [vmem:[%s7151_s28 + $0x60] sm:$0xff]  }
  0xcd   : > { %6648 = vmatmul.mubr.bf16.gmra.mxu1 %v7017_v47  ;;  %v7021_v47 = vld [vmem:[%s7151_s28 + $0xa8] sm:$0xff]   ;;  %v9922_v55 = vrot.slane %v8313_v58, 9  ;;  %v3079_v24 = vrot.slane %v9923_v63, 5  ;;  %v8507_v32 = vsel %vm7493_vm5, %v5809_v25, %v3072_v28  ;;  %v3086_v54 = vrot.slane %v9925_v36, 5 }
  0xce   : > { %6651 = vmatprep.mubr.bf16.mxu1 %v7020_v5  ;;  %v7024_v5 = vld [vmem:[%s7151_s28 + $0xb4] sm:$0xff]   ;;  %v8465_v12 = vsel %vm7493_vm5, %v5807_v21, %v3058_v14  ;;  %v5785_v14 = vld [vmem:[%s7151_s28 + $0x24] sm:$0xe]  ;;  %v9924_v21 = vld [vmem:[#allocation7_spill] sm:$0xff]  ;;  %v8511_v58 = vsel %vm7493_vm5, %v3074_v11, %v3075_v26  ;;  %v5774_v0 = vcombine.low %v2603_v2, %v2613_v3  ;;  %v3006_v28 = vsel %vm7493_vm5, %v8291_v43, %v3005_v29 }
  0xcf   : > { %v3003_v13 = vsel %vm7493_vm5, %v9922_v55, %v9921_v45  ;;  %v3082_v9 = vrot.slane %v9924_v21, 5  ;;  %v3081_v44 = vrot.slane %v3079_v24, 4  ;;  %v7025_v45 = vld [vmem:[%s7151_s28 + $0xc0] sm:$0xff]   ;;  %v3011_v26 = vrot.slane %v3009_v38, 4  ;;  %v5795_v2 = vld [vmem:[%s7151_s28 + $0x9c] sm:$0xe] }
  0xd0   : > { %v3088_v3 = vrot.slane %v3086_v54, 4  ;;  %v5811_v11 = vrot.slane %v5795_v2, 9  ;;  %v9927_v55 = vld [vmem:[#allocation10_spill] sm:$0xff]  ;;  %v5796_v63 = vld [vmem:[%s7151_s28 + $0xa8] sm:$0xe]  ;;  %v5831_v21 = vcombine.low %v3003_v13, %v3006_v28  ;;  %v9931_v28 = vrot.slane %v8316_v48, 9 }
  0xd1   : > { %v8532_v25 = vsel %vm7493_vm5, %v3081_v44, %v3082_v9  ;;  %v3093_v42 = vrot.slane %v9927_v55, 5  ;;  %v8655_v43 = vld [vmem:[%s7151_s28 + $0x34] sm:$0xf] }
  0xd2   : > { %6700 = vmatmul.mubr.bf16.gmra.mxu0 %v5772_v52  ;;  %v8545_v9 = vsel %vm7493_vm5, %v5811_v11, %v3086_v54  ;;  %v5797_v54 = vld [vmem:[%s7151_s28 + $0xb4] sm:$0xe]  ;;  %v3927_v39 = vshll.u32 %v8655_v43, 16 }
  0xd3   : > { %6703 = vmatprep.mubr.bf16.mxu0 %v5773_v37  ;;  %v5810_v37 = vrot.slane %v5794_v18, 9  ;;  %v5801_v18 = vrot.slane %v5785_v14, 9  ;;  %v3095_v36 = vrot.slane %v3093_v42, 4  ;;  %v9928_v14 = vrot.slane %v9917_v35, 5 }
  0xd4   : > { %v5813_v55 = vrot.slane %v5797_v54, 9 }
  0xd5   : > { %6652 = vmatmul.mubr.bf16.gmra.mxu1 %v7021_v47  ;;  %v9926_v47 = vld [vmem:[#allocation9_spill] sm:$0xff]  ;;  %v3018_v44 = vrot.slane %v9928_v14, 4  ;;  %v9933_v61 = vmov %v9928_v14  ;;  %v3110_v14 = vrot.slane %v8284_v51, 5  ;;  %v5933_v51 = vld [vmem:[%s7151_s28 + $0x30] sm:$0xf] }
  0xd6   : > { %6655 = vmatprep.mubr.bf16.mxu1 %v7024_v5  ;;  %v3089_v20 = vrot.slane %v9926_v47, 5  ;;  %v8527_v5 = vsel %vm7493_vm5, %v5810_v37, %v3079_v24  ;;  %v3096_v24 = vrot.slane %v8203_v4, 5  ;;  %v5812_v37 = vrot.slane %v5796_v63, 9 }
  0xd7   : > { %v9932_v63 = vrot.slane %v7794_v23, 5  ;;  %v3017_v48 = vsel %vm7493_vm5, %v5801_v18, %v9933_v61  ;;  %v3020_v23 = vsel %vm7493_vm5, %v3018_v44, %v3019_v15  ;;  %v8625_v61 = vld [vmem:[%s7151_s28 + $0x28] sm:$0xf] }
  0xd8   : > { %v8539_v29 = vsel %vm7493_vm5, %v3088_v3, %v3089_v20  ;;  %v9929_v20 = vld [vmem:[#allocation11_spill] sm:$0xff]  ;;  %v8554_v4 = vsel %vm7493_vm5, %v5812_v37, %v3093_v42  ;;  %v8558_v13 = vsel %vm7493_vm5, %v3095_v36, %v3096_v24  ;;  %v3010_v3 = vsel %vm7493_vm5, %v9931_v28, %v3009_v38  ;;  %v5798_v37 = vld [vmem:[%s7151_s28 + $0xc0] sm:$0xe]  ;;  %v9934_v38 = vld [vmem:[#allocation13_spill] sm:$0xff] }
  0xd9   : > { %v3100_v2 = vrot.slane %v9929_v20, 5  ;;  %v3013_v24 = vsel %vm7493_vm5, %v3011_v26, %v9932_v63  ;;  %v3107_v36 = vrot.slane %v9934_v38, 5  ;;  %v5814_v18 = vrot.slane %v5798_v37, 9  ;;  %v7035_v20 = vld [vmem:[%s9845_s1 + $0x230] sm:$0xff]   ;;  %v5930_v63 = vld [vmem:[%s7151_s28 + $0x24] sm:$0xf] }
  0xda   : > { %6704 = vmatmul.mubr.bf16.gmra.mxu0 %v5774_v0  ;;  %v5832_v15 = vcombine.low %v3010_v3, %v3013_v24  ;;  %v5833_v54 = vcombine.low %v3017_v48, %v3020_v23  ;;  %v7034_v28 = vld [vmem:[%s9845_s1 + $0x1f0] sm:$0xff]   ;;  %v7033_v48 = vld [vmem:[%s7151_s28 + $0x3c] sm:$0xff]   ;;  %v3894_v37 = vshrl.u32 %v5930_v63, 16  ;;  %v7036_v38 = vld [vmem:[%s7151_s28 + $0x48] sm:$0xff]   ;;  %v3903_v23 = vshll.u32 %v8625_v61, 16 }
  0xdb   : > { %6771 = vmatprep.mubr.bf16.mxu0 %v7028_v8  ;;  %v9930_v8 = vld [vmem:[#allocation12_spill] sm:$0xff]  ;;  %v3102_v42 = vrot.slane %v3100_v2, 4  ;;  %v8589_v26 = vsel %vm7493_vm5, %v5813_v55, %v3100_v2  ;;  %v3109_v60 = vrot.slane %v3107_v36, 4  ;;  %v8602_v44 = vsel %vm7493_vm5, %v5814_v18, %v3107_v36  ;;  %v5927_v2 = vld [vmem:[%s7151_s28 + $0x18] sm:$0xf]  ;;  %v7039_v55 = vld [vmem:[%s9845_s1 + $0x228] sm:$0xff]  }
  0xdc   : > { %v3103_v0 = vrot.slane %v9930_v8, 5  ;;  %v3873_v24 = vshll.u32 %v5927_v2, 16  ;;  %v7038_v36 = vld [vmem:[%s9845_s1 + $0x1e8] sm:$0xff]   ;;  %v5929_v18 = vld [vmem:[%s7151_s28 + $0x20] sm:$0x1]  ;;  %v3896_v11 = vrot.slane %v3894_v37, 4 }
  0xdd   : > { %6656 = vmatmul.mubr.bf16.gmra.mxu1 %v7025_v45  ;;  %v7029_v45 = vld [vmem:[%s7151_s28 + $0x24] sm:$0xff]   ;;  %v8607_v8 = vsel %vm7493_vm5, %v3109_v60, %v3110_v14  ;;  %v3897_v14 = vshll.u32 %v5930_v63, 16  ;;  %v8645_v63 = vld [vmem:[%s7151_s28 + $0x2c] sm:$0x1]  ;;  %v3918_v37 = vshrl.u32 %v5933_v51, 16 }
  0xde   : > { %6723 = vmatprep.mubr.bf16.mxu1 %v5831_v21  ;;  %v7032_v21 = vld [vmem:[%s7151_s28 + $0x30] sm:$0xff]   ;;  %v8593_v35 = vsel %vm7493_vm5, %v3102_v42, %v3103_v0  ;;  %v8610_v0 = vld [vmem:[%s7151_s28 + $0x1c] sm:$0xf]  ;;  %v3870_v42 = vshrl.u32 %v5927_v2, 16 }
  0xdf   : > { %v4641_v3 = vrot.slane %v8610_v0, 5  ;;  %v3899_v47 = vrot.slane %v3897_v14, 5 }
  0xe0   : > { %v3872_v60 = vrot.slane %v3870_v42, 4  ;;  %v7042_v42 = vld [vmem:[%s9845_s1 + $0x1e0] sm:$0xff]  }
  0xe2   : > { %6772 = vmatmul.mubr.bf16.vlgmr.msra.gmra.mxu0 %v7029_v45  ;;  %v3883_v45 = vshrl.u32 %v8610_v0, 16 }
  0xe3   : > { %6852 = vmatpush3.bf16.msra.mxu0 %v8321_v49  ;;  %6775 = vmatprep.mubr.bf16.mxu0 %v7032_v21  ;;  %v3879_v49 = vshll.u32 %v8610_v0, 16  ;;  %v3907_v21 = vshrl.u32 %v8625_v61, 16 }
  0xe4   : > { %6853 = vmatprep.subr.bf16.mxu0 %v7035_v20 }
  0xe5   : > { %6724 = vmatmul.mubr.bf16.vlgmr.msra.gmra.mxu1 %v5832_v15  ;;  %v6015_v15 = vld [vmem:[%s7151_s28 + $0x18] sm:$0xe]  ;;  %v8640_v2 = vrot.slane %v3879_v49, 5  ;;  %v3889_v49 = vshll.u32 %v5929_v18, 16  ;;  %v3909_v0 = vrot.slane %v3907_v21, 4 }
  0xe6   : > { %6804 = vmatpush3.bf16.msra.mxu1 %v8331_v33  ;;  %6727 = vmatprep.mubr.bf16.mxu1 %v5833_v54  ;;  %v7043_v33 = vld [vmem:[%s9845_s1 + $0x220] sm:$0xff]   ;;  %v3885_v54 = vrot.slane %v3883_v45, 4  ;;  %v8652_v45 = vrot.slane %v3903_v23, 5  ;;  %v7047_v23 = vld [vmem:[%s9845_s1 + $0x218] sm:$0xff]  }
  0xe7   : > { %6805 = vmatprep.subr.bf16.mxu1 %v7034_v28  ;;  %6854 = vmatpush3.bf16.msra.mxu0 %v7035_v20  ;;  %v3875_v20 = vrot.slane %v3873_v24, 5 }
  0xe8   : > { %6855 = vmatprep.subr.bf16.mxu0 %v7039_v55  ;;  %v3886_v21 = vor.u32 %v3885_v54, %v8640_v2  ;;  %v3910_v54 = vor.u32 %v3909_v0, %v8652_v45 }
  0xea   : > { %6776 = vmatmul.mubr.bf16.gmra.mxu0 %v7033_v48  ;;  %6806 = vmatpush3.bf16.msra.mxu1 %v7034_v28  ;;  %v6031_v48 = vrot.slane %v6015_v15, 9  ;;  %v4644_v28 = vrot.slane %v5929_v18, 5  ;;  %v4643_v18 = vrot.slane %v4641_v3, 4  ;;  %v3913_v15 = vshll.u32 %v8645_v63, 16 }
  0xeb   : > { %6779 = vmatprep.mubr.bf16.mxu0 %v7036_v38  ;;  %6807 = vmatprep.subr.bf16.mxu1 %v7038_v36  ;;  %v3921_v38 = vshll.u32 %v5933_v51, 16  ;;  %v4648_v51 = vrot.slane %v8625_v61, 5  ;;  %v3931_v61 = vshrl.u32 %v8655_v43, 16 }
  0xec   : > { %6856 = vmatpush3.bf16.msra.mxu0 %v7039_v55  ;;  %v3876_v55 = vor.u32 %v3875_v20, %v3872_v60  ;;  %v7046_v60 = vld [vmem:[%s9845_s1 + $0x1d8] sm:$0xff]   ;;  %v8678_v20 = vrot.slane %v3889_v49, 5  ;;  %v7051_v49 = vld [vmem:[%s9845_s1 + $0x210] sm:$0xff]  }
  0xed   : > { %v8650_v24 = vpop.f32.mrf.mxu0  ;;  %6728 = vmatmul.mubr.bf16.gmra.mxu1 %v5834_v40  ;;  %6857 = vmatprep.subr.bf16.mxu0 %v7043_v33  ;;  %v8660_v14 = vpop.f32.mrf.mxu1  ;;  %v3900_v40 = vor.u32 %v3899_v47, %v3896_v11  ;;  %v3920_v47 = vrot.slane %v3918_v37, 4  ;;  %v3923_v11 = vrot.slane %v3921_v38, 5  ;;  %v8705_v37 = vld [vmem:[%s7151_s28 + $0x40] sm:$0xf]  ;;  %v4650_v50 = vrot.slane %v4648_v51, 4 }
  0xee   : > { %9935 = vst [vmem:[#allocation2_spill] sm:$0xff] %v8660_v14  ;;  %6731 = vmatprep.mubr.bf16.mxu1 %v5835_v41  ;;  %6808 = vmatpush3.bf16.msra.mxu1 %v7038_v36  ;;  %v8685_v41 = vsel %vm7493_vm5, %v6031_v48, %v4641_v3  ;;  %v5936_v36 = vld [vmem:[%s7151_s28 + $0x3c] sm:$0xf]  ;;  %v8694_v0 = vrot.slane %v3876_v55, 4  ;;  %v8700_v3 = vsel %vm7493_vm5, %v4643_v18, %v4644_v28  ;;  %v8702_v48 = vrot.slane %v3913_v15, 5  ;;  %v7050_v55 = vld [vmem:[%s9845_s1 + $0x1d0] sm:$0xff]  }
  0xef   : > { %v8671_v57 = vpop.f32.mrf.mxu0  ;;  %6809 = vmatprep.subr.bf16.mxu1 %v7042_v42  ;;  %v8689_v52 = vpop.f32.mrf.mxu1  ;;  %v8712_v22 = vrot.slane %v3900_v40, 4  ;;  %v4651_v28 = vrot.slane %v8645_v63, 5  ;;  %v3911_v18 = vrot.slane %v3910_v54, 4  ;;  %v8716_v15 = vld [vmem:[%s7151_s28 + $0x38] sm:$0x1]  ;;  %v3945_v30 = vshll.u32 %v5936_v36, 16 }
  0xf0   : > { %6858 = vmatpush3.bf16.msra.mxu0 %v7043_v33  ;;  %9936 = vst [vmem:[#allocation5_spill] sm:$0xff] %v8689_v52  ;;  %v8696_v33 = vrot.slane %v3886_v21, 4  ;;  %v6032_v21 = vrot.slane %v6016_v6, 9  ;;  %v3924_v1 = vor.u32 %v3923_v11, %v3920_v47  ;;  %v8720_v52 = vrot.slane %v3931_v61, 4  ;;  %v6017_v40 = vld [vmem:[%s7151_s28 + $0x30] sm:$0xe] }
  0xf1   : > { %6859 = vmatprep.subr.bf16.mxu0 %v7047_v23  ;;  %v8707_v38 = vpop.f32.mrf.mxu0  ;;  %v3951_v6 = vshll.u32 %v8705_v37, 16  ;;  %v3955_v63 = vshrl.u32 %v8705_v37, 16  ;;  %v8728_v54 = vpop.f32.mrf.mxu1  ;;  %v9939_v11 = vcombine.low %v8441_v31, %v8432_v19  ;;  %v7041_v61 = vld [vmem:[%s7151_s28 + $0x6c] sm:$0xff]   ;;  %v8761_v19 = vsel %vm7493_vm5, %v4650_v50, %v4651_v28  ;;  %v8779_v28 = vld [vmem:[%s7151_s28 + $0x44] sm:$0x1] }
  0xf2   : > { %6780 = vmatmul.mubr.bf16.gmra.mxu0 %v7037_v7  ;;  %6810 = vmatpush3.bf16.msra.mxu1 %v7042_v42  ;;  %v8718_v7 = vrot.slane %v3927_v39, 5  ;;  %v3942_v42 = vshrl.u32 %v5936_v36, 16  ;;  %9938 = vst [vmem:[#allocation4_spill] sm:$0xff] %v8728_v54  ;;  %v3882_v39 = vsel %vm7182_vm2, %v8694_v0, %v8640_v2  ;;  %v3892_v47 = vsel %vm7182_vm2, %v8696_v33, %v8678_v20  ;;  %v7044_v36 = vld [vmem:[%s7151_s28 + $0x78] sm:$0xff]   ;;  %v8772_v33 = vld [vmem:[%s7151_s28 + $0x4c] sm:$0xf] }
  0xf3   : > { %6783 = vmatprep.mubr.bf16.mxu0 %v7040_v62  ;;  %6811 = vmatprep.subr.bf16.mxu1 %v7046_v60  ;;  %v9937_v62 = vcombine.low %v8410_v10, %v8414_v59  ;;  %v4655_v59 = vrot.slane %v8655_v43, 5  ;;  %v3906_v2 = vsel %vm7182_vm2, %v8712_v22, %v8652_v45  ;;  %v8757_v20 = vsel %vm7493_vm5, %v6032_v21, %v4648_v51  ;;  %v5939_v43 = vld [vmem:[%s7151_s28 + $0x48] sm:$0xf]  ;;  %v8783_v54 = vpop.f32.mrf.mxu1  ;;  %v6018_v14 = vld [vmem:[%s7151_s28 + $0x3c] sm:$0xe] }
  0xf4   : > { %6860 = vmatpush3.bf16.msra.mxu0 %v7047_v23  ;;  %v7055_v23 = vld [vmem:[%s9845_s1 + $0x208] sm:$0xff]   ;;  %v3937_v31 = vshll.u32 %v8716_v15, 16  ;;  %v3916_v22 = vsel %vm7182_vm2, %v3911_v18, %v8702_v48  ;;  %v6033_v45 = vrot.slane %v6017_v40, 9  ;;  %v3944_v0 = vrot.slane %v3942_v42, 4  ;;  %9941 = vst [vmem:[#allocation6_spill] sm:$0xff] %v8783_v54  ;;  %v7058_v42 = vld [vmem:[%s9845_s1 + $0x1c0] sm:$0xff]  }
  0xf5   : > { %6732 = vmatmul.mubr.bf16.gmra.mxu1 %v9937_v62  ;;  %6861 = vmatprep.subr.bf16.mxu0 %v7051_v49  ;;  %v8749_v62 = vpop.f32.mrf.mxu0  ;;  %v3947_v51 = vrot.slane %v3945_v30, 5  ;;  %v8774_v50 = vrot.slane %v3924_v1, 4  ;;  %v3934_v21 = vor.u32 %v8720_v52, %v8718_v7  ;;  %v3957_v10 = vrot.slane %v3955_v63, 4  ;;  %v7059_v30 = vld [vmem:[%s9845_s1 + $0x200] sm:$0xff]  }
  0xf6   : > { %6735 = vmatprep.mubr.bf16.mxu1 %v9939_v11  ;;  %6812 = vmatpush3.bf16.msra.mxu1 %v7046_v60  ;;  %9940 = vst [vmem:[#allocation3_spill] sm:$0xff] %v8749_v62  ;;  %v7054_v60 = vld [vmem:[%s9845_s1 + $0x1c8] sm:$0xff]   ;;  %v8781_v11 = vrot.slane %v3951_v6, 5  ;;  %v4657_v48 = vrot.slane %v4655_v59, 4  ;;  %v3966_v1 = vshrl.u32 %v5939_v43, 16  ;;  %v3969_v18 = vshll.u32 %v5939_v43, 16 }
  0xf7   : > { %6813 = vmatprep.subr.bf16.mxu1 %v7050_v55  ;;  %v8794_v40 = vcombine.low %v3882_v39, %v3892_v47  ;;  %v3979_v63 = vshrl.u32 %v8772_v33, 16  ;;  %v8802_v43 = vrot.slane %v3937_v31, 5  ;;  %v3961_v54 = vshll.u32 %v8779_v28, 16  ;;  %v5942_v39 = vld [vmem:[%s7151_s28 + $0x54] sm:$0xf]  ;;  %v7045_v6 = vld [vmem:[%s7151_s28 + $0x84] sm:$0xff]  }
  0xf8   : > { %6862 = vmatpush3.bf16.msra.mxu0 %v7051_v49  ;;  %v4658_v49 = vrot.slane %v8716_v15, 5  ;;  %v8789_v52 = vpop.f32.mrf.mxu0  ;;  %v3975_v15 = vshll.u32 %v8772_v33, 16  ;;  %v4662_v31 = vrot.slane %v8705_v37, 5  ;;  %v9945_v37 = vcombine.low %v8465_v12, %v8469_v46  ;;  %v7048_v47 = vld [vmem:[%s7151_s28 + $0x90] sm:$0xff]  }
  0xf9   : > { %6863 = vmatprep.subr.bf16.mxu0 %v7055_v23  ;;  %9942 = vst [vmem:[#allocation7_spill] sm:$0xff] %v8789_v52 }
  0xfa   : > { %6784 = vmatmul.mubr.bf16.gmra.mxu0 %v7041_v61  ;;  %6814 = vmatpush3.bf16.msra.mxu1 %v7050_v55  ;;  %v8800_v61 = vcombine.low %v3906_v2, %v3916_v22  ;;  %v3948_v55 = vor.u32 %v3947_v51, %v3944_v0  ;;  %v3958_v2 = vor.u32 %v3957_v10, %v8781_v11  ;;  %v8818_v22 = vld [vmem:[%s7151_s28 + $0x58] sm:$0xf]  ;;  %v8825_v51 = vrot.slane %v3934_v21, 4 }
  0xfb   : > { %6787 = vmatprep.mubr.bf16.mxu0 %v7044_v36  ;;  %6815 = vmatprep.subr.bf16.mxu1 %v7054_v60  ;;  %v8813_v36 = vsel %vm7493_vm5, %v6033_v45, %v4655_v59  ;;  %v9943_v0 = vcombine.low %v8448_v16, %v8453_v53  ;;  %v8829_v59 = vsel %vm7493_vm5, %v4657_v48, %v4658_v49  ;;  %v3968_v45 = vrot.slane %v3966_v1, 4  ;;  %v8836_v16 = vpop.f32.mrf.mxu0  ;;  %v5941_v1 = vld [vmem:[%s7151_s28 + $0x50] sm:$0x1] }
  0xfc   : > { %6864 = vmatpush3.bf16.msra.mxu0 %v7055_v23  ;;  %v8823_v23 = vpop.f32.mrf.mxu1  ;;  %v3971_v10 = vrot.slane %v3969_v18, 5  ;;  %9946 = vst [vmem:[#allocation9_spill] sm:$0xff] %v8836_v16  ;;  %v6034_v53 = vrot.slane %v6018_v14, 9  ;;  %v3981_v21 = vrot.slane %v3979_v63, 4  ;;  %v3949_v48 = vrot.slane %v3948_v55, 4 }
  0xfd   : > { %6736 = vmatmul.mubr.bf16.gmra.mxu1 %v9943_v0  ;;  %9944 = vst [vmem:[#allocation8_spill] sm:$0xff] %v8823_v23  ;;  %6865 = vmatprep.subr.bf16.mxu0 %v7059_v30  ;;  %v8838_v0 = vrot.slane %v3975_v15, 5  ;;  %v3990_v23 = vshrl.u32 %v5942_v39, 16  ;;  %v3963_v49 = vrot.slane %v3961_v54, 5  ;;  %v3993_v18 = vshll.u32 %v5942_v39, 16  ;;  %v8854_v39 = vpop.f32.mrf.mxu0 }
  0xfe   : > { %6739 = vmatprep.mubr.bf16.mxu1 %v9945_v37  ;;  %6816 = vmatpush3.bf16.msra.mxu1 %v7054_v60  ;;  %v3999_v52 = vshll.u32 %v8818_v22, 16  ;;  %v3959_v12 = vrot.slane %v3958_v2, 4  ;;  %v4664_v46 = vrot.slane %v4662_v31, 4  ;;  %v4665_v37 = vrot.slane %v8779_v28, 5  ;;  %v8844_v60 = vpop.f32.mrf.mxu1  ;;  %v5945_v55 = vld [vmem:[%s7151_s28 + $0x60] sm:$0xf] }
  0xff   : > { %6817 = vmatprep.subr.bf16.mxu1 %v7058_v42  ;;  %v4003_v14 = vshrl.u32 %v8818_v22, 16  ;;  %9947 = vst [vmem:[#allocation10_spill] sm:$0xff] %v8844_v60  ;;  %v3940_v15 = vsel %vm7182_vm2, %v8825_v51, %v8802_v43  ;;  %v3972_v63 = vor.u32 %v3971_v10, %v3968_v45  ;;  %v3982_v28 = vor.u32 %v3981_v21, %v8838_v0  ;;  %v6019_v60 = vld [vmem:[%s7151_s28 + $0x48] sm:$0xe] }
 0x100   : > { %6866 = vmatpush3.bf16.msra.mxu0 %v7059_v30  ;;  %v4669_v30 = vrot.slane %v8772_v33, 5  ;;  %v3985_v2 = vshll.u32 %v5941_v1, 16  ;;  %v3992_v16 = vrot.slane %v3990_v23, 4  ;;  %v3995_v62 = vrot.slane %v3993_v18, 5  ;;  %v8879_v10 = vpop.f32.mrf.mxu1 }
 0x101   : > { %v3954_v43 = vsel %vm7182_vm2, %v3949_v48, %v8781_v11  ;;  %v8863_v33 = vsel %vm7493_vm5, %v6034_v53, %v4662_v31  ;;  %v3964_v51 = vsel %vm7182_vm2, %v3959_v12, %v3963_v49  ;;  %v8871_v23 = vsel %vm7493_vm5, %v4664_v46, %v4665_v37  ;;  %9949 = vst [vmem:[#allocation11_spill] sm:$0xff] %v8879_v10  ;;  %v8882_v49 = vld [vmem:[%s7151_s28 + $0x64] sm:$0xf]  ;;  %v7049_v12 = vld [vmem:[%s7151_s28 + $0x9c] sm:$0xff]   ;;  %v8888_v46 = vpop.f32.mrf.mxu0 }
 0x102   : > { %6788 = vmatmul.mubr.bf16.gmra.mxu0 %v7045_v6  ;;  %6818 = vmatpush3.bf16.msra.mxu1 %v7058_v42  ;;  %v8865_v6 = vrot.slane %v3999_v52, 5  ;;  %v4005_v42 = vrot.slane %v4003_v14, 4  ;;  %v4014_v45 = vshrl.u32 %v5945_v55, 16  ;;  %v4017_v11 = vshll.u32 %v5945_v55, 16  ;;  %v7052_v55 = vld [vmem:[%s7151_s28 + $0xa8] sm:$0xff]  }
 0x103   : > { %6791 = vmatprep.mubr.bf16.mxu0 %v7048_v47  ;;  %v8874_v47 = vld [vmem:[%s7151_s28 + $0x5c] sm:$0x1]  ;;  %v9948_v31 = vcombine.low %v8481_v34, %v8490_v17  ;;  %v3973_v52 = vrot.slane %v3972_v63, 4  ;;  %v6035_v53 = vrot.slane %v6019_v60, 9  ;;  %v4671_v21 = vrot.slane %v4669_v30, 4 }
 0x104   : > { %v4672_v48 = vrot.slane %v5941_v1, 5  ;;  %v9950_v18 = vcombine.low %v8507_v32, %v8511_v58  ;;  %v3983_v37 = vrot.slane %v3982_v28, 4  ;;  %v3987_v14 = vrot.slane %v3985_v2, 5  ;;  %v6020_v63 = vld [vmem:[%s7151_s28 + $0x54] sm:$0xe]  ;;  %v8906_v28 = vpop.f32.mrf.mxu1 }
 0x105   : > { %6740 = vmatmul.mubr.bf16.gmra.mxu1 %v9948_v31  ;;  %v3996_v34 = vor.u32 %v3995_v62, %v3992_v16  ;;  %v4676_v17 = vrot.slane %v8818_v22, 5  ;;  %v4006_v60 = vor.u32 %v4005_v42, %v8865_v6  ;;  %v4009_v1 = vshll.u32 %v8874_v47, 16  ;;  %9952 = vst [vmem:[#allocation12_spill] sm:$0xff] %v8906_v28  ;;  %v6021_v62 = vld [vmem:[%s7151_s28 + $0x60] sm:$0xe] }
 0x106   : > { %6743 = vmatprep.mubr.bf16.mxu1 %v9950_v18  ;;  %v4016_v31 = vrot.slane %v4014_v45, 4  ;;  %v4019_v54 = vrot.slane %v4017_v11, 5  ;;  %v9951_v32 = vsel %vm7182_vm2, %v8774_v50, %v8718_v7  ;;  %v4023_v22 = vshll.u32 %v8882_v49, 16 }
 0x107   : > { %v8900_v58 = vcombine.low %v9951_v32, %v3940_v15  ;;  %v4027_v16 = vshrl.u32 %v8882_v49, 16  ;;  %v8908_v2 = vcombine.low %v3954_v43, %v3964_v51  ;;  %v3978_v42 = vsel %vm7182_vm2, %v3973_v52, %v8838_v0  ;;  %v5948_v15 = vld [vmem:[%s7151_s28 + $0x6c] sm:$0xf]  ;;  %v8926_v32 = vld [vmem:[%s7151_s28 + $0x70] sm:$0xf] }
 0x108   : > { %v8915_v7 = vsel %vm7493_vm5, %v6035_v53, %v4669_v30  ;;  %v8919_v50 = vsel %vm7493_vm5, %v4671_v21, %v4672_v48  ;;  %v8922_v45 = vpop.f32.mrf.mxu0  ;;  %v3997_v43 = vrot.slane %v3996_v34, 4  ;;  %v6036_v51 = vrot.slane %v6020_v63, 9  ;;  %v5947_v53 = vld [vmem:[%s7151_s28 + $0x68] sm:$0x1] }
 0x109   : > { %9953 = vst [vmem:[#allocation13_spill] sm:$0xff] %v8922_v45  ;;  %v4678_v11 = vrot.slane %v4676_v17, 4  ;;  %v4679_v18 = vrot.slane %v8874_v47, 5  ;;  %v3988_v0 = vsel %vm7182_vm2, %v3983_v37, %v3987_v14  ;;  %v4007_v30 = vrot.slane %v4006_v60, 4  ;;  %v6023_v45 = vld [vmem:[%s7151_s28 + $0x78] sm:$0xe] }
 0x10a   : > { %6792 = vmatmul.mubr.bf16.gmra.mxu0 %v7049_v12  ;;  %v4011_v52 = vrot.slane %v4009_v1, 5  ;;  %v4020_v21 = vor.u32 %v4019_v54, %v4016_v31  ;;  %v8931_v48 = vrot.slane %v4023_v22, 5  ;;  %v4029_v12 = vrot.slane %v4027_v16, 4  ;;  %v7053_v31 = vld [vmem:[%s7151_s28 + $0xb4] sm:$0xff]  }
 0x10b   : > { %6795 = vmatprep.mubr.bf16.mxu0 %v7052_v55  ;;  %v4038_v34 = vshrl.u32 %v5948_v15, 16  ;;  %v4041_v63 = vshll.u32 %v5948_v15, 16  ;;  %v9954_v47 = vcombine.low %v8527_v5, %v8532_v25  ;;  %v4683_v14 = vrot.slane %v8882_v49, 5  ;;  %v8948_v5 = vpop.f32.mrf.mxu0 }
 0x10c   : > { %v4047_v54 = vshll.u32 %v8926_v32, 16  ;;  %v4051_v60 = vshrl.u32 %v8926_v32, 16  ;;  %v9956_v1 = vcombine.low %v8545_v9, %v8539_v29  ;;  %9957 = vst [vmem:[#allocation15_spill] sm:$0xff] %v8948_v5  ;;  %v8950_v25 = vcombine.low %v3978_v42, %v3988_v0  ;;  %v5951_v29 = vld [vmem:[%s7151_s28 + $0x78] sm:$0xf]  ;;  %v7056_v9 = vld [vmem:[%s7151_s28 + $0xc0] sm:$0xff]  }
 0x10d   : > { %6744 = vmatmul.mubr.bf16.gmra.mxu1 %v9954_v47  ;;  %v8937_v55 = vpop.f32.mrf.mxu1  ;;  %v4002_v22 = vsel %vm7182_vm2, %v3997_v43, %v8865_v6  ;;  %v8957_v49 = vsel %vm7493_vm5, %v6036_v51, %v4676_v17  ;;  %v8961_v16 = vsel %vm7493_vm5, %v4678_v11, %v4679_v18  ;;  %v4012_v15 = vsel %vm7182_vm2, %v4007_v30, %v4011_v52  ;;  %v8974_v43 = vld [vmem:[%s7151_s28 + $0x74] sm:$0x1]  ;;  %v9031_v5 = vld [vmem:[%s7151_s28 + $0x8c] sm:$0x1] }
 0x10e   : > { %9955 = vst [vmem:[#allocation14_spill] sm:$0xff] %v8937_v55  ;;  %6747 = vmatprep.mubr.bf16.mxu1 %v9956_v1  ;;  %v8967_v47 = vrot.slane %v4020_v21, 4  ;;  %v4033_v42 = vshll.u32 %v5947_v53, 16  ;;  %v6037_v0 = vrot.slane %v6021_v62, 9  ;;  %v8970_v1 = vld [vmem:[%s7151_s28 + $0x7c] sm:$0xf]  ;;  %v4030_v6 = vor.u32 %v4029_v12, %v8931_v48  ;;  %v8980_v21 = vpop.f32.mrf.mxu0 }
 0x10f   : > { %v4686_v17 = vrot.slane %v5947_v53, 5  ;;  %v4040_v51 = vrot.slane %v4038_v34, 4  ;;  %v4043_v11 = vrot.slane %v4041_v63, 5  ;;  %v8976_v18 = vpop.f32.mrf.mxu1  ;;  %v4685_v37 = vrot.slane %v4683_v14, 4  ;;  %9959 = vst [vmem:[#allocation17_spill] sm:$0xff] %v8980_v21 }
 0x110   : > { %9958 = vst [vmem:[#allocation16_spill] sm:$0xff] %v8976_v18  ;;  %v8978_v55 = vrot.slane %v4047_v54, 5  ;;  %v4053_v30 = vrot.slane %v4051_v60, 4  ;;  %v4062_v52 = vshrl.u32 %v5951_v29, 16  ;;  %v6022_v53 = vld [vmem:[%s7151_s28 + $0x6c] sm:$0xe]  ;;  %v8987_v18 = vcombine.low %v4002_v22, %v4012_v15 }
 0x111   : > { %v4065_v12 = vshll.u32 %v5951_v29, 16  ;;  %v4071_v34 = vshll.u32 %v8970_v1, 16  ;;  %v4075_v63 = vshrl.u32 %v8970_v1, 16  ;;  %v8989_v54 = vrot.slane %v4033_v42, 5  ;;  %v5954_v62 = vld [vmem:[%s7151_s28 + $0x84] sm:$0xf]  ;;  %v9010_v42 = vpop.f32.mrf.mxu1 }
 0x112   : > { %6796 = vmatmul.mubr.bf16.gmra.mxu0 %v7053_v31  ;;  %9960 = vst [vmem:[#allocation18_spill] sm:$0xff] %v8987_v18  ;;  %v8993_v60 = vsel %vm7493_vm5, %v6037_v0, %v4683_v14  ;;  %v4057_v31 = vshll.u32 %v8974_v43, 16  ;;  %v9001_v28 = vrot.slane %v4030_v6, 4  ;;  %v4690_v22 = vrot.slane %v8926_v32, 5  ;;  %v9005_v15 = vld [vmem:[%s7151_s28 + $0x88] sm:$0xf] }
 0x113   : > { %6799 = vmatprep.mubr.bf16.mxu0 %v7056_v9  ;;  %v4044_v9 = vor.u32 %v4043_v11, %v4040_v51  ;;  %v9961_v14 = vcombine.low %v8554_v4, %v8558_v13  ;;  %9962 = vst [vmem:[#allocation19_spill] sm:$0xff] %v9010_v42  ;;  %v7057_v0 = vld [vmem:[%s7151_s28 + $0xcc] sm:$0xff]   ;;  %v9015_v10 = vsel %vm7493_vm5, %v4685_v37, %v4686_v17  ;;  %v6038_v6 = vrot.slane %v6022_v53, 9  ;;  %v9018_v11 = vpop.f32.mrf.mxu0  ;;  %v9024_v4 = vld [vmem:[%s7151_s28 + $0x80] sm:$0x1] }
 0x114   : > { %v4054_v29 = vor.u32 %v4053_v30, %v8978_v55  ;;  %v4064_v51 = vrot.slane %v4062_v52, 4  ;;  %9963 = vst [vmem:[#allocation20_spill] sm:$0xff] %v9018_v11  ;;  %v9964_v32 = vcombine.low %v8589_v26, %v8593_v35  ;;  %v4067_v13 = vrot.slane %v4065_v12, 5 }
 0x115   : > { %6748 = vmatmul.mubr.bf16.gmra.mxu1 %v9961_v14  ;;  %v9026_v14 = vrot.slane %v4071_v34, 5  ;;  %v4077_v42 = vrot.slane %v4075_v63, 4  ;;  %v4086_v21 = vshrl.u32 %v5954_v62, 16  ;;  %v4059_v37 = vrot.slane %v4057_v31, 5 }
 0x116   : > { %6751 = vmatprep.mubr.bf16.mxu1 %v9964_v32  ;;  %v4693_v17 = vrot.slane %v8974_v43, 5  ;;  %v4089_v30 = vshll.u32 %v5954_v62, 16  ;;  %v4095_v52 = vshll.u32 %v9005_v15, 16  ;;  %v4045_v53 = vrot.slane %v4044_v9, 4  ;;  %v9034_v32 = vpop.f32.mrf.mxu1 }
 0x117   : > { %v4692_v11 = vrot.slane %v4690_v22, 4  ;;  %v4088_v26 = vrot.slane %v4086_v21, 4  ;;  %v4099_v35 = vshrl.u32 %v9005_v15, 16  ;;  %v4055_v12 = vrot.slane %v4054_v29, 4 }
 0x118   : > { %v4081_v34 = vshll.u32 %v9024_v4, 16  ;;  %v4091_v63 = vrot.slane %v4089_v30, 5  ;;  %v9037_v31 = vrot.slane %v4095_v52, 5  ;;  %v4068_v62 = vor.u32 %v4067_v13, %v4064_v51  ;;  %v6024_v52 = vld [vmem:[%s7151_s28 + $0x84] sm:$0xe] }
 0x119   : > { %v9039_v43 = vpop.f32.mrf.mxu0  ;;  %v4078_v9 = vor.u32 %v4077_v42, %v9026_v14  ;;  %v4697_v21 = vrot.slane %v8970_v1, 5  ;;  %v4101_v18 = vrot.slane %v4099_v35, 4  ;;  %v9965_v29 = vcombine.low %v8685_v41, %v8700_v3 }
 0x11a   : > { %6800 = vmatmul.mubr.bf16.gmra.mxu0 %v7057_v0  ;;  %v4036_v30 = vsel %vm7182_vm2, %v9001_v28, %v8989_v54  ;;  %v9055_v51 = vsel %vm7493_vm5, %v6038_v6, %v4690_v22  ;;  %v4105_v42 = vshll.u32 %v9031_v5, 16  ;;  %v4050_v41 = vsel %vm7182_vm2, %v4045_v53, %v8978_v55  ;;  %v5957_v54 = vld [vmem:[%s7151_s28 + $0x90] sm:$0xf] }
 0x11b   : > { %6867 = vmatprep.mubr.bf16.mxu0 %v9965_v29  ;;  %v9058_v1 = vpop.f32.mrf.mxu0  ;;  %v4092_v3 = vor.u32 %v4091_v63, %v4088_v26  ;;  %v4102_v13 = vor.u32 %v4101_v18, %v9037_v31  ;;  %v4704_v28 = vrot.slane %v9005_v15, 5  ;;  %v9967_v22 = vcombine.low %v8602_v44, %v8607_v8 }
 0x11c   : > { %v4060_v6 = vsel %vm7182_vm2, %v4055_v12, %v4059_v37  ;;  %v9076_v55 = vsel %vm7493_vm5, %v4692_v11, %v4693_v17  ;;  %v4083_v53 = vrot.slane %v4081_v34, 5  ;;  %v6039_v18 = vrot.slane %v6023_v45, 9  ;;  %v9085_v12 = vld [vmem:[%s7151_s28 + $0x94] sm:$0xf] }
 0x11d   : > { %v9067_v35 = vpop.f32.mrf.mxu1  ;;  %6752 = vmatmul.mubr.bf16.gmra.mxu1 %v9967_v22  ;;  %v9078_v26 = vpop.f32.mrf.mxu0  ;;  %v4069_v15 = vrot.slane %v4068_v62, 4  ;;  %v4079_v63 = vrot.slane %v4078_v9, 4  ;;  %v4699_v29 = vrot.slane %v4697_v21, 4  ;;  %v4700_v0 = vrot.slane %v9024_v4, 5 }
 0x11e   : > { %9966 = vst [vmem:[#allocation21_spill] sm:$0xff] %v9067_v35  ;;  %6819 = vmatprep.mubr.bf16.mxu1 %v8794_v40  ;;  %v4107_v8 = vrot.slane %v4105_v42, 5  ;;  %v6040_v37 = vrot.slane %v6024_v52, 9  ;;  %v4110_v11 = vshrl.u32 %v5957_v54, 16  ;;  %v4113_v17 = vshll.u32 %v5957_v54, 16 }
 0x11f   : > { %v9082_v44 = vpop.f32.mrf.mxu1  ;;  %v9087_v34 = vpop.f32.mrf.mxu0  ;;  %v4093_v45 = vrot.slane %v4092_v3, 4  ;;  %v4103_v22 = vrot.slane %v4102_v13, 4  ;;  %v4706_v40 = vrot.slane %v4704_v28, 4  ;;  %v4707_v62 = vrot.slane %v9031_v5, 5  ;;  %v9108_v54 = vld [vmem:[%s7151_s28 + $0x98] sm:$0x1] }
 0x120   : > { %9968 = vst [vmem:[#allocation22_spill] sm:$0xff] %v9082_v44  ;;  %v9970_v4 = vsel %vm7182_vm2, %v8967_v47, %v8931_v48  ;;  %v9099_v52 = vcombine.low %v4050_v41, %v4060_v6  ;;  %v9105_v13 = vsel %vm7493_vm5, %v6039_v18, %v4697_v21  ;;  %v4074_v48 = vsel %vm7182_vm2, %v4069_v15, %v9026_v14  ;;  %v5960_v41 = vld [vmem:[%s7151_s28 + $0x9c] sm:$0xf]  ;;  %v9125_v6 = vld [vmem:[%s7151_s28 + $0xa0] sm:$0xf] }
 0x121   : > { %v9090_v9 = vpop.f32.mrf.mxu1  ;;  %v9097_v42 = vcombine.low %v9970_v4, %v4036_v30  ;;  %v6581_v5 = vpop.f32.mrf.mxu0  ;;  %v4084_v47 = vsel %vm7182_vm2, %v4079_v63, %v4083_v53  ;;  %v9120_v30 = vsel %vm7493_vm5, %v4699_v29, %v4700_v0  ;;  %v4119_v21 = vshll.u32 %v9085_v12, 16  ;;  %v9212_v35 = vld [vmem:[%s7151_s28 + $0xb0] sm:$0x1] }
 0x122   : > { %9969 = vst [vmem:[#allocation23_spill] sm:$0xff] %v9090_v9  ;;  %v9971_v9 = vcombine.low %v8757_v20, %v8761_v19  ;;  %v9973_v20 = vcombine.low %v8813_v36, %v8829_v59  ;;  %v9134_v19 = vsel %vm7493_vm5, %v6040_v37, %v4704_v28  ;;  %v4112_v14 = vrot.slane %v4110_v11, 4  ;;  %v9149_v37 = vld [vmem:[%s7151_s28 + $0x90] sm:$0xe] }
 0x123   : > { %v9127_v18 = vpop.f32.mrf.mxu1  ;;  %v4115_v53 = vrot.slane %v4113_v17, 5  ;;  %v4123_v0 = vshrl.u32 %v9085_v12, 16  ;;  %v1636_v15 = vpop.f32.mrf.mxu0  ;;  %v4098_v63 = vsel %vm7182_vm2, %v4093_v45, %v9037_v31  ;;  %v4108_v29 = vsel %vm7182_vm2, %v4103_v22, %v4107_v8 }
 0x124   : > { %6868 = vmatmul.mubr.bf16.vlgmr.msra.gmra.mxu0 %v9971_v9  ;;  %9972 = vst [vmem:[#allocation24_spill] sm:$0xff] %v9127_v18  ;;  %v9144_v36 = vsel %vm7493_vm5, %v4706_v40, %v4707_v62  ;;  %v4129_v59 = vshll.u32 %v9108_v54, 16  ;;  %v4134_v11 = vshrl.u32 %v5960_v41, 16  ;;  %v4137_v17 = vshll.u32 %v5960_v41, 16 }
 0x125   : > { %6871 = vmatprep.mubr.bf16.mxu0 %v9973_v20  ;;  %v6533_v28 = vpop.f32.mrf.mxu1  ;;  %6820 = vmatmul.mubr.bf16.vlgmr.msra.gmra.mxu1 %v8800_v61  ;;  %v4143_v9 = vshll.u32 %v9125_v6, 16  ;;  %v4147_v31 = vshrl.u32 %v9125_v6, 16  ;;  %v6582_v45 = vpop.f32.mrf.mxu0  ;;  %v9155_v22 = vcombine.low %v4074_v48, %v4084_v47  ;;  %v9159_v40 = vrot.slane %v4119_v21, 5  ;;  %v9173_v61 = vld [vmem:[%s7151_s28 + $0xa4] sm:$0x1] }
 0x126   : > { %v1192_v8 = vadd.f32 %v6533_v28, %v8650_v24  ;;  %6823 = vmatprep.mubr.bf16.mxu1 %v8900_v58  ;;  %v9161_v4 = vcombine.low %v4098_v63, %v4108_v29  ;;  %v4116_v20 = vor.u32 %v4115_v53, %v4112_v14  ;;  %v4125_v24 = vrot.slane %v4123_v0, 4  ;;  %v5963_v28 = vld [vmem:[%s7151_s28 + $0xa8] sm:$0xf]  ;;  %v9178_v14 = vld [vmem:[%s7151_s28 + $0xac] sm:$0xf] }
 0x127   : > { %v1183_v62 = vpop.f32.mrf.mxu1  ;;  %v1639_v48 = vpop.f32.mrf.mxu0  ;;  %v9169_v47 = vrot.slane %v4129_v59, 5  ;;  %v6041_v21 = vrot.slane %v9149_v37, 9  ;;  %v4136_v29 = vrot.slane %v4134_v11, 4  ;;  %v4139_v18 = vrot.slane %v4137_v17, 5 }
 0x128   : > { %v9166_v3 = vadd.f32 %v6581_v5, %v1192_v8  ;;  %v1184_v58 = vadd.f32 %v1183_v62, %v8671_v57  ;;  %v9175_v44 = vrot.slane %v4143_v9, 5  ;;  %v4149_v41 = vrot.slane %v4147_v31, 4  ;;  %v9979_v62 = vld [vmem:[#allocation3_spill] sm:$0xff] }
 0x129   : > { %v6534_v63 = vpop.f32.mrf.mxu1  ;;  %v6585_v5 = vpop.f32.mrf.mxu0  ;;  %v9976_v0 = vcombine.low %v8863_v33, %v8871_v23  ;;  %v4158_v59 = vshrl.u32 %v5963_v28, 16  ;;  %v4161_v37 = vshll.u32 %v5963_v28, 16  ;;  %v9977_v11 = vcombine.low %v8915_v7, %v8919_v50 }
 0x12a   : > { %9974 = vst [vmem:[#allocation25_spill] sm:$0xff] %v9166_v3  ;;  %v9180_v53 = vadd.f32 %v1636_v15, %v1184_v58  ;;  %v1195_v57 = vadd.f32 %v6534_v63, %v8707_v38  ;;  %v9189_v17 = vrot.slane %v4116_v20, 4  ;;  %v4126_v15 = vor.u32 %v4125_v24, %v9159_v40  ;;  %v6026_v58 = vld [vmem:[%s7151_s28 + $0x9c] sm:$0xe] }
 0x12b   : > { %v1186_v8 = vpop.f32.mrf.mxu1  ;;  %v4711_v9 = vrot.slane %v9085_v12, 5  ;;  %v4153_v38 = vshll.u32 %v9173_v61, 16  ;;  %v1652_v23 = vpop.f32.mrf.mxu0  ;;  %v4714_v28 = vrot.slane %v9108_v54, 5  ;;  %v4167_v63 = vshll.u32 %v9178_v14, 16 }
 0x12c   : > { %9975 = vst [vmem:[#allocation26_spill] sm:$0xff] %v9180_v53  ;;  %6872 = vmatmul.mubr.bf16.gmra.mxu0 %v9976_v0  ;;  %v9194_v31 = vadd.f32 %v6582_v45, %v1195_v57  ;;  %v1187_v33 = vadd.f32 %v1186_v8, %v9979_v62  ;;  %v4140_v50 = vor.u32 %v4139_v18, %v4136_v29  ;;  %v4718_v12 = vrot.slane %v9125_v6, 5  ;;  %v9980_v57 = vld [vmem:[#allocation7_spill] sm:$0xff]  ;;  %v9981_v6 = vld [vmem:[#allocation9_spill] sm:$0xff] }
 0x12d   : > { %6875 = vmatprep.mubr.bf16.mxu0 %v9977_v11  ;;  %v6537_v7 = vpop.f32.mrf.mxu1  ;;  %6824 = vmatmul.mubr.bf16.gmra.mxu1 %v8908_v2  ;;  %v4150_v20 = vor.u32 %v4149_v41, %v9175_v44  ;;  %v4171_v45 = vshrl.u32 %v9178_v14, 16  ;;  %v6586_v8 = vpop.f32.mrf.mxu0  ;;  %v4160_v54 = vrot.slane %v4158_v59, 4  ;;  %v4163_v11 = vrot.slane %v4161_v37, 5 }
 0x12e   : > { %9978 = vst [vmem:[#allocation27_spill] sm:$0xff] %v9194_v31  ;;  %v9204_v24 = vadd.f32 %v1639_v48, %v1187_v33  ;;  %v1208_v0 = vadd.f32 %v6537_v7, %v9980_v57  ;;  %6827 = vmatprep.mubr.bf16.mxu1 %v8950_v25  ;;  %v4127_v31 = vrot.slane %v4126_v15, 4  ;;  %v4713_v2 = vrot.slane %v4711_v9, 4 }
 0x12f   : > { %v1199_v62 = vpop.f32.mrf.mxu1  ;;  %v4155_v18 = vrot.slane %v4153_v38, 5  ;;  %v6042_v29 = vrot.slane %v6026_v58, 9  ;;  %v1655_v3 = vpop.f32.mrf.mxu0  ;;  %v9214_v48 = vrot.slane %v4167_v63, 5  ;;  %v4173_v33 = vrot.slane %v4171_v45, 4 }
 0x130   : > { %v9208_v41 = vadd.f32 %v6585_v5, %v1208_v0  ;;  %v1200_v53 = vadd.f32 %v1199_v62, %v9981_v6  ;;  %v4141_v57 = vrot.slane %v4140_v50, 4  ;;  %v4151_v25 = vrot.slane %v4150_v20, 4 }
 0x131   : > { %v6538_v7 = vpop.f32.mrf.mxu1  ;;  %v4720_v59 = vrot.slane %v4718_v12, 4  ;;  %v4721_v37 = vrot.slane %v9173_v61, 5  ;;  %v6589_v38 = vpop.f32.mrf.mxu0  ;;  %v9982_v58 = vcombine.low %v8957_v49, %v8961_v16  ;;  %v9225_v63 = vsel %vm7493_vm5, %v6041_v21, %v4711_v9  ;;  %v6027_v21 = vld [vmem:[%s7151_s28 + $0xa8] sm:$0xe] }
 0x132   : > { %v9217_v15 = vadd.f32 %v1652_v23, %v1200_v53  ;;  %v1211_v5 = vadd.f32 %v6538_v7, %v8854_v39  ;;  %v4164_v50 = vor.u32 %v4163_v11, %v4160_v54  ;;  %v9983_v20 = vcombine.low %v8993_v60, %v9015_v10 }
 0x133   : > { %v1202_v45 = vpop.f32.mrf.mxu1  ;;  %v4122_v39 = vsel %vm7182_vm2, %v9189_v17, %v9159_v40  ;;  %v4132_v49 = vsel %vm7182_vm2, %v4127_v31, %v9169_v47  ;;  %v9239_v16 = vsel %vm7493_vm5, %v4713_v2, %v4714_v28  ;;  %v4177_v61 = vshll.u32 %v9212_v35, 16  ;;  %v1668_v60 = vpop.f32.mrf.mxu0  ;;  %v5966_v17 = vld [vmem:[%s7151_s28 + $0xb4] sm:$0xf]  ;;  %v9984_v47 = vld [vmem:[#allocation18_spill] sm:$0xff]  ;;  %v9268_v2 = vld [vmem:[%s7151_s28 + $0xb8] sm:$0xf] }
 0x134   : > { %6876 = vmatmul.mubr.bf16.gmra.mxu0 %v9982_v58  ;;  %v9243_v53 = vadd.f32 %v6586_v8, %v1211_v5  ;;  %v1203_v10 = vadd.f32 %v1202_v45, %v8888_v46  ;;  %v4174_v9 = vor.u32 %v4173_v33, %v9214_v48  ;;  %v4725_v40 = vrot.slane %v9178_v14, 5  ;;  %v9985_v8 = vld [vmem:[#allocation13_spill] sm:$0xff] }
 0x135   : > { %6879 = vmatprep.mubr.bf16.mxu0 %v9983_v20  ;;  %v6541_v23 = vpop.f32.mrf.mxu1  ;;  %6828 = vmatmul.mubr.bf16.gmra.mxu1 %v9984_v47  ;;  %v4146_v31 = vsel %vm7182_vm2, %v4141_v57, %v9175_v44  ;;  %v4156_v28 = vsel %vm7182_vm2, %v4151_v25, %v4155_v18  ;;  %v9257_v46 = vsel %vm7493_vm5, %v6042_v29, %v4718_v12  ;;  %v6590_v11 = vpop.f32.mrf.mxu0  ;;  %v4165_v62 = vrot.slane %v4164_v50, 4  ;;  %v9986_v57 = vld [vmem:[#allocation15_spill] sm:$0xff]  ;;  %v9990_v47 = vld [vmem:[#allocation20_spill] sm:$0xff] }
 0x136   : > { %v9261_v0 = vsel %vm7493_vm5, %v4720_v59, %v4721_v37  ;;  %v9263_v14 = vadd.f32 %v1655_v3, %v1203_v10  ;;  %v1224_v54 = vadd.f32 %v6541_v23, %v9985_v8  ;;  %6831 = vmatprep.mubr.bf16.mxu1 %v9097_v42  ;;  %v6043_v44 = vrot.slane %v6027_v21, 9 }
 0x137   : > { %v1215_v18 = vpop.f32.mrf.mxu1  ;;  %v4179_v6 = vrot.slane %v4177_v61, 5  ;;  %v4728_v12 = vrot.slane %v9212_v35, 5  ;;  %v4182_v29 = vshrl.u32 %v5966_v17, 16  ;;  %v4185_v33 = vshll.u32 %v5966_v17, 16  ;;  %v1671_v25 = vpop.f32.mrf.mxu0 }
 0x138   : > { %v9271_v7 = vadd.f32 %v6589_v38, %v1224_v54  ;;  %v1216_v3 = vadd.f32 %v1215_v18, %v9986_v57  ;;  %v4175_v59 = vrot.slane %v4174_v9, 4  ;;  %v4727_v37 = vrot.slane %v4725_v40, 4  ;;  %v9987_v38 = vld [vmem:[#allocation17_spill] sm:$0xff] }
 0x139   : > { %v6542_v42 = vpop.f32.mrf.mxu1  ;;  %v9274_v5 = vcombine.low %v4122_v39, %v4132_v49  ;;  %v6073_v58 = vcombine.low %v9225_v63, %v9239_v16  ;;  %v9278_v50 = vcombine.low %v4146_v31, %v4156_v28  ;;  %v4191_v35 = vshll.u32 %v9268_v2, 16  ;;  %v6593_v61 = vpop.f32.mrf.mxu0  ;;  %v5969_v49 = vld [vmem:[%s7151_s28 + $0xc0] sm:$0xf]  ;;  %v9292_v16 = vld [vmem:[%s7151_s28 + $0xc4] sm:$0xf] }
 0x13a   : > { %v9281_v45 = vadd.f32 %v1668_v60, %v1216_v3  ;;  %v1227_v20 = vadd.f32 %v6542_v42, %v9987_v38  ;;  %v9988_v21 = vcombine.low %v9055_v51, %v9076_v55  ;;  %v6074_v39 = vcombine.low %v9257_v46, %v9261_v0  ;;  %v9995_v46 = vld [vmem:[#allocation6_spill] sm:$0xff] }
 0x13b   : > { %v4195_v63 = vshrl.u32 %v9268_v2, 16  ;;  %v1218_v10 = vpop.f32.mrf.mxu1  ;;  %v9989_v60 = vcombine.low %v9105_v13, %v9120_v30  ;;  %v4170_v51 = vsel %vm7182_vm2, %v4165_v62, %v9214_v48  ;;  %v9302_v55 = vsel %vm7493_vm5, %v6043_v44, %v4725_v40  ;;  %v1684_v28 = vpop.f32.mrf.mxu0  ;;  %v9314_v30 = vld [vmem:[%s7151_s28 + $0xbc] sm:$0x1]  ;;  %v6028_v48 = vld [vmem:[%s7151_s28 + $0xb4] sm:$0xe] }
 0x13c   : > { %6880 = vmatmul.mubr.bf16.gmra.mxu0 %v9988_v21  ;;  %v4184_v9 = vrot.slane %v4182_v29, 4  ;;  %v4187_v17 = vrot.slane %v4185_v33, 5  ;;  %v9304_v23 = vadd.f32 %v6590_v11, %v1227_v20  ;;  %v1219_v31 = vadd.f32 %v1218_v10, %v9990_v47  ;;  %v9336_v20 = vld [vmem:[%s7151_s28 + $0xc8] sm:$0x1] }
 0x13d   : > { %6883 = vmatprep.mubr.bf16.mxu0 %v9989_v60  ;;  %v4180_v8 = vsel %vm7182_vm2, %v4175_v59, %v4179_v6  ;;  %v9311_v13 = vsel %vm7493_vm5, %v4727_v37, %v4728_v12  ;;  %v6545_v54 = vpop.f32.mrf.mxu1  ;;  %6832 = vmatmul.mubr.bf16.gmra.mxu1 %v9099_v52  ;;  %v9318_v40 = vrot.slane %v4191_v35, 5  ;;  %v4206_v11 = vshrl.u32 %v5969_v49, 16  ;;  %v6594_v29 = vpop.f32.mrf.mxu0 }
 0x13e   : > { %v4209_v62 = vshll.u32 %v5969_v49, 16  ;;  %v4215_v44 = vshll.u32 %v9292_v16, 16  ;;  %v9321_v18 = vadd.f32 %v1671_v25, %v1219_v31  ;;  %v1240_v6 = vadd.f32 %v6545_v54, %v9039_v43  ;;  %6835 = vmatprep.mubr.bf16.mxu1 %v9155_v22 }
 0x13f   : > { %v4197_v12 = vrot.slane %v4195_v63, 4  ;;  %v4219_v33 = vshrl.u32 %v9292_v16, 16  ;;  %v1231_v57 = vpop.f32.mrf.mxu1  ;;  %v4188_v3 = vor.u32 %v4187_v17, %v4184_v9  ;;  %v4201_v52 = vshll.u32 %v9314_v30, 16  ;;  %v1687_v43 = vpop.f32.mrf.mxu0  ;;  %v5972_v9 = vld [vmem:[%s7151_s28 + $0xcc] sm:$0xf] }
 0x140   : > { %v6044_v59 = vrot.slane %v6028_v48, 9  ;;  %v4732_v37 = vrot.slane %v9268_v2, 5  ;;  %v9328_v42 = vadd.f32 %v6593_v61, %v1240_v6  ;;  %v1232_v25 = vadd.f32 %v1231_v57, %v9058_v1  ;;  %v6029_v48 = vld [vmem:[%s7151_s28 + $0xc0] sm:$0xe] }
 0x141   : > { %v9331_v35 = vcombine.low %v4170_v51, %v4180_v8  ;;  %v6075_v22 = vcombine.low %v9302_v55, %v9311_v13  ;;  %v6546_v38 = vpop.f32.mrf.mxu1  ;;  %v4208_v21 = vrot.slane %v4206_v11, 4  ;;  %v4211_v63 = vrot.slane %v4209_v62, 5  ;;  %v6597_v10 = vpop.f32.mrf.mxu0  ;;  %v9358_v8 = vld [vmem:[%s7151_s28 + $0xd0] sm:$0xf] }
 0x142   : > { %v9338_v49 = vrot.slane %v4215_v44, 5  ;;  %v4221_v2 = vrot.slane %v4219_v33, 4  ;;  %v9340_v61 = vadd.f32 %v1684_v28, %v1232_v25  ;;  %v1243_v1 = vadd.f32 %v6546_v38, %v9078_v26 }
 0x143   : > { %v9991_v60 = vcombine.low %v9134_v19, %v9144_v36  ;;  %v4198_v51 = vor.u32 %v4197_v12, %v9318_v40  ;;  %v4735_v55 = vrot.slane %v9314_v30, 5  ;;  %v1234_v17 = vpop.f32.mrf.mxu1  ;;  %v9349_v47 = vrot.slane %v4188_v3, 4  ;;  %v1700_v13 = vpop.f32.mrf.mxu0 }
 0x144   : > { %v9351_v31 = vrot.slane %v4201_v52, 5  ;;  %v9355_v26 = vsel %vm7493_vm5, %v6044_v59, %v4732_v37  ;;  %v4734_v28 = vrot.slane %v4732_v37, 4  ;;  %v9360_v19 = vadd.f32 %v6594_v29, %v1243_v1  ;;  %v9992_v29 = vld [vmem:[#allocation2_spill] sm:$0xff] }
 0x145   : > { %6884 = vmatmul.mubr.bf16.gmra.mxu0 %v9991_v60  ;;  %v1235_v36 = vadd.f32 %v1234_v17, %v9087_v34  ;;  %v4225_v30 = vshll.u32 %v9336_v20, 16  ;;  %v6549_v54 = vpop.f32.mrf.mxu1  ;;  %6836 = vmatmul.mubr.bf16.gmra.mxu1 %v9161_v4  ;;  %v4212_v11 = vor.u32 %v4211_v63, %v4208_v21  ;;  %v4222_v62 = vor.u32 %v4221_v2, %v9338_v49  ;;  %v6598_v57 = vpop.f32.mrf.mxu0 }
 0x146   : > { %6887 = vmatprep.mubr.bf16.mxu0 %v6073_v58  ;;  %v4739_v58 = vrot.slane %v9292_v16, 5  ;;  %v4230_v44 = vshrl.u32 %v5972_v9, 16  ;;  %v4233_v6 = vshll.u32 %v5972_v9, 16  ;;  %v1256_v33 = vadd.f32 %v6549_v54, %v9992_v29  ;;  %6839 = vmatprep.mubr.bf16.mxu1 %v9274_v5 }
 0x147   : > { %v9368_v12 = vadd.f32 %v1687_v43, %v1235_v36  ;;  %v4239_v34 = vshll.u32 %v9358_v8, 16  ;;  %v4243_v3 = vshrl.u32 %v9358_v8, 16  ;;  %v1247_v16 = vpop.f32.mrf.mxu1  ;;  %v4199_v52 = vrot.slane %v4198_v51, 4  ;;  %v9993_v43 = vld [vmem:[#allocation5_spill] sm:$0xff]  ;;  %v1703_v21 = vpop.f32.mrf.mxu0  ;;  %v9994_v36 = vld [vmem:[#allocation4_spill] sm:$0xff] }
 0x148   : > { %v4736_v4 = vsel %vm7493_vm5, %v4734_v28, %v4735_v55  ;;  %v6045_v59 = vrot.slane %v6029_v48, 9  ;;  %v4742_v37 = vrot.slane %v9336_v20, 5  ;;  %v9377_v25 = vadd.f32 %v6597_v10, %v1256_v33  ;;  %v5974_v20 = vld [vmem:[%s7151_s28 + $0xd4] sm:$0x1] }
 0x149   : > { %v1248_v38 = vadd.f32 %v1247_v16, %v9993_v43  ;;  %v4227_v63 = vrot.slane %v4225_v30, 5  ;;  %v4741_v5 = vrot.slane %v4739_v58, 4  ;;  %v6550_v2 = vpop.f32.mrf.mxu1  ;;  %v4213_v1 = vrot.slane %v4212_v11, 4 }
 0x14a   : > { %v4223_v60 = vrot.slane %v4222_v62, 4  ;;  %v4232_v9 = vrot.slane %v4230_v44, 4  ;;  %v4235_v17 = vrot.slane %v4233_v6, 5  ;;  %v1259_v55 = vadd.f32 %v6550_v2, %v9994_v36  ;;  %v6601_v28 = vpop.f32.mrf.mxu0  ;;  %v6030_v6 = vld [vmem:[%s7151_s28 + $0xcc] sm:$0xe] }
 0x14b   : > { %v9380_v51 = vadd.f32 %v1700_v13, %v1248_v38  ;;  %v9387_v10 = vrot.slane %v4239_v34, 5  ;;  %v4245_v30 = vrot.slane %v4243_v3, 4  ;;  %v1250_v48 = vpop.f32.mrf.mxu1  ;;  %v4194_v13 = vsel %vm7182_vm2, %v9349_v47, %v9318_v40 }
 0x14c   : > { %v4204_v54 = vsel %vm7182_vm2, %v4199_v52, %v9351_v31  ;;  %v4746_v11 = vrot.slane %v9358_v8, 5  ;;  %v9397_v62 = vadd.f32 %v6598_v57, %v1259_v55  ;;  %v1251_v0 = vadd.f32 %v1250_v48, %v9995_v46  ;;  %v9996_v57 = vld [vmem:[#allocation8_spill] sm:$0xff] }
 0x14d   : > { %6888 = vmatmul.mubr.bf16.gmra.mxu0 %v6074_v39  ;;  %v1716_v39 = vpop.f32.mrf.mxu0  ;;  %v4740_v44 = vsel %vm7493_vm5, %v6045_v59, %v4739_v58  ;;  %v6553_v29 = vpop.f32.mrf.mxu1  ;;  %6840 = vmatmul.mubr.bf16.gmra.mxu1 %v9278_v50  ;;  %v6076_v40 = vcombine.low %v9355_v26, %v4736_v4  ;;  %v4218_v47 = vsel %vm7182_vm2, %v4213_v1, %v9338_v49  ;;  %v4249_v8 = vshll.u32 %v5974_v20, 16  ;;  %v9999_v48 = vld [vmem:[#allocation12_spill] sm:$0xff] }
 0x14e   : > { %6891 = vmatprep.mubr.bf16.mxu0 %v6075_v22  ;;  %v4743_v22 = vsel %vm7493_vm5, %v4741_v5, %v4742_v37  ;;  %v4236_v31 = vor.u32 %v4235_v17, %v4232_v9  ;;  %v9410_v33 = vadd.f32 %v1703_v21, %v1251_v0  ;;  %v1272_v34 = vadd.f32 %v6553_v29, %v9996_v57  ;;  %v9997_v37 = vld [vmem:[#allocation10_spill] sm:$0xff]  ;;  %v9998_v9 = vld [vmem:[#allocation11_spill] sm:$0xff] }
 0x14f   : > { %v6602_v58 = vpop.f32.mrf.mxu0  ;;  %6843 = vmatprep.mubr.bf16.mxu1 %v9331_v35  ;;  %v4228_v3 = vsel %vm7182_vm2, %v4223_v60, %v4227_v63  ;;  %v4246_v50 = vor.u32 %v4245_v30, %v9387_v10  ;;  %v1263_v16 = vpop.f32.mrf.mxu1  ;;  %v6077_v26 = vcombine.low %v4740_v44, %v4743_v22  ;;  %v6046_v52 = vrot.slane %v6030_v6, 9  ;;  %v10000_v44 = vld [vmem:[#allocation14_spill] sm:$0xff] }
 0x150   : > { %v4748_v4 = vrot.slane %v4746_v11, 4  ;;  %v4749_v59 = vrot.slane %v5974_v20, 5  ;;  %v9417_v49 = vadd.f32 %v6601_v28, %v1272_v34  ;;  %v1264_v43 = vadd.f32 %v1263_v16, %v9997_v37  ;;  %v10003_v37 = vld [vmem:[#allocation21_spill] sm:$0xff] }
 0x151   : > { %v1719_v38 = vpop.f32.mrf.mxu0  ;;  %v6554_v21 = vpop.f32.mrf.mxu1  ;;  %v6004_v5 = vcombine.low %v4194_v13, %v4204_v54  ;;  %v6005_v2 = vcombine.low %v4218_v47, %v4228_v3  ;;  %v4237_v1 = vrot.slane %v4236_v31, 4  ;;  %v4247_v17 = vrot.slane %v4246_v50, 4  ;;  %v10001_v47 = vld [vmem:[#allocation16_spill] sm:$0xff] }
 0x152   : > { %v9420_v35 = vadd.f32 %v1716_v39, %v1264_v43  ;;  %v1275_v63 = vadd.f32 %v6554_v21, %v9998_v9  ;;  %v4251_v36 = vrot.slane %v4249_v8, 5  ;;  %v4747_v28 = vsel %vm7493_vm5, %v6046_v52, %v4746_v11 }
 0x153   : > { %v6605_v60 = vpop.f32.mrf.mxu0  ;;  %v1266_v55 = vpop.f32.mrf.mxu1  ;;  %v4750_v20 = vsel %vm7493_vm5, %v4748_v4, %v4749_v59  ;;  %v4242_v0 = vsel %vm7182_vm2, %v4237_v1, %v9387_v10  ;;  %v10002_v10 = vld [vmem:[#allocation19_spill] sm:$0xff] }
 0x154   : > { %v9427_v30 = vadd.f32 %v6602_v58, %v1275_v63  ;;  %v1267_v13 = vadd.f32 %v1266_v55, %v9999_v48  ;;  %v4252_v56 = vsel %vm7182_vm2, %v4247_v17, %v4251_v36  ;;  %v6078_v11 = vcombine.low %v4747_v28, %v4750_v20  ;;  %v10005_v17 = vld [vmem:[#allocation23_spill] sm:$0xff]  ;;  %v10006_v20 = vld [vmem:[#allocation24_spill] sm:$0xff] }
 0x155   : > { %6892 = vmatmul.mubr.bf16.gmra.mxu0 %v6076_v40  ;;  %v1732_v54 = vpop.f32.mrf.mxu0  ;;  %v6557_v46 = vpop.f32.mrf.mxu1  ;;  %6844 = vmatmul.mubr.bf16.gmra.mxu1 %v6004_v5  ;;  %v6006_v34 = vcombine.low %v4242_v0, %v4252_v56  ;;  %v10007_v0 = vld [vmem:[#allocation25_spill] sm:$0xff] }
 0x156   : > { %6895 = vmatprep.mubr.bf16.mxu0 %v6077_v26  ;;  %v9433_v39 = vadd.f32 %v1719_v38, %v1267_v13  ;;  %v1288_v22 = vadd.f32 %v6557_v46, %v10000_v44  ;;  %6847 = vmatprep.mubr.bf16.mxu1 %v6005_v2  ;;  %v10004_v2 = vld [vmem:[#allocation22_spill] sm:$0xff] }
 0x157   : > { %v6606_v6 = vpop.f32.mrf.mxu0  ;;  %v1279_v29 = vpop.f32.mrf.mxu1 }
 0x158   : > { %v9438_v40 = vadd.f32 %v6605_v60, %v1288_v22  ;;  %v1280_v31 = vadd.f32 %v1279_v29, %v10001_v47 }
 0x159   : > { %v1735_v8 = vpop.f32.mrf.mxu0  ;;  %v6558_v57 = vpop.f32.mrf.mxu1 }
 0x15a   : > { %v9441_v58 = vadd.f32 %v1732_v54, %v1280_v31  ;;  %v1291_v3 = vadd.f32 %v6558_v57, %v10002_v10  ;;  %v10009_v57 = vld [vmem:[#allocation27_spill] sm:$0xff] }
 0x15b   : > { %v6609_v50 = vpop.f32.mrf.mxu0  ;;  %v1282_v16 = vpop.f32.mrf.mxu1 }
 0x15c   : > { %v9444_v26 = vadd.f32 %v6606_v6, %v1291_v3  ;;  %v1283_v27 = vadd.f32 %v1282_v16, %v9034_v32 }
 0x15d   : > { %6896 = vmatmul.mubr.bf16.gmra.mxu0 %v6078_v11  ;;  %v1748_v52 = vpop.f32.mrf.mxu0  ;;  %v6561_v4 = vpop.f32.mrf.mxu1  ;;  %6848 = vmatmul.mubr.bf16.gmra.mxu1 %v6006_v34  ;;  %v10008_v11 = vld [vmem:[#allocation26_spill] sm:$0xff] }
 0x15e   : > { %v9447_v59 = vadd.f32 %v1735_v8, %v1283_v27  ;;  %v1304_v43 = vadd.f32 %v6561_v4, %v10003_v37 }
 0x15f   : > { %v6610_v38 = vpop.f32.mrf.mxu0  ;;  %v1295_v21 = vpop.f32.mrf.mxu1 }
 0x160   : > { %v9450_v5 = vadd.f32 %v6609_v50, %v1304_v43  ;;  %v1296_v1 = vadd.f32 %v1295_v21, %v10004_v2 }
 0x161   : > { %v1751_v9 = vpop.f32.mrf.mxu0  ;;  %v6562_v63 = vpop.f32.mrf.mxu1 }
 0x162   : > { %v9453_v60 = vadd.f32 %v1748_v52, %v1296_v1  ;;  %v1307_v36 = vadd.f32 %v6562_v63, %v10005_v17 }
 0x163   : > { %v6677_v32 = vpop.f32.mrf.mxu0  ;;  %v1298_v55 = vpop.f32.mrf.mxu1 }
 0x164   : > { %v9456_v28 = vadd.f32 %v6610_v38, %v1307_v36  ;;  %v1299_v48 = vadd.f32 %v1298_v55, %v10006_v20 }
 0x165   : > { %v2777_v13 = vpop.f32.mrf.mxu0  ;;  %v6629_v54 = vpop.f32.mrf.mxu1 }
 0x166   : > { %v9459_v46 = vadd.f32 %v1751_v9, %v1299_v48  ;;  %v2152_v44 = vadd.f32 %v6629_v54, %v10007_v0 }
 0x167   : > { %v6678_v22 = vpop.f32.mrf.mxu0  ;;  %v2023_v6 = vpop.f32.mrf.mxu1 }
 0x168   : > { %v9462_v56 = vadd.f32 %v6677_v32, %v2152_v44  ;;  %v2150_v29 = vadd.f32 %v2023_v6, %v10008_v11 }
 0x169   : > { %v2780_v47 = vpop.f32.mrf.mxu0  ;;  %v6630_v31 = vpop.f32.mrf.mxu1 }
 0x16a   : > { %v9465_v8 = vadd.f32 %v2777_v13, %v2150_v29  ;;  %v2153_v34 = vadd.f32 %v6630_v31, %v10009_v57 }
 0x16b   : > { %v6681_v10 = vpop.f32.mrf.mxu0  ;;  %v2026_v3 = vpop.f32.mrf.mxu1 }
 0x16c   : > { %v9468_v50 = vadd.f32 %v6678_v22, %v2153_v34  ;;  %v2151_v16 = vadd.f32 %v2026_v3, %v9204_v24 }
 0x16d   : > { %v2793_v27 = vpop.f32.mrf.mxu0  ;;  %v6633_v52 = vpop.f32.mrf.mxu1 }
 0x16e   : > { %v9471_v4 = vadd.f32 %v2780_v47, %v2151_v16  ;;  %v2156_v37 = vadd.f32 %v6633_v52, %v9208_v41 }
 0x16f   : > { %v6682_v43 = vpop.f32.mrf.mxu0  ;;  %v2039_v38 = vpop.f32.mrf.mxu1 }
 0x170   : > { %v9474_v21 = vadd.f32 %v6681_v10, %v2156_v37  ;;  %v2154_v2 = vadd.f32 %v2039_v38, %v9217_v15 }
 0x171   : > { %v2796_v1 = vpop.f32.mrf.mxu0  ;;  %v6634_v9 = vpop.f32.mrf.mxu1 }
 0x172   : > { %v9477_v63 = vadd.f32 %v2793_v27, %v2154_v2  ;;  %v2157_v17 = vadd.f32 %v6634_v9, %v9243_v53 }
 0x173   : > { %v6685_v36 = vpop.f32.mrf.mxu0  ;;  %v2042_v24 = vpop.f32.mrf.mxu1 }
 0x174   : > { %v9480_v32 = vadd.f32 %v6682_v43, %v2157_v17  ;;  %v2155_v55 = vadd.f32 %v2042_v24, %v9263_v14 }
 0x175   : > { %v2809_v20 = vpop.f32.mrf.mxu0  ;;  %v6637_v41 = vpop.f32.mrf.mxu1 }
 0x176   : > { %v9483_v48 = vadd.f32 %v2796_v1, %v2155_v55  ;;  %v2160_v13 = vadd.f32 %v6637_v41, %v9271_v7 }
 0x177   : > { %v6686_v54 = vpop.f32.mrf.mxu0  ;;  %v2055_v15 = vpop.f32.mrf.mxu1 }
 0x178   : > { %v9486_v0 = vadd.f32 %v6685_v36, %v2160_v13  ;;  %v2158_v44 = vadd.f32 %v2055_v15, %v9281_v45 }
 0x179   : > { %v2812_v22 = vpop.f32.mrf.mxu0  ;;  %v6638_v53 = vpop.f32.mrf.mxu1 }
 0x17a   : > { %v9489_v6 = vadd.f32 %v2809_v20, %v2158_v44  ;;  %v2161_v11 = vadd.f32 %v6638_v53, %v9304_v23 }
 0x17b   : > { %v6689_v29 = vpop.f32.mrf.mxu0  ;;  %v2058_v14 = vpop.f32.mrf.mxu1 }
 0x17c   : > { %v9492_v47 = vadd.f32 %v6686_v54, %v2161_v11  ;;  %v2159_v31 = vadd.f32 %v2058_v14, %v9321_v18 }
 0x17d   : > { %v2825_v57 = vpop.f32.mrf.mxu0  ;;  %v6641_v7 = vpop.f32.mrf.mxu1 }
 0x17e   : > { %v9495_v34 = vadd.f32 %v2812_v22, %v2159_v31  ;;  %v2164_v10 = vadd.f32 %v6641_v7, %v9328_v42 }
 0x17f   : > { %v6690_v3 = vpop.f32.mrf.mxu0  ;;  %v2071_v45 = vpop.f32.mrf.mxu1 }
 0x180   : > { %v9498_v16 = vadd.f32 %v6689_v29, %v2164_v10  ;;  %v2162_v27 = vadd.f32 %v2071_v45, %v9340_v61 }
 0x181   : > { %v2828_v52 = vpop.f32.mrf.mxu0  ;;  %v6642_v23 = vpop.f32.mrf.mxu1 }
 0x182   : > { %v9501_v37 = vadd.f32 %v2825_v57, %v2162_v27  ;;  %v2165_v43 = vadd.f32 %v6642_v23, %v9360_v19 }
 0x183   : > { %v6693_v38 = vpop.f32.mrf.mxu0  ;;  %v2074_v18 = vpop.f32.mrf.mxu1 }
 0x184   : > { %v9504_v2 = vadd.f32 %v6690_v3, %v2165_v43  ;;  %v2163_v1 = vadd.f32 %v2074_v18, %v9368_v12 }
 0x185   : > { %v2841_v9 = vpop.f32.mrf.mxu0  ;;  %v6645_v42 = vpop.f32.mrf.mxu1 }
 0x186   : > { %v9507_v17 = vadd.f32 %v2828_v52, %v2163_v1  ;;  %v2168_v36 = vadd.f32 %v6645_v42, %v9377_v25 }
 0x187   : > { %v6694_v24 = vpop.f32.mrf.mxu0  ;;  %v2087_v61 = vpop.f32.mrf.mxu1 }
 0x188   : > { %v9510_v55 = vadd.f32 %v6693_v38, %v2168_v36  ;;  %v2166_v20 = vadd.f32 %v2087_v61, %v9380_v51 }
 0x189   : > { %v2844_v41 = vpop.f32.mrf.mxu0  ;;  %v6646_v19 = vpop.f32.mrf.mxu1 }
 0x18a   : > { %v9513_v13 = vadd.f32 %v2841_v9, %v2166_v20  ;;  %v2169_v54 = vadd.f32 %v6646_v19, %v9397_v62 }
 0x18b   : > { %v6697_v15 = vpop.f32.mrf.mxu0  ;;  %v2090_v12 = vpop.f32.mrf.mxu1 }
 0x18c   : > { %v9516_v44 = vadd.f32 %v6694_v24, %v2169_v54  ;;  %v2167_v22 = vadd.f32 %v2090_v12, %v9410_v33 }
 0x18d   : > { %v2857_v53 = vpop.f32.mrf.mxu0  ;;  %v6649_v25 = vpop.f32.mrf.mxu1 }
 0x18e   : > { %v9519_v11 = vadd.f32 %v2844_v41, %v2167_v22  ;;  %v2172_v29 = vadd.f32 %v6649_v25, %v9417_v49 }
 0x18f   : > { %v6698_v14 = vpop.f32.mrf.mxu0  ;;  %v2103_v51 = vpop.f32.mrf.mxu1 }
 0x190   : > { %v9522_v31 = vadd.f32 %v6697_v15, %v2172_v29  ;;  %v2170_v57 = vadd.f32 %v2103_v51, %v9420_v35 }
 0x191   : > { %v2860_v7 = vpop.f32.mrf.mxu0  ;;  %v6650_v62 = vpop.f32.mrf.mxu1 }
 0x192   : > { %v9525_v10 = vadd.f32 %v2857_v53, %v2170_v57  ;;  %v2173_v3 = vadd.f32 %v6650_v62, %v9427_v30 }
 0x193   : > { %v6701_v45 = vpop.f32.mrf.mxu0  ;;  %v2106_v33 = vpop.f32.mrf.mxu1 }
 0x194   : > { %v9528_v27 = vadd.f32 %v6698_v14, %v2173_v3  ;;  %v2171_v52 = vadd.f32 %v2106_v33, %v9433_v39 }
 0x195   : > { %v2873_v23 = vpop.f32.mrf.mxu0  ;;  %v6653_v49 = vpop.f32.mrf.mxu1 }
 0x196   : > { %v9531_v43 = vadd.f32 %v2860_v7, %v2171_v52  ;;  %v2176_v38 = vadd.f32 %v6653_v49, %v9438_v40 }
 0x197   : > { %v6702_v18 = vpop.f32.mrf.mxu0  ;;  %v2119_v35 = vpop.f32.mrf.mxu1 }
 0x198   : > { %v9534_v1 = vadd.f32 %v6701_v45, %v2176_v38  ;;  %v2174_v9 = vadd.f32 %v2119_v35, %v9441_v58 }
 0x199   : > { %v2876_v42 = vpop.f32.mrf.mxu0  ;;  %v6654_v30 = vpop.f32.mrf.mxu1 }
 0x19a   : > { %v9537_v36 = vadd.f32 %v2873_v23, %v2174_v9  ;;  %v2177_v24 = vadd.f32 %v6654_v30, %v9444_v26 }
 0x19b   : > { %v6705_v61 = vpop.f32.mrf.mxu0  ;;  %v2122_v39 = vpop.f32.mrf.mxu1 }
 0x19c   : > { %v9540_v20 = vadd.f32 %v6702_v18, %v2177_v24  ;;  %v2175_v41 = vadd.f32 %v2122_v39, %v9447_v59 }
 0x19d   : > { %v2889_v19 = vpop.f32.mrf.mxu0  ;;  %v6657_v40 = vpop.f32.mrf.mxu1 }
 0x19e   : > { %10010 = vst [vmem:[#allocation3_spill] sm:$0xff] %v9540_v20  ;;  %v9543_v54 = vadd.f32 %v2876_v42, %v2175_v41  ;;  %v2180_v15 = vadd.f32 %v6657_v40, %v9450_v5 }
 0x19f   : > { %v6706_v12 = vpop.f32.mrf.mxu0  ;;  %v2135_v58 = vpop.f32.mrf.mxu1 }
 0x1a0   : > { %10011 = vst [vmem:[#allocation7_spill] sm:$0xff] %v9543_v54  ;;  %v9546_v22 = vadd.f32 %v6705_v61, %v2180_v15  ;;  %v2178_v53 = vadd.f32 %v2135_v58, %v9453_v60 }
 0x1a1   : > { %v2892_v25 = vpop.f32.mrf.mxu0  ;;  %v6658_v26 = vpop.f32.mrf.mxu1 }
 0x1a2   : > { %v9549_v29 = vadd.f32 %v2889_v19, %v2178_v53  ;;  %v2181_v14 = vadd.f32 %v6658_v26, %v9456_v28 }
 0x1a3   : > { %v6773_v51 = vpop.f32.mrf.mxu0  ;;  %v2138_v59 = vpop.f32.mrf.mxu1 }
 0x1a4   : > { %v9552_v57 = vadd.f32 %v6706_v12, %v2181_v14  ;;  %v2179_v7 = vadd.f32 %v2138_v59, %v9459_v46 }
 0x1a5   : > { %v3662_v62 = vpop.f32.mrf.mxu0  ;;  %v6725_v5 = vpop.f32.mrf.mxu1 }
 0x1a6   : > { %10012 = vst [vmem:[#allocation9_spill] sm:$0xff] %v9552_v57  ;;  %v9555_v3 = vadd.f32 %v2892_v25, %v2179_v7  ;;  %v3404_v45 = vadd.f32 %v6725_v5, %v9462_v56 }
 0x1a7   : > { %v9558_v33 = vpop.f32.mrf.mxu0  ;;  %v3275_v60 = vpop.f32.mrf.mxu1 }
 0x1a8   : > { %10013 = vst [vmem:[#allocation18_spill] sm:$0xff] %v9555_v3  ;;  %v9560_v52 = vadd.f32 %v6773_v51, %v3404_v45  ;;  %v3402_v23 = vadd.f32 %v3275_v60, %v9465_v8 }
 0x1a9   : > { %v9563_v28 = vpop.f32.mrf.mxu0  ;;  %v9565_v49 = vpop.f32.mrf.mxu1 }
 0x1aa   : > { %v9567_v38 = vadd.f32 %v3662_v62, %v3402_v23 }
 0x1ab   : > { %v6777_v46 = vpop.f32.mrf.mxu0  ;;  %v9569_v18 = vpop.f32.mrf.mxu1 }
 0x1ad   : > { %v3678_v35 = vpop.f32.mrf.mxu0  ;;  %v6729_v9 = vpop.f32.mrf.mxu1 }
 0x1ae   : > { %v3408_v56 = vadd.f32 %v6729_v9, %v9474_v21 }
 0x1af   : > { %v9572_v42 = vpop.f32.mrf.mxu0  ;;  %v3291_v30 = vpop.f32.mrf.mxu1 }
 0x1b0   : > { %v9574_v24 = vadd.f32 %v6777_v46, %v3408_v56  ;;  %v3406_v8 = vadd.f32 %v3291_v30, %v9477_v63 }
 0x1b1   : > { %v9577_v61 = vpop.f32.mrf.mxu0  ;;  %v9579_v39 = vpop.f32.mrf.mxu1 }
 0x1b2   : > { %v9581_v41 = vadd.f32 %v3678_v35, %v3406_v8 }
 0x1b3   : > { %v6781_v19 = vpop.f32.mrf.mxu0  ;;  %v9583_v40 = vpop.f32.mrf.mxu1 }
 0x1b5   : > { %v3694_v15 = vpop.f32.mrf.mxu0  ;;  %v6733_v12 = vpop.f32.mrf.mxu1 }
 0x1b6   : > { %v3412_v21 = vadd.f32 %v6733_v12, %v9486_v0 }
 0x1b7   : > { %v9586_v58 = vpop.f32.mrf.mxu0  ;;  %v3307_v53 = vpop.f32.mrf.mxu1 }
 0x1b8   : > { %v9588_v25 = vadd.f32 %v6781_v19, %v3412_v21  ;;  %v3410_v63 = vadd.f32 %v3307_v53, %v9489_v6 }
 0x1b9   : > { %v9591_v26 = vpop.f32.mrf.mxu0  ;;  %v9593_v14 = vpop.f32.mrf.mxu1 }
 0x1ba   : > { %v9595_v51 = vadd.f32 %v3694_v15, %v3410_v63 }
 0x1bb   : > { %v6785_v59 = vpop.f32.mrf.mxu0  ;;  %v9597_v7 = vpop.f32.mrf.mxu1 }
 0x1bd   : > { %v3710_v62 = vpop.f32.mrf.mxu0  ;;  %v6737_v5 = vpop.f32.mrf.mxu1 }
 0x1be   : > { %v3416_v0 = vadd.f32 %v6737_v5, %v9498_v16 }
 0x1bf   : > { %v9600_v45 = vpop.f32.mrf.mxu0  ;;  %v3323_v60 = vpop.f32.mrf.mxu1 }
 0x1c0   : > { %v9602_v23 = vadd.f32 %v6785_v59, %v3416_v0  ;;  %v3414_v6 = vadd.f32 %v3323_v60, %v9501_v37 }
 0x1c1   : > { %v9605_v46 = vpop.f32.mrf.mxu0  ;;  %v9607_v35 = vpop.f32.mrf.mxu1 }
 0x1c2   : > { %v9609_v9 = vadd.f32 %v3710_v62, %v3414_v6 }
 0x1c3   : > { %v6789_v56 = vpop.f32.mrf.mxu0  ;;  %v9611_v30 = vpop.f32.mrf.mxu1 }
 0x1c5   : > { %v3726_v8 = vpop.f32.mrf.mxu0  ;;  %v6741_v19 = vpop.f32.mrf.mxu1 }
 0x1c6   : > { %v3420_v16 = vadd.f32 %v6741_v19, %v9510_v55 }
 0x1c7   : > { %v9614_v15 = vpop.f32.mrf.mxu0  ;;  %v3339_v12 = vpop.f32.mrf.mxu1 }
 0x1c8   : > { %v9616_v21 = vadd.f32 %v6789_v56, %v3420_v16  ;;  %v3418_v37 = vadd.f32 %v3339_v12, %v9513_v13 }
 0x1c9   : > { %v9619_v53 = vpop.f32.mrf.mxu0  ;;  %v9621_v63 = vpop.f32.mrf.mxu1 }
 0x1ca   : > { %v9623_v59 = vadd.f32 %v3726_v8, %v3418_v37 }
 0x1cb   : > { %v6793_v62 = vpop.f32.mrf.mxu0  ;;  %v9625_v5 = vpop.f32.mrf.mxu1 }
 0x1cd   : > { %v3742_v0 = vpop.f32.mrf.mxu0  ;;  %v6745_v60 = vpop.f32.mrf.mxu1 }
 0x1ce   : > { %v3424_v55 = vadd.f32 %v6745_v60, %v9522_v31 }
 0x1cf   : > { %v9628_v6 = vpop.f32.mrf.mxu0  ;;  %v3355_v19 = vpop.f32.mrf.mxu1 }
 0x1d0   : > { %v9630_v56 = vadd.f32 %v6793_v62, %v3424_v55  ;;  %v3422_v13 = vadd.f32 %v3355_v19, %v9525_v10 }
 0x1d1   : > { %v9633_v16 = vpop.f32.mrf.mxu0  ;;  %v9635_v12 = vpop.f32.mrf.mxu1 }
 0x1d2   : > { %10014 = vst [vmem:[#allocation13_spill] sm:$0xff] %v9630_v56  ;;  %10015 = vst [vmem:[#allocation15_spill] sm:$0xff] %v9633_v16  ;;  %v9637_v8 = vadd.f32 %v3742_v0, %v3422_v13 }
 0x1d3   : > { %v6797_v37 = vpop.f32.mrf.mxu0  ;;  %v9639_v3 = vpop.f32.mrf.mxu1 }
 0x1d4   : > { %10016 = vst [vmem:[#allocation17_spill] sm:$0xff] %v9637_v8 }
 0x1d5   : > { %v3758_v57 = vpop.f32.mrf.mxu0  ;;  %v6749_v54 = vpop.f32.mrf.mxu1 }
 0x1d6   : > { %v3428_v31 = vadd.f32 %v6749_v54, %v9534_v1 }
 0x1d7   : > { %v9642_v60 = vpop.f32.mrf.mxu0  ;;  %v3371_v20 = vpop.f32.mrf.mxu1 }
 0x1d8   : > { %10017 = vst [vmem:[#allocation20_spill] sm:$0xff] %v9642_v60  ;;  %v9644_v62 = vadd.f32 %v6797_v37, %v3428_v31  ;;  %v3426_v10 = vadd.f32 %v3371_v20, %v9537_v36 }
 0x1d9   : > { %v9647_v55 = vpop.f32.mrf.mxu0  ;;  %v9649_v19 = vpop.f32.mrf.mxu1 }
 0x1da   : > { %10018 = vst [vmem:[#allocation2_spill] sm:$0xff] %v9644_v62  ;;  %v9651_v0 = vadd.f32 %v3758_v57, %v3426_v10  ;;  %v3405_v62 = vadd.f32 %v9565_v49, %v9468_v50 }
 0x1db   : > { %v6801_v13 = vpop.f32.mrf.mxu0  ;;  %v9653_v8 = vpop.f32.mrf.mxu1 }
 0x1dc   : > { %10019 = vst [vmem:[#allocation5_spill] sm:$0xff] %v9651_v0 }
 0x1dd   : > { %v3774_v56 = vpop.f32.mrf.mxu0  ;;  %v6753_v16 = vpop.f32.mrf.mxu1 }
 0x1de   : > { %v3432_v1 = vadd.f32 %v6753_v16, %v9546_v22 }
 0x1df   : > { %v9656_v54 = vpop.f32.mrf.mxu0  ;;  %v3387_v60 = vpop.f32.mrf.mxu1 }
 0x1e0   : > { %10020 = vst [vmem:[#allocation4_spill] sm:$0xff] %v9656_v54  ;;  %v9658_v37 = vadd.f32 %v6801_v13, %v3432_v1  ;;  %v3430_v36 = vadd.f32 %v3387_v60, %v9549_v29  ;;  %v3403_v29 = vadd.f32 %v9569_v18, %v9471_v4  ;;  %v9677_v60 = vld [vmem:[%s9846_s2] ss:$0 sm:$0xff]  ;;  %v3792_v1 = vadd.f32 %v9558_v33, %v3405_v62 }
 0x1e1   : > { %v9661_v20 = vpop.f32.mrf.mxu0  ;;  %v9663_v31 = vpop.f32.mrf.mxu1  ;;  %v9687_v4 = vld [vmem:[%s9847_s3] ss:$0 sm:$0xff] }
 0x1e2   : > { %10021 = vst [vmem:[#allocation6_spill] sm:$0xff] %v9658_v37  ;;  %10022 = vst [vmem:[#allocation8_spill] sm:$0xff] %v9661_v20  ;;  %v9665_v57 = vadd.f32 %v3774_v56, %v3430_v36  ;;  %v3790_v33 = vadd.f32 %v9563_v28, %v3403_v29  ;;  %v3411_v29 = vadd.f32 %v9597_v7, %v9495_v34 }
 0x1e3   : > { %v9667_v0 = vpop.f32.mrf.mxu1 }
 0x1e4   : > { %10023 = vst [vmem:[#allocation10_spill] sm:$0xff] %v9665_v57  ;;  %v6869_v10 = vpop.f32.mrf.mxu0  ;;  %10024 = vst [vmem:[#allocation11_spill] sm:$0xff] %v9667_v0 }
 0x1e5   : > { %v6821_v16 = vpop.f32.mrf.mxu1 }
 0x1e6   : > { %v4914_v22 = vpop.f32.mrf.mxu0  ;;  %v4545_v54 = vadd.f32 %v6821_v16, %v9560_v52  ;;  %v3409_v52 = vadd.f32 %v9579_v39, %v9480_v32 }
 0x1e7   : > { %v4416_v56 = vpop.f32.mrf.mxu1 }
 0x1e8   : > { %v6870_v13 = vpop.f32.mrf.mxu0  ;;  %v5043_v36 = vadd.f32 %v6869_v10, %v4545_v54  ;;  %v4543_v57 = vadd.f32 %v4416_v56, %v9567_v38  ;;  %v3407_v38 = vadd.f32 %v9583_v40, %v9483_v48  ;;  %v3796_v0 = vadd.f32 %v9572_v42, %v3409_v52 }
 0x1e9   : > { %v6822_v49 = vpop.f32.mrf.mxu1  ;;  %v3413_v48 = vadd.f32 %v9593_v14, %v9492_v47 }
 0x1ea   : > { %v4917_v50 = vpop.f32.mrf.mxu0  ;;  %v5082_v16 = vadd.f32 %v9677_v60, %v5043_v36  ;;  %v5041_v18 = vadd.f32 %v4914_v22, %v4543_v57  ;;  %v4546_v20 = vadd.f32 %v6822_v49, %v3792_v1  ;;  %v3794_v28 = vadd.f32 %v9577_v61, %v3407_v38 }
 0x1eb   : > { %v4419_v62 = vpop.f32.mrf.mxu1 }
 0x1ec   : > { %v6873_v37 = vpop.f32.mrf.mxu0  ;;  %v5044_v54 = vadd.f32 %v6870_v13, %v4546_v20  ;;  %v5153_v32 = vmul.f32 %v9687_v4, %v5082_v16  ;;  %v5080_v39 = vadd.f32 %v9677_v60, %v5041_v18  ;;  %v4544_v56 = vadd.f32 %v4419_v62, %v3790_v33 }
 0x1ed   : > { %v6825_v36 = vpop.f32.mrf.mxu1  ;;  %vm5114_vm6 = vcmp.ge.f32.partialorder %v5082_v16, 0.0 }
 0x1ee   : > { %v4930_v10 = vpop.f32.mrf.mxu0  ;;  %v5083_v57 = vadd.f32 %v9677_v60, %v5044_v54  ;;  %v5042_v40 = vadd.f32 %v4917_v50, %v4544_v56  ;;  %v4549_v20 = vadd.f32 %v6825_v36, %v9574_v24  ;;  %v5185_v52 = vsel %vm5114_vm6, %v5082_v16, %v5153_v32 }
 0x1ef   : > { %v4432_v13 = vpop.f32.mrf.mxu1  ;;  %v5151_v61 = vmul.f32 %v9687_v4, %v5080_v39  ;;  %vm5112_vm8 = vcmp.ge.f32.partialorder %v5080_v39, 0.0  ;;  %v3800_v32 = vadd.f32 %v9586_v58, %v3413_v48  ;;  %v3415_v48 = vadd.f32 %v9611_v30, %v9507_v17 }
 0x1f0   : > { %v6874_v22 = vpop.f32.mrf.mxu0  ;;  %vm5115_vm7 = vcmp.ge.f32.partialorder %v5083_v57, 0.0  ;;  %v5154_v42 = vmul.f32 %v9687_v4, %v5083_v57  ;;  %v4547_v1 = vadd.f32 %v4432_v13, %v9581_v41  ;;  %v5081_v18 = vadd.f32 %v9677_v60, %v5042_v40 }
 0x1f1   : > { %v5047_v47 = vadd.f32 %v6873_v37, %v4549_v20  ;;  %v6826_v14 = vpop.f32.mrf.mxu1  ;;  %v5183_v56 = vsel %vm5112_vm8, %v5080_v39, %v5151_v61 }
 0x1f2   : > { %v4933_v49 = vpop.f32.mrf.mxu0  ;;  %v5186_v34 = vsel %vm5115_vm7, %v5083_v57, %v5154_v42  ;;  %v5045_v24 = vadd.f32 %v4930_v10, %v4547_v1  ;;  %v4550_v7 = vadd.f32 %v6826_v14, %v3796_v0  ;;  %vm5113_vm9 = vcmp.ge.f32.partialorder %v5081_v18, 0.0 }
 0x1f3   : > { %v6164_v41 = vpack.c.bf16 %v5186_v34, %v5185_v52  ;;  %v5152_v16 = vmul.f32 %v9687_v4, %v5081_v18  ;;  %v5086_v33 = vadd.f32 %v9677_v60, %v5047_v47  ;;  %v4435_v38 = vpop.f32.mrf.mxu1  ;;  %v3798_v57 = vadd.f32 %v9591_v26, %v3411_v29 }
 0x1f4   : > { %v6877_v50 = vpop.f32.mrf.mxu0  ;;  %v5048_v37 = vadd.f32 %v6874_v22, %v4550_v7  ;;  %v4548_v62 = vadd.f32 %v4435_v38, %v3794_v28  ;;  %v5084_v10 = vadd.f32 %v9677_v60, %v5045_v24  ;;  %v3417_v22 = vadd.f32 %v9607_v35, %v9504_v2 }
 0x1f5   : > { %6236 = vst [vmem:[%s9710_s24 + $0x8] sm:$0xff] %v6164_v41   ;;  %v5184_v36 = vsel %vm5113_vm9, %v5081_v18, %v5152_v16  ;;  %v6829_v0 = vpop.f32.mrf.mxu1  ;;  %v5157_v20 = vmul.f32 %v9687_v4, %v5086_v33  ;;  %vm5118_vm10 = vcmp.ge.f32.partialorder %v5086_v33, 0.0 }
 0x1f6   : > { %v4946_v54 = vpop.f32.mrf.mxu0  ;;  %v6159_v40 = vpack.c.bf16 %v5184_v36, %v5183_v56  ;;  %v5087_v13 = vadd.f32 %v9677_v60, %v5048_v37  ;;  %v5046_v58 = vadd.f32 %v4933_v49, %v4548_v62  ;;  %v4553_v39 = vadd.f32 %v6829_v0, %v9588_v25 }
 0x1f7   : > { %v4448_v28 = vpop.f32.mrf.mxu1  ;;  %vm5116_vm12 = vcmp.ge.f32.partialorder %v5084_v10, 0.0  ;;  %v5155_v52 = vmul.f32 %v9687_v4, %v5084_v10  ;;  %v5189_v25 = vsel %vm5118_vm10, %v5086_v33, %v5157_v20  ;;  %v3804_v16 = vadd.f32 %v9600_v45, %v3417_v22 }
 0x1f8   : > { %v6878_v42 = vpop.f32.mrf.mxu0  ;;  %6160 = vst [vmem:[%s9710_s24] sm:$0xff] %v6159_v40   ;;  %vm5119_vm11 = vcmp.ge.f32.partialorder %v5087_v13, 0.0  ;;  %v5158_v26 = vmul.f32 %v9687_v4, %v5087_v13  ;;  %v4551_v29 = vadd.f32 %v4448_v28, %v9595_v51  ;;  %v5085_v2 = vadd.f32 %v9677_v60, %v5046_v58 }
 0x1f9   : > { %v5051_v35 = vadd.f32 %v6877_v50, %v4553_v39  ;;  %v6830_v49 = vpop.f32.mrf.mxu1  ;;  %v5187_v50 = vsel %vm5116_vm12, %v5084_v10, %v5155_v52  ;;  %v3802_v62 = vadd.f32 %v9605_v46, %v3415_v48  ;;  %v3421_v0 = vadd.f32 %v9621_v63, %v9516_v44 }
 0x1fa   : > { %v4949_v1 = vpop.f32.mrf.mxu0  ;;  %v5190_v61 = vsel %vm5119_vm11, %v5087_v13, %v5158_v26  ;;  %v5049_v18 = vadd.f32 %v4946_v54, %v4551_v29  ;;  %v4554_v47 = vadd.f32 %v6830_v49, %v3800_v32  ;;  %vm5117_vm13 = vcmp.ge.f32.partialorder %v5085_v2, 0.0 }
 0x1fb   : > { %v6174_v30 = vpack.c.bf16 %v5190_v61, %v5189_v25  ;;  %v5156_v14 = vmul.f32 %v9687_v4, %v5085_v2  ;;  %v5090_v51 = vadd.f32 %v9677_v60, %v5051_v35  ;;  %v4451_v34 = vpop.f32.mrf.mxu1  ;;  %v3419_v40 = vadd.f32 %v9625_v5, %v9519_v11 }
 0x1fc   : > { %v6881_v17 = vpop.f32.mrf.mxu0  ;;  %v5052_v24 = vadd.f32 %v6878_v42, %v4554_v47  ;;  %v4552_v7 = vadd.f32 %v4451_v34, %v3798_v57  ;;  %v5088_v38 = vadd.f32 %v9677_v60, %v5049_v18 }
 0x1fd   : > { %6238 = vst [vmem:[%s9710_s24 + $0x18] sm:$0xff] %v6174_v30   ;;  %v5188_v33 = vsel %vm5117_vm13, %v5085_v2, %v5156_v14  ;;  %v6833_v37 = vpop.f32.mrf.mxu1  ;;  %v5161_v32 = vmul.f32 %v9687_v4, %v5090_v51  ;;  %vm5122_vm14 = vcmp.ge.f32.partialorder %v5090_v51, 0.0  ;;  %v3808_v2 = vadd.f32 %v9614_v15, %v3421_v0 }
 0x1fe   : > { %v4962_v41 = vpop.f32.mrf.mxu0  ;;  %v6169_v54 = vpack.c.bf16 %v5188_v33, %v5187_v50  ;;  %v5091_v56 = vadd.f32 %v9677_v60, %v5052_v24  ;;  %v5050_v45 = vadd.f32 %v4949_v1, %v4552_v7  ;;  %v4557_v10 = vadd.f32 %v6833_v37, %v9602_v23 }
 0x1ff   : > { %v4464_v57 = vpop.f32.mrf.mxu1  ;;  %vm5120_vm0 = vcmp.ge.f32.partialorder %v5088_v38, 0.0  ;;  %v5159_v42 = vmul.f32 %v9687_v4, %v5088_v38  ;;  %v5193_v23 = vsel %vm5122_vm14, %v5090_v51, %v5161_v32  ;;  %v3806_v18 = vadd.f32 %v9619_v53, %v3419_v40 }
 0x200   : > { %v6882_v36 = vpop.f32.mrf.mxu0  ;;  %6237 = vst [vmem:[%s9710_s24 + $0x10] sm:$0xff] %v6169_v54   ;;  %vm5123_vm15 = vcmp.ge.f32.partialorder %v5091_v56, 0.0  ;;  %v5162_v46 = vmul.f32 %v9687_v4, %v5091_v56  ;;  %v4555_v20 = vadd.f32 %v4464_v57, %v9609_v9  ;;  %v5089_v44 = vadd.f32 %v9677_v60, %v5050_v45 }
 0x201   : > { %v5055_v63 = vadd.f32 %v6881_v17, %v4557_v10  ;;  %v6834_v22 = vpop.f32.mrf.mxu1  ;;  %v5191_v35 = vsel %vm5120_vm0, %v5088_v38, %v5159_v42  ;;  %v3425_v51 = vadd.f32 %v9635_v12, %v9528_v27  ;;  %v3423_v7 = vadd.f32 %v9639_v3, %v9531_v43 }
 0x202   : > { %v4965_v13 = vpop.f32.mrf.mxu0  ;;  %v5194_v58 = vsel %vm5123_vm15, %v5091_v56, %v5162_v46  ;;  %v5053_v39 = vadd.f32 %v4962_v41, %v4555_v20  ;;  %v4558_v28 = vadd.f32 %v6834_v22, %v3804_v16  ;;  %vm5121_vm1 = vcmp.ge.f32.partialorder %v5089_v44, 0.0  ;;  %v10025_v20 = vld [vmem:[#allocation15_spill] sm:$0xff] }
 0x203   : > { %v6184_v5 = vpack.c.bf16 %v5194_v58, %v5193_v23  ;;  %v5160_v48 = vmul.f32 %v9687_v4, %v5089_v44  ;;  %v5094_v9 = vadd.f32 %v9677_v60, %v5055_v63  ;;  %v4467_v26 = vpop.f32.mrf.mxu1  ;;  %v3812_v45 = vadd.f32 %v9628_v6, %v3425_v51  ;;  %v10026_v23 = vld [vmem:[#allocation3_spill] sm:$0xff] }
 0x204   : > { %v5056_v29 = vadd.f32 %v6882_v36, %v4558_v28  ;;  %v4556_v1 = vadd.f32 %v4467_v26, %v3802_v62  ;;  %v5092_v25 = vadd.f32 %v9677_v60, %v5053_v39  ;;  %v3429_v58 = vadd.f32 %v9649_v19, %v10026_v23  ;;  %v10027_v39 = vld [vmem:[#allocation13_spill] sm:$0xff]  ;;  %v10034_v23 = vld [vmem:[#allocation18_spill] sm:$0xff] }
 0x205   : > { %v6885_v11 = vpop.f32.mrf.mxu0  ;;  %6240 = vst [vmem:[%s9710_s24 + $0x28] sm:$0xff] %v6184_v5   ;;  %v5192_v49 = vsel %vm5121_vm1, %v5089_v44, %v5160_v48  ;;  %v6837_v61 = vpop.f32.mrf.mxu1  ;;  %v5165_v17 = vmul.f32 %v9687_v4, %v5094_v9  ;;  %vm5126_vm2 = vcmp.ge.f32.partialorder %v5094_v9, 0.0  ;;  %v10028_v5 = vld [vmem:[#allocation7_spill] sm:$0xff]  ;;  %v10029_v26 = vld [vmem:[#allocation17_spill] sm:$0xff] }
 0x206   : > { %v6179_v47 = vpack.c.bf16 %v5192_v49, %v5191_v35  ;;  %v5095_v30 = vadd.f32 %v9677_v60, %v5056_v29  ;;  %v5054_v15 = vadd.f32 %v4965_v13, %v4556_v1  ;;  %v4561_v34 = vadd.f32 %v6837_v61, %v9616_v21 }
 0x207   : > { %v4978_v52 = vpop.f32.mrf.mxu0  ;;  %v4480_v24 = vpop.f32.mrf.mxu1  ;;  %vm5124_vm4 = vcmp.ge.f32.partialorder %v5092_v25, 0.0  ;;  %v5163_v50 = vmul.f32 %v9687_v4, %v5092_v25  ;;  %v5197_v21 = vsel %vm5126_vm2, %v5094_v9, %v5165_v17  ;;  %v3810_v13 = vadd.f32 %v10025_v20, %v3423_v7 }
 0x208   : > { %6239 = vst [vmem:[%s9710_s24 + $0x20] sm:$0xff] %v6179_v47   ;;  %vm5127_vm3 = vcmp.ge.f32.partialorder %v5095_v30, 0.0  ;;  %v5166_v53 = vmul.f32 %v9687_v4, %v5095_v30  ;;  %v4559_v41 = vadd.f32 %v4480_v24, %v9623_v59  ;;  %v5093_v27 = vadd.f32 %v9677_v60, %v5054_v15 }
 0x209   : > { %v6886_v14 = vpop.f32.mrf.mxu0  ;;  %v5059_v12 = vadd.f32 %v6885_v11, %v4561_v34  ;;  %v6838_v33 = vpop.f32.mrf.mxu1  ;;  %v5195_v10 = vsel %vm5124_vm4, %v5092_v25, %v5163_v50  ;;  %v3427_v48 = vadd.f32 %v9653_v8, %v10028_v5 }
 0x20a   : > { %v5198_v38 = vsel %vm5127_vm3, %v5095_v30, %v5166_v53  ;;  %v5057_v37 = vadd.f32 %v4978_v52, %v4559_v41  ;;  %v4562_v62 = vadd.f32 %v6838_v33, %v3808_v2  ;;  %vm5125_vm5 = vcmp.ge.f32.partialorder %v5093_v27, 0.0 }
 0x20b   : > { %v4981_v16 = vpop.f32.mrf.mxu0  ;;  %v6194_v3 = vpack.c.bf16 %v5198_v38, %v5197_v21  ;;  %v5164_v54 = vmul.f32 %v9687_v4, %v5093_v27  ;;  %v5098_v59 = vadd.f32 %v9677_v60, %v5059_v12  ;;  %v4483_v32 = vpop.f32.mrf.mxu1  ;;  %v3814_v38 = vadd.f32 %v9647_v55, %v3427_v48 }
 0x20c   : > { %v5060_v56 = vadd.f32 %v6886_v14, %v4562_v62  ;;  %v4560_v36 = vadd.f32 %v4483_v32, %v3806_v18  ;;  %v5096_v40 = vadd.f32 %v9677_v60, %v5057_v37  ;;  %v10031_v62 = vld [vmem:[#allocation2_spill] sm:$0xff] }
 0x20d   : > { %v6889_v43 = vpop.f32.mrf.mxu0  ;;  %6242 = vst [vmem:[%s9710_s24 + $0x38] sm:$0xff] %v6194_v3   ;;  %v5196_v57 = vsel %vm5125_vm5, %v5093_v27, %v5164_v54  ;;  %v6841_v46 = vpop.f32.mrf.mxu1  ;;  %v5169_v44 = vmul.f32 %v9687_v4, %v5098_v59  ;;  %vm5130_vm6 = vcmp.ge.f32.partialorder %v5098_v59, 0.0  ;;  %v10032_v54 = vld [vmem:[#allocation9_spill] sm:$0xff] }
 0x20e   : > { %v6189_v42 = vpack.c.bf16 %v5196_v57, %v5195_v10  ;;  %v5099_v63 = vadd.f32 %v9677_v60, %v5060_v56  ;;  %v5058_v6 = vadd.f32 %v4981_v16, %v4560_v36  ;;  %v4565_v28 = vadd.f32 %v6841_v46, %v10027_v39  ;;  %v10030_v16 = vld [vmem:[#allocation20_spill] sm:$0xff]  ;;  %v10033_v56 = vld [vmem:[#allocation5_spill] sm:$0xff] }
 0x20f   : > { %v4994_v0 = vpop.f32.mrf.mxu0  ;;  %v4496_v11 = vpop.f32.mrf.mxu1  ;;  %vm5128_vm8 = vcmp.ge.f32.partialorder %v5096_v40, 0.0  ;;  %v5167_v52 = vmul.f32 %v9687_v4, %v5096_v40  ;;  %v5201_v49 = vsel %vm5130_vm6, %v5098_v59, %v5169_v44  ;;  %v3816_v50 = vadd.f32 %v10030_v16, %v3429_v58  ;;  %v10035_v58 = vld [vmem:[#allocation11_spill] sm:$0xff] }
 0x210   : > { %6241 = vst [vmem:[%s9710_s24 + $0x30] sm:$0xff] %v6189_v42   ;;  %vm5131_vm7 = vcmp.ge.f32.partialorder %v5099_v63, 0.0  ;;  %v5170_v9 = vmul.f32 %v9687_v4, %v5099_v63  ;;  %v4563_v29 = vadd.f32 %v4496_v11, %v10029_v26  ;;  %v5097_v19 = vadd.f32 %v9677_v60, %v5058_v6 }
 0x211   : > { %v6890_v22 = vpop.f32.mrf.mxu0  ;;  %v5063_v2 = vadd.f32 %v6889_v43, %v4565_v28  ;;  %v6842_v35 = vpop.f32.mrf.mxu1  ;;  %v5199_v24 = vsel %vm5128_vm8, %v5096_v40, %v5167_v52  ;;  %v3433_v59 = vadd.f32 %v9663_v31, %v10032_v54  ;;  %v3431_v6 = vadd.f32 %v10035_v58, %v10034_v23 }
 0x212   : > { %v5202_v25 = vsel %vm5131_vm7, %v5099_v63, %v5170_v9  ;;  %v5061_v61 = vadd.f32 %v4994_v0, %v4563_v29  ;;  %v4566_v18 = vadd.f32 %v6842_v35, %v3812_v45  ;;  %vm5129_vm9 = vcmp.ge.f32.partialorder %v5097_v19, 0.0 }
 0x213   : > { %v4997_v1 = vpop.f32.mrf.mxu0  ;;  %v6204_v47 = vpack.c.bf16 %v5202_v25, %v5201_v49  ;;  %v5168_v17 = vmul.f32 %v9687_v4, %v5097_v19  ;;  %v5102_v30 = vadd.f32 %v9677_v60, %v5063_v2  ;;  %v4499_v14 = vpop.f32.mrf.mxu1  ;;  %v10037_v49 = vld [vmem:[#allocation6_spill] sm:$0xff] }
 0x214   : > { %v5064_v51 = vadd.f32 %v6890_v22, %v4566_v18  ;;  %v4564_v15 = vadd.f32 %v4499_v14, %v3810_v13  ;;  %v5100_v53 = vadd.f32 %v9677_v60, %v5061_v61  ;;  %v10038_v18 = vld [vmem:[#allocation8_spill] sm:$0xff] }
 0x215   : > { %v6893_v8 = vpop.f32.mrf.mxu0  ;;  %6244 = vst [vmem:[%s9710_s24 + $0x48] sm:$0xff] %v6204_v47   ;;  %v5200_v7 = vsel %vm5129_vm9, %v5097_v19, %v5168_v17  ;;  %v6845_v41 = vpop.f32.mrf.mxu1  ;;  %v5173_v12 = vmul.f32 %v9687_v4, %v5102_v30  ;;  %vm5134_vm10 = vcmp.ge.f32.partialorder %v5102_v30, 0.0  ;;  %v10036_v19 = vld [vmem:[#allocation4_spill] sm:$0xff]  ;;  %v10039_v17 = vld [vmem:[#allocation10_spill] sm:$0xff] }
 0x216   : > { %v6199_v27 = vpack.c.bf16 %v5200_v7, %v5199_v24  ;;  %v5103_v33 = vadd.f32 %v9677_v60, %v5064_v51  ;;  %v5062_v37 = vadd.f32 %v4997_v1, %v4564_v15  ;;  %v4569_v43 = vadd.f32 %v6845_v41, %v10031_v62 }
 0x217   : > { %v5010_v34 = vpop.f32.mrf.mxu0  ;;  %v4512_v3 = vpop.f32.mrf.mxu1  ;;  %vm5132_vm12 = vcmp.ge.f32.partialorder %v5100_v53, 0.0  ;;  %v5171_v45 = vmul.f32 %v9687_v4, %v5100_v53  ;;  %v5205_v40 = vsel %vm5134_vm10, %v5102_v30, %v5173_v12  ;;  %v3820_v2 = vadd.f32 %v10036_v19, %v3433_v59 }
 0x218   : > { %6243 = vst [vmem:[%s9710_s24 + $0x40] sm:$0xff] %v6199_v27   ;;  %vm5135_vm11 = vcmp.ge.f32.partialorder %v5103_v33, 0.0  ;;  %v5174_v32 = vmul.f32 %v9687_v4, %v5103_v33  ;;  %v4567_v36 = vadd.f32 %v4512_v3, %v10033_v56  ;;  %v5101_v55 = vadd.f32 %v9677_v60, %v5062_v37 }
 0x219   : > { %v6894_v21 = vpop.f32.mrf.mxu0  ;;  %v5067_v10 = vadd.f32 %v6893_v8, %v4569_v43  ;;  %v6846_v57 = vpop.f32.mrf.mxu1  ;;  %v5203_v11 = vsel %vm5132_vm12, %v5100_v53, %v5171_v45  ;;  %v3818_v8 = vadd.f32 %v10038_v18, %v3431_v6 }
 0x21a   : > { %v5206_v46 = vsel %vm5135_vm11, %v5103_v33, %v5174_v32  ;;  %v5065_v20 = vadd.f32 %v5010_v34, %v4567_v36  ;;  %v4570_v13 = vadd.f32 %v6846_v57, %v3816_v50  ;;  %vm5133_vm13 = vcmp.ge.f32.partialorder %v5101_v55, 0.0 }
 0x21b   : > { %v5013_v0 = vpop.f32.mrf.mxu0  ;;  %v6214_v42 = vpack.c.bf16 %v5206_v46, %v5205_v40  ;;  %v5172_v44 = vmul.f32 %v9687_v4, %v5101_v55  ;;  %v5106_v63 = vadd.f32 %v9677_v60, %v5067_v10  ;;  %v4515_v22 = vpop.f32.mrf.mxu1 }
 0x21c   : > { %v5068_v39 = vadd.f32 %v6894_v21, %v4570_v13  ;;  %v4568_v28 = vadd.f32 %v4515_v22, %v3814_v38  ;;  %v5104_v48 = vadd.f32 %v9677_v60, %v5065_v20 }
 0x21d   : > { %v6897_v31 = vpop.f32.mrf.mxu0  ;;  %6246 = vst [vmem:[%s9710_s24 + $0x58] sm:$0xff] %v6214_v42   ;;  %v5204_v5 = vsel %vm5133_vm13, %v5101_v55, %v5172_v44  ;;  %v6849_v9 = vpop.f32.mrf.mxu1  ;;  %v5177_v29 = vmul.f32 %v9687_v4, %v5106_v63  ;;  %vm5138_vm14 = vcmp.ge.f32.partialorder %v5106_v63, 0.0 }
 0x21e   : > { %v6209_v26 = vpack.c.bf16 %v5204_v5, %v5203_v11  ;;  %v5107_v1 = vadd.f32 %v9677_v60, %v5068_v39  ;;  %v5066_v35 = vadd.f32 %v5013_v0, %v4568_v28  ;;  %v4573_v25 = vadd.f32 %v6849_v9, %v10037_v49 }
 0x21f   : > { %v5026_v52 = vpop.f32.mrf.mxu0  ;;  %v4528_v61 = vpop.f32.mrf.mxu1  ;;  %vm5136_vm0 = vcmp.ge.f32.partialorder %v5104_v48, 0.0  ;;  %v5175_v14 = vmul.f32 %v9687_v4, %v5104_v48  ;;  %v5209_v24 = vsel %vm5138_vm14, %v5106_v63, %v5177_v29 }
 0x220   : > { %6245 = vst [vmem:[%s9710_s24 + $0x50] sm:$0xff] %v6209_v26   ;;  %vm5139_vm15 = vcmp.ge.f32.partialorder %v5107_v1, 0.0  ;;  %v5178_v47 = vmul.f32 %v9687_v4, %v5107_v1  ;;  %v4571_v30 = vadd.f32 %v4528_v61, %v10039_v17  ;;  %v5105_v51 = vadd.f32 %v9677_v60, %v5066_v35 }
 0x221   : > { %v5071_v15 = vadd.f32 %v6897_v31, %v4573_v25  ;;  %v6850_v34 = vpop.f32.mrf.mxu1  ;;  %v6898_v16 = vpop.f32.mrf.mxu0  ;;  %v5207_v37 = vsel %vm5136_vm0, %v5104_v48, %v5175_v14 }
 0x222   : > { %v5210_v7 = vsel %vm5139_vm15, %v5107_v1, %v5178_v47  ;;  %v5069_v53 = vadd.f32 %v5026_v52, %v4571_v30  ;;  %v4574_v41 = vadd.f32 %v6850_v34, %v3820_v2  ;;  %vm5137_vm1 = vcmp.ge.f32.partialorder %v5105_v51, 0.0 }
 0x223   : > { %v6224_v50 = vpack.c.bf16 %v5210_v7, %v5209_v24  ;;  %v5176_v27 = vmul.f32 %v9687_v4, %v5105_v51  ;;  %v5110_v12 = vadd.f32 %v9677_v60, %v5071_v15  ;;  %v4531_v33 = vpop.f32.mrf.mxu1  ;;  %v5029_v32 = vpop.f32.mrf.mxu0 }
 0x224   : > { %v5072_v21 = vadd.f32 %v6898_v16, %v4574_v41  ;;  %v4572_v38 = vadd.f32 %v4531_v33, %v3818_v8  ;;  %v5108_v43 = vadd.f32 %v9677_v60, %v5069_v53 }
 0x225   : > { %6248 = vst [vmem:[%s9710_s24 + $0x68] sm:$0xff] %v6224_v50   ;;  %v5208_v62 = vsel %vm5137_vm1, %v5105_v51, %v5176_v27  ;;  %v5181_v54 = vmul.f32 %v9687_v4, %v5110_v12  ;;  %vm5142_vm2 = vcmp.ge.f32.partialorder %v5110_v12, 0.0 }
 0x226   : > { %v6219_v3 = vpack.c.bf16 %v5208_v62, %v5207_v37  ;;  %v5111_v59 = vadd.f32 %v9677_v60, %v5072_v21  ;;  %v5070_v56 = vadd.f32 %v5029_v32, %v4572_v38  ;;  %v5179_v0 = vmul.f32 %v9687_v4, %v5108_v43 }
 0x227   : > { %v5213_v55 = vsel %vm5142_vm2, %v5110_v12, %v5181_v54  ;;  %vm5140_vm4 = vcmp.ge.f32.partialorder %v5108_v43, 0.0 }
 0x228   : > { %6247 = vst [vmem:[%s9710_s24 + $0x60] sm:$0xff] %v6219_v3   ;;  %vm5143_vm3 = vcmp.ge.f32.partialorder %v5111_v59, 0.0  ;;  %v5182_v36 = vmul.f32 %v9687_v4, %v5111_v59  ;;  %v5109_v45 = vadd.f32 %v9677_v60, %v5070_v56  ;;  %v5211_v46 = vsel %vm5140_vm4, %v5108_v43, %v5179_v0 }
 0x22a   : > { %v5214_v10 = vsel %vm5143_vm3, %v5111_v59, %v5182_v36  ;;  %vm5141_vm5 = vcmp.ge.f32.partialorder %v5109_v45, 0.0  ;;  %v5180_v40 = vmul.f32 %v9687_v4, %v5109_v45 }
 0x22b   : > { %v6234_v57 = vpack.c.bf16 %v5214_v10, %v5213_v55 }
 0x22c   : > { %v5212_v20 = vsel %vm5141_vm5, %v5109_v45, %v5180_v40 }
 0x22d   : > { %6250 = vst [vmem:[%s9710_s24 + $0x78] sm:$0xff] %v6234_v57   ;;  %v6229_v13 = vpack.c.bf16 %v5212_v20, %v5211_v46 }
 0x22f   : > { %6249 = vst [vmem:[%s9710_s24 + $0x70] sm:$0xff] %v6229_v13  }
 0x230 PF: > { %s14_s17 = sadd.s32 1, %s7091_s17   ;;  %s10040_s15 = smov %s7087_s16 }
 0x231   : > { %p11_p5 = scmp.ge.s32.totalorder %s14_s17, 4   ;;  %s10041_s16 = smov %s10043_s18 }
 0x233   :  { %13 = sbr.rel (!%p11_p5) target bundleno = 2 (0x2), region = 85 }

// kernel: basic_block_ir_forward.5
= control target key start
LH: loop header
LB: loop body
LE: loop exit
PB: predicated region body
PF: predicated region fallthrough
CT: control target
= control target key end

     0   :  { %s3162_s15 = smov 0   ;;  %s3164_s16 = smov 0   ;;  %s3599_s0 = inlined_call_operand.vmem [shape: bf16[2,36,9,128], index: 0, kind: input, shape index: {}]   ;;  %s3600_s1 = inlined_call_operand.vmem [shape: bf16[9,128,128], index: 1, kind: input, shape index: {}]   ;;  %s3601_s2 = inlined_call_operand.vmem [shape: f32[1,128], index: 2, kind: input, shape index: {}]   ;;  %s3602_s3 = inlined_call_operand.vmem [shape: bf16[2,64,128], index: 3, kind: input, shape index: {}]   ;;  %s3603_s4 = inlined_call_operand.vmem [shape: f32[2,64,128], index: 4, kind: output, shape index: {}]  }
   0x1   :  { %s3166_s17 = smov 0  }
   0x2 LB: > { %s26_s18 = sadd.s32 1, %s3131_s16  ;;  %p2314_p0 = scmp.ge.s32.totalorder %s3135_s17, 1  ;;  %s3135_s17 = sphi %s3166_s17, %s14_s17   ;;  %s3131_s16 = sphi %s3164_s16, %s3621_s16   ;;  %s3127_s15 = sphi %s3162_s15, %s3620_s15  }
   0x3   : > { %p28_p1 = scmp.ge.s32.totalorder %s26_s18, 2  ;;  %p208_p2 = scmp.lt.s32.totalorder %s3135_s17, 3 }
   0x5   : > { %s3623_s18 = smov (%p28_p1, %s26_s18), 0  ;;  %p209_p3 = pnand %p2314_p0, %p208_p2 }
   0x7   : > { %212 = sbr.rel (%p209_p3) target bundleno = 380 (0x17c), region = 36 }
   0xc   : > { %v3017_v0 = vld [vmem:[%s3600_s1 + $0x78] sm:$0xff]   ;;  %p252_p4 = scmp.lt.s32.totalorder %s3127_s15, 1  ;;  %v3019_v2 = vld [vmem:[%s3600_s1 + $0x70] sm:$0xff]   ;;  %v3021_v4 = vld [vmem:[%s3600_s1 + $0x68] sm:$0xff]   ;;  %vm621_vm0 = vsmask.f32 3328 }
   0xd   : > { %v3018_v1 = vld [vmem:[%s3600_s1 + $0x38] sm:$0xff]   ;;  %2760 = vmatprep.subr.bf16.mxu0 %v3017_v0  ;;  %v3020_v3 = vld [vmem:[%s3600_s1 + $0x30] sm:$0xff]   ;;  %v3022_v5 = vld [vmem:[%s3600_s1 + $0x28] sm:$0xff]   ;;  %vm622_vm1 = vsmask.f32 7440 }
   0xe   : > { %2784 = vmatprep.subr.bf16.mxu1 %v3018_v1  ;;  %2761 = vmatpush3.bf16.msra.mxu0 %v3017_v0  ;;  %s3625_s15 = smov (!%p252_p4, %s3127_s15), 1  ;;  %v3023_v6 = vld [vmem:[%s3600_s1 + $0x60] sm:$0xff]   ;;  %v3025_v8 = vld [vmem:[%s3600_s1 + $0x58] sm:$0xff]   ;;  %v3027_v10 = vld [vmem:[%s3600_s1 + $0x50] sm:$0xff]  }
   0xf   : > { %2785 = vmatpush3.bf16.msra.mxu1 %v3018_v1  ;;  %2762 = vmatprep.subr.bf16.mxu0 %v3019_v2  ;;  %v3024_v7 = vld [vmem:[%s3600_s1 + $0x20] sm:$0xff]   ;;  %s2992_s9 = smul.u32 288, %s3625_s15  ;;  %v3026_v9 = vld [vmem:[%s3600_s1 + $0x18] sm:$0xff]   ;;  %v3028_v11 = vld [vmem:[%s3600_s1 + $0x10] sm:$0xff]   ;;  %s2631_s13 = sshll.u32 %s3625_s15, 5 }
  0x10   : > { %2786 = vmatprep.subr.bf16.mxu1 %v3020_v3  ;;  %v3029_v14 = vld [vmem:[%s3600_s1 + $0x48] sm:$0xff]   ;;  %v3031_v16 = vld [vmem:[%s3600_s1 + $0x40] sm:$0xff]   ;;  %v3037_v19 = vld [vmem:[%s3600_s1 + $0xb8] sm:$0xff]   ;;  %s271_s21 = scalar_lea.vmem %s3602_s3, %s2631_s13  ;;  %s2632_s24 = sshll.u32 %s3625_s15, 6 }
  0x11   : > { %s3216_s20 = scalar_lea.vmem %s3599_s0, %s2992_s9  ;;  %v3030_v15 = vld [vmem:[%s3600_s1 + $0x8] sm:$0xff]   ;;  %v3032_v17 = vld [vmem:[%s3600_s1] sm:$0xff]   ;;  %v3038_v20 = vld [vmem:[%s3600_s1 + $0xf8] sm:$0xff]   ;;  %s3577_s15 = scalar_lea.vmem %s3603_s4, %s2632_s24 }
  0x12   : > { %2763 = vmatpush3.bf16.msra.mxu0 %v3019_v2  ;;  %v3033_v12 = vld [vmem:[%s3216_s20 + $0x48] ss:$8 sps:$4 sm:$0xff]   ;;  %v3035_v18 = vld [vmem:[%s3216_s20 + $0x58] ss:$8 sps:$4 sm:$0xff]   ;;  %v606_v33 = vld [vmem:[%s3216_s20 + $0x4] sm:$0x1] }
  0x13   : > { %2787 = vmatpush3.bf16.msra.mxu1 %v3020_v3  ;;  %2764 = vmatprep.subr.bf16.mxu0 %v3021_v4  ;;  %v3034_v13 = vld [vmem:[%s3216_s20] ss:$8 sps:$4 sm:$0xff]   ;;  %v3036_v21 = vld [vmem:[%s3216_s20 + $0x10] ss:$8 sps:$4 sm:$0xff]   ;;  %v608_v35 = vld [vmem:[%s3216_s20 + $0xc] sm:$0x1] }
  0x14   : > { %2788 = vmatprep.subr.bf16.mxu1 %v3022_v5  ;;  %2776 = vmatprep.mubr.bf16.mxu0 %v3033_v12  ;;  %v3039_v22 = vld [vmem:[%s3600_s1 + $0xb0] sm:$0xff]   ;;  %v3048_v25 = vld [vmem:[%s3216_s20 + $0x20] ss:$8 sps:$4 sm:$0xff]   ;;  %v3045_v36 = vld [vmem:[%s3600_s1 + $0x98] sm:$0xff]   ;;  %v634_v39 = vshll.u32 %v606_v33, 16  ;;  %v648_v42 = vshll.u32 %v608_v35, 16 }
  0x15   : > { %2800 = vmatprep.mubr.bf16.mxu1 %v3034_v13  ;;  %v3040_v23 = vld [vmem:[%s3600_s1 + $0xf0] sm:$0xff]   ;;  %v3041_v26 = vld [vmem:[%s3600_s1 + $0xa8] sm:$0xff]   ;;  %v3043_v28 = vld [vmem:[%s3600_s1 + $0xa0] sm:$0xff]  }
  0x16   : > { %2765 = vmatpush3.bf16.msra.mxu0 %v3021_v4  ;;  %v3047_v24 = vld [vmem:[%s3216_s20 + $0x68] ss:$8 sps:$4 sm:$0xff]   ;;  %v3049_v29 = vld [vmem:[%s3216_s20 + $0x78] ss:$8 sps:$4 sm:$0xff]   ;;  %v636_v49 = vrot.slane %v634_v39, 5  ;;  %vm3288_vm2 = vmor %vm621_vm0, %vm622_vm1  ;;  %v650_v61 = vrot.slane %v648_v42, 5 }
  0x17   : > { %2789 = vmatpush3.bf16.msra.mxu1 %v3022_v5  ;;  %2766 = vmatprep.subr.bf16.mxu0 %v3023_v6  ;;  %v3042_v27 = vld [vmem:[%s3600_s1 + $0xe8] sm:$0xff]   ;;  %v3044_v30 = vld [vmem:[%s3600_s1 + $0xe0] sm:$0xff]   ;;  %v3050_v31 = vld [vmem:[%s3216_s20 + $0x30] ss:$8 sps:$4 sm:$0xff]  }
  0x18   : > { %2790 = vmatprep.subr.bf16.mxu1 %v3024_v7  ;;  %v605_v32 = vld [vmem:[%s3216_s20] sm:$0xf]  ;;  %v607_v34 = vld [vmem:[%s3216_s20 + $0x8] sm:$0xf]  ;;  %v3057_v43 = vld [vmem:[%s3216_s20 + $0x90] ss:$8 sps:$4 sm:$0xff]  }
  0x19   : > { %v625_v37 = vshrl.u32 %v605_v32, 16  ;;  %v628_v38 = vshll.u32 %v605_v32, 16  ;;  %v639_v40 = vshrl.u32 %v607_v34, 16  ;;  %v642_v41 = vshll.u32 %v607_v34, 16  ;;  %v3046_v44 = vld [vmem:[%s3600_s1 + $0xd8] sm:$0xff]   ;;  %v3051_v58 = vld [vmem:[%s3600_s1 + $0x90] sm:$0xff]  }
  0x1a   : > { %2767 = vmatpush3.bf16.msra.mxu0 %v3023_v6  ;;  %v609_v48 = vld [vmem:[%s3216_s20 + $0x10] sm:$0xf]  ;;  %v610_v51 = vld [vmem:[%s3216_s20 + $0x14] sm:$0x1]  ;;  %v611_v52 = vld [vmem:[%s3216_s20 + $0x18] sm:$0xf] }
  0x1b   : > { %2791 = vmatpush3.bf16.msra.mxu1 %v3024_v7  ;;  %2768 = vmatprep.subr.bf16.mxu0 %v3025_v8  ;;  %v627_v45 = vrot.slane %v625_v37, 4  ;;  %v630_v46 = vrot.slane %v628_v38, 5  ;;  %v641_v47 = vrot.slane %v639_v40, 4  ;;  %v644_v50 = vrot.slane %v642_v41, 5  ;;  %v612_v54 = vld [vmem:[%s3216_s20 + $0x1c] sm:$0x1] }
  0x1c   : > { %2792 = vmatprep.subr.bf16.mxu1 %v3026_v9  ;;  %v653_v55 = vshrl.u32 %v609_v48, 16  ;;  %v656_v56 = vshll.u32 %v609_v48, 16  ;;  %v662_v57 = vshll.u32 %v610_v51, 16  ;;  %v667_v62 = vshrl.u32 %v611_v52, 16  ;;  %v3052_v4 = vld [vmem:[%s3600_s1 + $0xd0] sm:$0xff]   ;;  %v3059_v51 = vld [vmem:[%s3600_s1 + $0x138] sm:$0xff]  }
  0x1d   : > { %v631_v53 = vor.u32 %v630_v46, %v627_v45  ;;  %v645_v60 = vor.u32 %v644_v50, %v641_v47  ;;  %v670_v63 = vshll.u32 %v611_v52, 16  ;;  %v676_v3 = vshll.u32 %v612_v54, 16  ;;  %v619_v40 = vld [vmem:[%s3216_s20 + $0x38] sm:$0xf] }
  0x1e   : > { %2769 = vmatpush3.bf16.msra.mxu0 %v3025_v8  ;;  %v655_v1 = vrot.slane %v653_v55, 4  ;;  %v658_v2 = vrot.slane %v656_v56, 5  ;;  %v3295_v6 = vrot.slane %v662_v57, 5  ;;  %v669_v7 = vrot.slane %v667_v62, 4  ;;  %v3060_v55 = vld [vmem:[%s3600_s1 + $0x178] sm:$0xff]  }
  0x1f   : > { %2793 = vmatpush3.bf16.msra.mxu1 %v3026_v9  ;;  %2770 = vmatprep.subr.bf16.mxu0 %v3027_v10  ;;  %v632_v0 = vrot.slane %v631_v53, 4  ;;  %v646_v5 = vrot.slane %v645_v60, 4  ;;  %v672_v8 = vrot.slane %v670_v63, 5  ;;  %v3053_v9 = vld [vmem:[%s3600_s1 + $0x88] sm:$0xff]   ;;  %v726_v50 = vshll.u32 %v619_v40, 16 }
  0x20   : > { %2794 = vmatprep.subr.bf16.mxu1 %v3028_v11 }
  0x21   : > { %v651_v12 = vsel %vm3288_vm2, %v646_v5, %v650_v61  ;;  %v673_v13 = vor.u32 %v672_v8, %v669_v7  ;;  %v3058_v61 = vld [vmem:[%s3216_s20 + $0xa0] ss:$8 sps:$4 sm:$0xff]   ;;  %v3062_v7 = vld [vmem:[%s3600_s1 + $0x170] sm:$0xff]  }
  0x22   : > { %2771 = vmatpush3.bf16.msra.mxu0 %v3027_v10  ;;  %v637_v10 = vsel %vm3288_vm2, %v632_v0, %v636_v49  ;;  %v723_v49 = vshrl.u32 %v619_v40, 16  ;;  %v2473_v40 = vld [vmem:[%s3216_s20 + $0xa4] sm:$0x1] }
  0x23   : > { %2795 = vmatpush3.bf16.msra.mxu1 %v3028_v11  ;;  %2772 = vmatprep.subr.bf16.mxu0 %v3029_v14  ;;  %v659_v11 = vor.u32 %v658_v2, %v655_v1 }
  0x24   : > { %2796 = vmatprep.subr.bf16.mxu1 %v3030_v15  ;;  %v725_v57 = vrot.slane %v723_v49, 4 }
  0x26   : > { %2773 = vmatpush3.bf16.msra.mxu0 %v3029_v14  ;;  %v2384_v14 = vcombine.low %v637_v10, %v651_v12  ;;  %v3063_v10 = vld [vmem:[%s3600_s1 + $0x128] sm:$0xff]  }
  0x27   : > { %2797 = vmatpush3.bf16.msra.mxu1 %v3030_v15  ;;  %2774 = vmatprep.subr.bf16.mxu0 %v3031_v16  ;;  %v660_v15 = vrot.slane %v659_v11, 4 }
  0x28   : > { %2798 = vmatprep.subr.bf16.mxu1 %v3032_v17 }
  0x2a   : > { %2775 = vmatpush3.bf16.msra.mxu0 %v3031_v16  ;;  %v678_v16 = vrot.slane %v676_v3, 5 }
  0x2b   : > { %2799 = vmatpush3.bf16.msra.mxu1 %v3032_v17  ;;  %2808 = vmatprep.subr.bf16.mxu0 %v3037_v19  ;;  %v3054_v17 = vld [vmem:[%s3600_s1 + $0xc8] sm:$0xff]  }
  0x2c   : > { %2832 = vmatprep.subr.bf16.mxu1 %v3038_v20 }
  0x2d   : > { %2777 = vmatmul.mubr.bf16.vlgmr.msra.gmra.mxu0 %v3035_v18  ;;  %v674_v18 = vrot.slane %v673_v13, 4  ;;  %v3064_v13 = vld [vmem:[%s3600_s1 + $0x168] sm:$0xff]  }
  0x2e   : > { %2801 = vmatmul.mubr.bf16.vlgmr.msra.gmra.mxu1 %v3036_v21  ;;  %2809 = vmatpush3.bf16.msra.mxu0 %v3037_v19  ;;  %v613_v19 = vld [vmem:[%s3216_s20 + $0x20] sm:$0xf]  ;;  %v615_v21 = vld [vmem:[%s3216_s20 + $0x28] sm:$0xf] }
  0x2f   : > { %2833 = vmatpush3.bf16.msra.mxu1 %v3038_v20  ;;  %2810 = vmatprep.subr.bf16.mxu0 %v3039_v22  ;;  %v614_v20 = vld [vmem:[%s3216_s20 + $0x24] sm:$0x1]  ;;  %v679_v32 = vsel %vm3288_vm2, %v674_v18, %v678_v16  ;;  %v3069_v18 = vld [vmem:[%s3600_s1 + $0x118] sm:$0xff]  }
  0x30   : > { %2834 = vmatprep.subr.bf16.mxu1 %v3040_v23  ;;  %2780 = vmatprep.mubr.bf16.mxu0 %v3047_v24  ;;  %v684_v24 = vshll.u32 %v613_v19, 16  ;;  %v3067_v16 = vld [vmem:[%s3600_s1 + $0x120] sm:$0xff]  }
  0x31   : > { %2804 = vmatprep.mubr.bf16.mxu1 %v3048_v25  ;;  %v3055_v25 = vld [vmem:[%s3600_s1 + $0x80] sm:$0xff]  }
  0x32   : > { %2811 = vmatpush3.bf16.msra.mxu0 %v3039_v22  ;;  %v616_v22 = vld [vmem:[%s3216_s20 + $0x2c] sm:$0x1]  ;;  %v686_v34 = vrot.slane %v684_v24, 5 }
  0x33   : > { %2835 = vmatpush3.bf16.msra.mxu1 %v3040_v23  ;;  %2812 = vmatprep.subr.bf16.mxu0 %v3041_v26  ;;  %v681_v23 = vshrl.u32 %v613_v19, 16  ;;  %v704_v35 = vshll.u32 %v616_v22, 16  ;;  %v3077_v19 = vld [vmem:[%s3216_s20 + $0xd8] ss:$8 sps:$4 sm:$0xff]  }
  0x34   : > { %2836 = vmatprep.subr.bf16.mxu1 %v3042_v27  ;;  %v2470_v22 = vld [vmem:[%s3216_s20 + $0x98] sm:$0xf] }
  0x35   : > { %2781 = vmatmul.mubr.bf16.gmra.mxu0 %v3049_v29  ;;  %v698_v29 = vshll.u32 %v615_v21, 16  ;;  %v683_v33 = vrot.slane %v681_v23, 4  ;;  %v2471_v23 = vld [vmem:[%s3216_s20 + $0x9c] sm:$0x1] }
  0x36   : > { %2813 = vmatpush3.bf16.msra.mxu0 %v3041_v26  ;;  %2805 = vmatmul.mubr.bf16.gmra.mxu1 %v3050_v31  ;;  %v665_v26 = vsel %vm3288_vm2, %v660_v15, %v3295_v6  ;;  %v3056_v31 = vld [vmem:[%s3600_s1 + $0xc0] sm:$0xff]   ;;  %v3065_v6 = vld [vmem:[%s3216_s20 + $0xb0] ss:$8 sps:$4 sm:$0xff]  }
  0x37   : > { %2837 = vmatpush3.bf16.msra.mxu1 %v3042_v27  ;;  %2814 = vmatprep.subr.bf16.mxu0 %v3043_v28  ;;  %v690_v27 = vshll.u32 %v614_v20, 16  ;;  %v700_v39 = vrot.slane %v698_v29, 5  ;;  %v687_v42 = vor.u32 %v686_v34, %v683_v33  ;;  %v2385_v60 = vcombine.low %v665_v26, %v679_v32  ;;  %v3066_v15 = vld [vmem:[%s3216_s20 + $0xc0] ss:$8 sps:$4 sm:$0xff]   ;;  %v2468_v20 = vld [vmem:[%s3216_s20 + $0x90] sm:$0xf] }
  0x38   : > { %2838 = vmatprep.subr.bf16.mxu1 %v3044_v30  ;;  %2848 = vmatprep.mubr.bf16.mxu1 %v3057_v43  ;;  %v706_v43 = vrot.slane %v704_v35, 5  ;;  %v1249_v24 = vshrl.u32 %v2468_v20, 16  ;;  %v1272_v29 = vshll.u32 %v2471_v23, 16  ;;  %v3071_v33 = vld [vmem:[%s3600_s1 + $0x110] sm:$0xff]   ;;  %v2480_v23 = vld [vmem:[%s3216_s20 + $0xc0] sm:$0xf] }
  0x39   : > { %2824 = vmatprep.mubr.bf16.mxu0 %v2384_v14  ;;  %v692_v37 = vrot.slane %v690_v27, 5  ;;  %v688_v52 = vrot.slane %v687_v42, 4  ;;  %v1263_v27 = vshrl.u32 %v2470_v22, 16  ;;  %v2475_v42 = vld [vmem:[%s3216_s20 + $0xac] sm:$0x1] }
  0x3a   : > { %2815 = vmatpush3.bf16.msra.mxu0 %v3043_v28  ;;  %v695_v28 = vshrl.u32 %v615_v21, 16  ;;  %v2469_v21 = vld [vmem:[%s3216_s20 + $0x94] sm:$0x1] }
  0x3b   : > { %2839 = vmatpush3.bf16.msra.mxu1 %v3044_v30  ;;  %2816 = vmatprep.subr.bf16.mxu0 %v3045_v36  ;;  %v617_v30 = vld [vmem:[%s3216_s20 + $0x30] sm:$0xf]  ;;  %v693_v62 = vsel %vm3288_vm2, %v688_v52, %v692_v37  ;;  %v1258_v26 = vshll.u32 %v2469_v21, 16  ;;  %v1265_v35 = vrot.slane %v1263_v27, 4  ;;  %v1274_v37 = vrot.slane %v1272_v29, 5 }
  0x3c   : > { %2840 = vmatprep.subr.bf16.mxu1 %v3046_v44  ;;  %v697_v38 = vrot.slane %v695_v28, 4  ;;  %v709_v41 = vshrl.u32 %v617_v30, 16  ;;  %v712_v45 = vshll.u32 %v617_v30, 16  ;;  %v1266_v28 = vshll.u32 %v2470_v22, 16  ;;  %v3070_v30 = vld [vmem:[%s3600_s1 + $0x158] sm:$0xff]  }
  0x3d   : > { %v1260_v34 = vrot.slane %v1258_v26, 5  ;;  %v2482_v29 = vld [vmem:[%s3216_s20 + $0xc8] sm:$0xf] }
  0x3e   : > { %2817 = vmatpush3.bf16.msra.mxu0 %v3045_v36  ;;  %v618_v36 = vld [vmem:[%s3216_s20 + $0x34] sm:$0x1]  ;;  %v701_v47 = vor.u32 %v700_v39, %v697_v38  ;;  %v711_v48 = vrot.slane %v709_v41, 4  ;;  %v714_v53 = vrot.slane %v712_v45, 5  ;;  %v2472_v38 = vld [vmem:[%s3216_s20 + $0xa0] sm:$0xf] }
  0x3f   : > { %2841 = vmatpush3.bf16.msra.mxu1 %v3046_v44  ;;  %2818 = vmatprep.subr.bf16.mxu0 %v3051_v58  ;;  %v620_v44 = vld [vmem:[%s3216_s20 + $0x3c] sm:$0x1]  ;;  %v718_v46 = vshll.u32 %v618_v36, 16  ;;  %v1268_v36 = vrot.slane %v1266_v28, 5  ;;  %v2474_v41 = vld [vmem:[%s3216_s20 + $0xa8] sm:$0xf] }
  0x40   : > { %2842 = vmatprep.subr.bf16.mxu1 %v3052_v4  ;;  %v732_v54 = vshll.u32 %v620_v44, 16  ;;  %v702_v56 = vrot.slane %v701_v47, 4  ;;  %v715_v63 = vor.u32 %v714_v53, %v711_v48  ;;  %v1277_v45 = vshrl.u32 %v2472_v38, 16 }
  0x41   : > { %v720_v1 = vrot.slane %v718_v46, 5  ;;  %v1269_v44 = vor.u32 %v1268_v36, %v1265_v35  ;;  %v1280_v46 = vshll.u32 %v2472_v38, 16  ;;  %v1286_v47 = vshll.u32 %v2473_v40, 16  ;;  %v3083_v35 = vld [vmem:[%s3216_s20 + $0xf8] ss:$8 sps:$4 sm:$0xff]   ;;  %v3081_v40 = vld [vmem:[%s3600_s1 + $0x1b0] sm:$0xff]  }
  0x42   : > { %2819 = vmatpush3.bf16.msra.mxu0 %v3051_v58  ;;  %v728_v58 = vrot.slane %v726_v50, 5  ;;  %v707_v0 = vsel %vm3288_vm2, %v702_v56, %v706_v43  ;;  %v734_v3 = vrot.slane %v732_v54, 5  ;;  %v716_v5 = vrot.slane %v715_v63, 4  ;;  %v3072_v43 = vld [vmem:[%s3600_s1 + $0x150] sm:$0xff]  }
  0x43   : > { %2843 = vmatpush3.bf16.msra.mxu1 %v3052_v4  ;;  %2820 = vmatprep.subr.bf16.mxu0 %v3053_v9  ;;  %v3061_v4 = vld [vmem:[%s3600_s1 + $0x130] sm:$0xff]   ;;  %v2386_v8 = vcombine.low %v693_v62, %v707_v0  ;;  %v1291_v49 = vshrl.u32 %v2474_v41, 16  ;;  %v1294_v50 = vshll.u32 %v2474_v41, 16  ;;  %v1270_v52 = vrot.slane %v1269_v44, 4 }
  0x44   : > { %2844 = vmatprep.subr.bf16.mxu1 %v3054_v17  ;;  %v729_v2 = vor.u32 %v728_v58, %v725_v57  ;;  %v721_v11 = vsel %vm3288_vm2, %v716_v5, %v720_v1  ;;  %v1279_v53 = vrot.slane %v1277_v45, 4  ;;  %v1282_v54 = vrot.slane %v1280_v46, 5  ;;  %v3082_v45 = vld [vmem:[%s3600_s1 + $0x1f0] sm:$0xff]  }
  0x45   : > { %v1293_v57 = vrot.slane %v1291_v49, 4  ;;  %v1296_v58 = vrot.slane %v1294_v50, 5  ;;  %v1288_v0 = vrot.slane %v1286_v47, 5  ;;  %v1347_v38 = vshrl.u32 %v2482_v29, 16 }
  0x46   : > { %2821 = vmatpush3.bf16.msra.mxu0 %v3053_v9  ;;  %v730_v9 = vrot.slane %v729_v2, 4  ;;  %v1283_v62 = vor.u32 %v1282_v54, %v1279_v53 }
  0x47   : > { %2845 = vmatpush3.bf16.msra.mxu1 %v3054_v17  ;;  %2822 = vmatprep.subr.bf16.mxu0 %v3055_v25  ;;  %v3068_v17 = vld [vmem:[%s3600_s1 + $0x160] sm:$0xff]   ;;  %v1297_v1 = vor.u32 %v1296_v58, %v1293_v57  ;;  %v1349_v47 = vrot.slane %v1347_v38, 4  ;;  %v3086_v58 = vld [vmem:[%s3600_s1 + $0x1e8] sm:$0xff]   ;;  %v3102_v38 = vld [vmem:[%s3600_s1 + $0x230] sm:$0xff]  }
  0x48   : > { %2846 = vmatprep.subr.bf16.mxu1 %v3056_v31  ;;  %v735_v12 = vsel %vm3288_vm2, %v730_v9, %v734_v3  ;;  %v1284_v3 = vrot.slane %v1283_v62, 4  ;;  %v3079_v9 = vld [vmem:[%s3600_s1 + $0x1b8] sm:$0xff]   ;;  %v3084_v62 = vld [vmem:[%s3216_s20 + $0x108] ss:$8 sps:$4 sm:$0xff]  }
  0x49   : > { %v2387_v14 = vcombine.low %v721_v11, %v735_v12  ;;  %v1298_v5 = vrot.slane %v1297_v1, 4  ;;  %v2477_v11 = vld [vmem:[%s3216_s20 + $0xb4] sm:$0x1]  ;;  %v2478_v12 = vld [vmem:[%s3216_s20 + $0xb8] sm:$0xf] }
  0x4a   : > { %2823 = vmatpush3.bf16.msra.mxu0 %v3055_v25  ;;  %v1252_v25 = vshll.u32 %v2468_v20, 16  ;;  %v1322_v21 = vshll.u32 %v2478_v12, 16 }
  0x4b   : > { %2847 = vmatpush3.bf16.msra.mxu1 %v3056_v31  ;;  %2856 = vmatprep.subr.bf16.mxu0 %v3059_v51  ;;  %v1251_v31 = vrot.slane %v1249_v24, 4  ;;  %v2481_v24 = vld [vmem:[%s3216_s20 + $0xc4] sm:$0x1] }
  0x4c   : > { %2880 = vmatprep.subr.bf16.mxu1 %v3060_v55  ;;  %v1254_v32 = vrot.slane %v1252_v25, 5 }
  0x4d   : > { %2825 = vmatmul.mubr.bf16.vlgmr.msra.gmra.mxu0 %v2385_v60  ;;  %v3074_v60 = vld [vmem:[%s3600_s1 + $0x148] sm:$0xff]  }
  0x4e   : > { %2849 = vmatmul.mubr.bf16.vlgmr.msra.gmra.mxu1 %v3058_v61  ;;  %2857 = vmatpush3.bf16.msra.mxu0 %v3059_v51  ;;  %v1255_v39 = vor.u32 %v1254_v32, %v1251_v31  ;;  %v1300_v51 = vshll.u32 %v2475_v42, 16  ;;  %v1275_v61 = vsel %vm3288_vm2, %v1270_v52, %v1274_v37  ;;  %v2483_v32 = vld [vmem:[%s3216_s20 + $0xcc] sm:$0x1]  ;;  %v1342_v37 = vshll.u32 %v2481_v24, 16  ;;  %v2592_v24 = vld [vmem:[%s3216_s20 + $0x28] sm:$0xf] }
  0x4f   : > { %2881 = vmatpush3.bf16.msra.mxu1 %v3060_v55  ;;  %2858 = vmatprep.subr.bf16.mxu0 %v3061_v4  ;;  %v3073_v55 = vld [vmem:[%s3600_s1 + $0x108] sm:$0xff]   ;;  %v1356_v44 = vshll.u32 %v2483_v32, 16  ;;  %v2595_v32 = vld [vmem:[%s3216_s20 + $0x34] sm:$0x1] }
  0x50   : > { %2882 = vmatprep.subr.bf16.mxu1 %v3062_v7  ;;  %2828 = vmatprep.mubr.bf16.mxu0 %v2386_v8  ;;  %v1256_v48 = vrot.slane %v1255_v39, 4  ;;  %v1302_v2 = vrot.slane %v1300_v51, 5  ;;  %v1350_v39 = vshll.u32 %v2482_v29, 16  ;;  %v1344_v51 = vrot.slane %v1342_v37, 5 }
  0x51   : > { %2852 = vmatprep.mubr.bf16.mxu1 %v3065_v6  ;;  %v3076_v6 = vld [vmem:[%s3600_s1 + $0x140] sm:$0xff]   ;;  %v1358_v54 = vrot.slane %v1356_v44, 5  ;;  %v1932_v37 = vshll.u32 %v2592_v24, 16 }
  0x52   : > { %2859 = vmatpush3.bf16.msra.mxu0 %v3061_v4  ;;  %v1261_v56 = vsel %vm3288_vm2, %v1256_v48, %v1260_v34  ;;  %v3075_v4 = vld [vmem:[%s3600_s1 + $0x100] sm:$0xff]   ;;  %v1303_v8 = vsel %vm3288_vm2, %v1298_v5, %v1302_v2  ;;  %v1336_v34 = vshll.u32 %v2480_v23, 16  ;;  %v1352_v48 = vrot.slane %v1350_v39, 5  ;;  %v3097_v5 = vld [vmem:[%s3216_s20 + $0x8] ss:$8 sps:$4 sm:$0xff]  }
  0x53   : > { %2883 = vmatpush3.bf16.msra.mxu1 %v3062_v7  ;;  %2860 = vmatprep.subr.bf16.mxu0 %v3063_v10  ;;  %v2500_v63 = vcombine.low %v1261_v56, %v1275_v61  ;;  %v1289_v7 = vsel %vm3288_vm2, %v1284_v3, %v1288_v0  ;;  %v3087_v2 = vld [vmem:[%s3600_s1 + $0x1a0] sm:$0xff]  }
  0x54   : > { %2884 = vmatprep.subr.bf16.mxu1 %v3064_v13  ;;  %v2501_v20 = vcombine.low %v1289_v7, %v1303_v8  ;;  %v1353_v53 = vor.u32 %v1352_v48, %v1349_v47  ;;  %v3088_v3 = vld [vmem:[%s3600_s1 + $0x1e0] sm:$0xff]   ;;  %v3090_v7 = vld [vmem:[%s3600_s1 + $0x1d8] sm:$0xff]   ;;  %v3091_v8 = vld [vmem:[%s3600_s1 + $0x190] sm:$0xff]   ;;  %v1952_v47 = vshll.u32 %v2595_v32, 16 }
  0x55   : > { %2829 = vmatmul.mubr.bf16.gmra.mxu0 %v2387_v14  ;;  %v2479_v14 = vld [vmem:[%s3216_s20 + $0xbc] sm:$0x1]  ;;  %v3106_v48 = vld [vmem:[%s3216_s20 + $0x70] ss:$8 sps:$4 sm:$0xff]   ;;  %v2599_v32 = vld [vmem:[%s3216_s20 + $0x44] sm:$0x1] }
  0x56   : > { %2861 = vmatpush3.bf16.msra.mxu0 %v3063_v10  ;;  %2853 = vmatmul.mubr.bf16.gmra.mxu1 %v3066_v15  ;;  %v2476_v10 = vld [vmem:[%s3216_s20 + $0xb0] sm:$0xf]  ;;  %v1328_v22 = vshll.u32 %v2479_v14, 16  ;;  %v1354_v61 = vrot.slane %v1353_v53, 4  ;;  %v3101_v14 = vld [vmem:[%s3600_s1 + $0x238] sm:$0xff]  }
  0x57   : > { %2885 = vmatpush3.bf16.msra.mxu1 %v3064_v13  ;;  %2862 = vmatprep.subr.bf16.mxu0 %v3067_v16  ;;  %v3080_v13 = vld [vmem:[%s3600_s1 + $0x1f8] sm:$0xff]   ;;  %v1305_v15 = vshrl.u32 %v2476_v10, 16 }
  0x58   : > { %2886 = vmatprep.subr.bf16.mxu1 %v3068_v17  ;;  %2872 = vmatprep.mubr.bf16.mxu0 %v3077_v19  ;;  %v3078_v19 = vld [vmem:[%s3216_s20 + $0xe8] ss:$8 sps:$4 sm:$0xff]   ;;  %v1330_v31 = vrot.slane %v1328_v22, 5  ;;  %v1359_v0 = vsel %vm3288_vm2, %v1354_v61, %v1358_v54  ;;  %v3104_v61 = vld [vmem:[%s3216_s20 + $0x38] ss:$8 sps:$4 sm:$0xff]  }
  0x59   : > { %2896 = vmatprep.mubr.bf16.mxu1 %v2500_v63  ;;  %v1307_v25 = vrot.slane %v1305_v15, 4  ;;  %v2584_v15 = vld [vmem:[%s3216_s20 + $0x8] sm:$0xf] }
  0x5a   : > { %2863 = vmatpush3.bf16.msra.mxu0 %v3067_v16  ;;  %v1308_v16 = vshll.u32 %v2476_v10, 16  ;;  %v3093_v10 = vld [vmem:[%s3600_s1 + $0x188] sm:$0xff]  }
  0x5b   : > { %2887 = vmatpush3.bf16.msra.mxu1 %v3068_v17  ;;  %2864 = vmatprep.subr.bf16.mxu0 %v3069_v18  ;;  %v1314_v17 = vshll.u32 %v2477_v11, 16  ;;  %v3094_v11 = vld [vmem:[%s3600_s1 + $0x1c8] sm:$0xff]  }
  0x5c   : > { %2888 = vmatprep.subr.bf16.mxu1 %v3070_v30  ;;  %v1310_v26 = vrot.slane %v1308_v16, 5  ;;  %v2585_v16 = vld [vmem:[%s3216_s20 + $0xc] sm:$0x1] }
  0x5d   : > { %v1316_v27 = vrot.slane %v1314_v17, 5  ;;  %v2586_v17 = vld [vmem:[%s3216_s20 + $0x10] sm:$0xf]  ;;  %v1882_v22 = vshll.u32 %v2585_v16, 16 }
  0x5e   : > { %2865 = vmatpush3.bf16.msra.mxu0 %v3069_v18  ;;  %v1319_v18 = vshrl.u32 %v2478_v12, 16  ;;  %v1311_v36 = vor.u32 %v1310_v26, %v1307_v25  ;;  %v3095_v12 = vld [vmem:[%s3600_s1 + $0x180] sm:$0xff]   ;;  %v1890_v25 = vshll.u32 %v2586_v17, 16  ;;  %v2593_v26 = vld [vmem:[%s3216_s20 + $0x2c] sm:$0x1] }
  0x5f   : > { %2889 = vmatpush3.bf16.msra.mxu1 %v3070_v30  ;;  %2866 = vmatprep.subr.bf16.mxu0 %v3071_v33  ;;  %v1324_v30 = vrot.slane %v1322_v21, 5  ;;  %v1876_v21 = vshll.u32 %v2584_v15, 16 }
  0x60   : > { %2890 = vmatprep.subr.bf16.mxu1 %v3072_v43  ;;  %v1321_v28 = vrot.slane %v1319_v18, 4  ;;  %v1312_v46 = vrot.slane %v1311_v36, 4  ;;  %v2587_v18 = vld [vmem:[%s3216_s20 + $0x14] sm:$0x1]  ;;  %v1929_v36 = vshrl.u32 %v2592_v24, 16 }
  0x61   : > { %v1878_v29 = vrot.slane %v1876_v21, 5  ;;  %v2589_v21 = vld [vmem:[%s3216_s20 + $0x1c] sm:$0x1] }
  0x62   : > { %2867 = vmatpush3.bf16.msra.mxu0 %v3071_v33  ;;  %v1333_v33 = vshrl.u32 %v2480_v23, 16  ;;  %v1325_v41 = vor.u32 %v1324_v30, %v1321_v28  ;;  %v1317_v52 = vsel %vm3288_vm2, %v1312_v46, %v1316_v27  ;;  %v1887_v23 = vshrl.u32 %v2586_v17, 16  ;;  %v2594_v27 = vld [vmem:[%s3216_s20 + $0x30] sm:$0xf] }
  0x63   : > { %2891 = vmatpush3.bf16.msra.mxu1 %v3072_v43  ;;  %2868 = vmatprep.subr.bf16.mxu0 %v3073_v55  ;;  %v1338_v43 = vrot.slane %v1336_v34, 5  ;;  %v1884_v34 = vrot.slane %v1882_v22, 5  ;;  %v1934_v46 = vrot.slane %v1932_v37, 5  ;;  %v3111_v37 = vld [vmem:[%s3600_s1 + $0x208] sm:$0xff]  }
  0x64   : > { %2892 = vmatprep.subr.bf16.mxu1 %v3074_v60  ;;  %v1335_v42 = vrot.slane %v1333_v33, 4  ;;  %v1326_v49 = vrot.slane %v1325_v41, 4  ;;  %v1889_v30 = vrot.slane %v1887_v23, 4  ;;  %v3100_v33 = vld [vmem:[%s3216_s20 + $0x60] ss:$8 sps:$4 sm:$0xff]   ;;  %v1943_v41 = vshrl.u32 %v2594_v27, 16 }
  0x66   : > { %2869 = vmatpush3.bf16.msra.mxu0 %v3073_v55  ;;  %v1339_v50 = vor.u32 %v1338_v43, %v1335_v42  ;;  %v3085_v55 = vld [vmem:[%s3600_s1 + $0x1a8] sm:$0xff]   ;;  %v1331_v56 = vsel %vm3288_vm2, %v1326_v49, %v1330_v31  ;;  %v1896_v31 = vshll.u32 %v2587_v18, 16  ;;  %v1946_v42 = vshll.u32 %v2594_v27, 16 }
  0x67   : > { %2893 = vmatpush3.bf16.msra.mxu1 %v3074_v60  ;;  %2870 = vmatprep.subr.bf16.mxu0 %v3075_v4  ;;  %v2502_v60 = vcombine.low %v1317_v52, %v1331_v56  ;;  %v3103_v43 = vld [vmem:[%s3216_s20 + $0x28] ss:$8 sps:$4 sm:$0xff]  }
  0x68   : > { %2894 = vmatprep.subr.bf16.mxu1 %v3076_v6  ;;  %v1340_v57 = vrot.slane %v1339_v50, 4  ;;  %v1898_v50 = vrot.slane %v1896_v31, 5  ;;  %v1948_v52 = vrot.slane %v1946_v42, 5  ;;  %v3105_v56 = vld [vmem:[%s3600_s1 + $0x228] sm:$0xff]   ;;  %v2597_v31 = vld [vmem:[%s3216_s20 + $0x3c] sm:$0x1] }
  0x6a   : > { %2871 = vmatpush3.bf16.msra.mxu0 %v3075_v4  ;;  %v1345_v63 = vsel %vm3288_vm2, %v1340_v57, %v1344_v51  ;;  %v3089_v4 = vld [vmem:[%s3600_s1 + $0x198] sm:$0xff]   ;;  %v1945_v51 = vrot.slane %v1943_v41, 4  ;;  %v1980_v41 = vshll.u32 %v2599_v32, 16 }
  0x6b   : > { %2895 = vmatpush3.bf16.msra.mxu1 %v3076_v6  ;;  %2904 = vmatprep.subr.bf16.mxu0 %v3079_v9  ;;  %v2503_v1 = vcombine.low %v1345_v63, %v1359_v0  ;;  %v3098_v6 = vld [vmem:[%s3216_s20 + $0x50] ss:$8 sps:$4 sm:$0xff]  }
  0x6c   : > { %2928 = vmatprep.subr.bf16.mxu1 %v3080_v13  ;;  %v1949_v57 = vor.u32 %v1948_v52, %v1945_v51 }
  0x6d   : > { %2873 = vmatmul.mubr.bf16.vlgmr.msra.gmra.mxu0 %v3078_v19  ;;  %v3099_v19 = vld [vmem:[%s3216_s20 + $0x18] ss:$8 sps:$4 sm:$0xff]  }
  0x6e   : > { %2897 = vmatmul.mubr.bf16.vlgmr.msra.gmra.mxu1 %v2501_v20  ;;  %2905 = vmatpush3.bf16.msra.mxu0 %v3079_v9  ;;  %v3092_v9 = vld [vmem:[%s3600_s1 + $0x1d0] sm:$0xff]   ;;  %v1873_v20 = vshrl.u32 %v2584_v15, 16  ;;  %v1950_v0 = vrot.slane %v1949_v57, 4  ;;  %v3109_v15 = vld [vmem:[%s3600_s1 + $0x218] sm:$0xff]  }
  0x6f   : > { %2929 = vmatpush3.bf16.msra.mxu1 %v3080_v13  ;;  %2906 = vmatprep.subr.bf16.mxu0 %v3081_v40  ;;  %v3096_v13 = vld [vmem:[%s3600_s1 + $0x1c0] sm:$0xff]  }
  0x70   : > { %2930 = vmatprep.subr.bf16.mxu1 %v3082_v45  ;;  %2876 = vmatprep.mubr.bf16.mxu0 %v3083_v35  ;;  %v1875_v28 = vrot.slane %v1873_v20, 4  ;;  %v1892_v35 = vrot.slane %v1890_v25, 5  ;;  %v3110_v20 = vld [vmem:[%s3600_s1 + $0x210] sm:$0xff]  }
  0x71   : > { %2900 = vmatprep.mubr.bf16.mxu1 %v2502_v60 }
  0x72   : > { %2907 = vmatpush3.bf16.msra.mxu0 %v3081_v40  ;;  %v1879_v39 = vor.u32 %v1878_v29, %v1875_v28  ;;  %v1938_v40 = vshll.u32 %v2593_v26, 16  ;;  %v1893_v44 = vor.u32 %v1892_v35, %v1889_v30  ;;  %v2591_v26 = vld [vmem:[%s3216_s20 + $0x24] sm:$0x1] }
  0x73   : > { %2931 = vmatpush3.bf16.msra.mxu1 %v3082_v45  ;;  %2908 = vmatprep.subr.bf16.mxu0 %v3085_v55  ;;  %v1931_v45 = vrot.slane %v1929_v36, 4  ;;  %v1924_v36 = vshll.u32 %v2591_v26, 16 }
  0x74   : > { %2932 = vmatprep.subr.bf16.mxu1 %v3086_v58  ;;  %v1880_v49 = vrot.slane %v1879_v39, 4  ;;  %v1894_v53 = vrot.slane %v1893_v44, 4  ;;  %v1966_v39 = vshll.u32 %v2597_v31, 16 }
  0x75   : > { %2877 = vmatmul.mubr.bf16.gmra.mxu0 %v3084_v62  ;;  %v1935_v54 = vor.u32 %v1934_v46, %v1931_v45  ;;  %v1926_v45 = vrot.slane %v1924_v36, 5  ;;  %v3112_v46 = vld [vmem:[%s3600_s1 + $0x200] sm:$0xff]  }
  0x76   : > { %2909 = vmatpush3.bf16.msra.mxu0 %v3085_v55  ;;  %2901 = vmatmul.mubr.bf16.gmra.mxu1 %v2503_v1  ;;  %v1940_v55 = vrot.slane %v1938_v40, 5  ;;  %v1885_v62 = vsel %vm3288_vm2, %v1880_v49, %v1884_v34  ;;  %v1899_v63 = vsel %vm3288_vm2, %v1894_v53, %v1898_v50  ;;  %v3107_v1 = vld [vmem:[%s3216_s20 + $0x80] ss:$8 sps:$4 sm:$0xff]   ;;  %v1910_v34 = vshll.u32 %v2589_v21, 16 }
  0x77   : > { %2933 = vmatpush3.bf16.msra.mxu1 %v3086_v58  ;;  %2910 = vmatprep.subr.bf16.mxu0 %v3087_v2  ;;  %v1954_v58 = vrot.slane %v1952_v47, 5  ;;  %v1936_v60 = vrot.slane %v1935_v54, 4  ;;  %v1982_v50 = vrot.slane %v1980_v41, 5 }
  0x78   : > { %2934 = vmatprep.subr.bf16.mxu1 %v3088_v3  ;;  %2920 = vmatprep.mubr.bf16.mxu0 %v3097_v5  ;;  %v2588_v5 = vld [vmem:[%s3216_s20 + $0x18] sm:$0xf] }
  0x79   : > { %2944 = vmatprep.mubr.bf16.mxu1 %v3098_v6  ;;  %v2590_v6 = vld [vmem:[%s3216_s20 + $0x20] sm:$0xf] }
  0x7a   : > { %2911 = vmatpush3.bf16.msra.mxu0 %v3087_v2  ;;  %v1941_v2 = vsel %vm3288_vm2, %v1936_v60, %v1940_v55 }
  0x7b   : > { %2935 = vmatpush3.bf16.msra.mxu1 %v3088_v3  ;;  %2912 = vmatprep.subr.bf16.mxu0 %v3089_v4  ;;  %v3108_v3 = vld [vmem:[%s3600_s1 + $0x220] sm:$0xff]  }
  0x7c   : > { %2936 = vmatprep.subr.bf16.mxu1 %v3090_v7 }
  0x7e   : > { %2913 = vmatpush3.bf16.msra.mxu0 %v3089_v4  ;;  %v1955_v4 = vsel %vm3288_vm2, %v1950_v0, %v1954_v58 }
  0x7f   : > { %2937 = vmatpush3.bf16.msra.mxu1 %v3090_v7  ;;  %2914 = vmatprep.subr.bf16.mxu0 %v3091_v8  ;;  %v2616_v7 = vcombine.low %v1885_v62, %v1899_v63 }
  0x80   : > { %2938 = vmatprep.subr.bf16.mxu1 %v3092_v9 }
  0x82   : > { %2915 = vmatpush3.bf16.msra.mxu0 %v3091_v8  ;;  %v2596_v8 = vld [vmem:[%s3216_s20 + $0x38] sm:$0xf] }
  0x83   : > { %2939 = vmatpush3.bf16.msra.mxu1 %v3092_v9  ;;  %2916 = vmatprep.subr.bf16.mxu0 %v3093_v10  ;;  %v2598_v9 = vld [vmem:[%s3216_s20 + $0x40] sm:$0xf]  ;;  %v1957_v16 = vshrl.u32 %v2596_v8, 16  ;;  %v1960_v17 = vshll.u32 %v2596_v8, 16 }
  0x84   : > { %2940 = vmatprep.subr.bf16.mxu1 %v3094_v11  ;;  %v1971_v18 = vshrl.u32 %v2598_v9, 16 }
  0x85   : > { %v1959_v27 = vrot.slane %v1957_v16, 4  ;;  %v1962_v28 = vrot.slane %v1960_v17, 5 }
  0x86   : > { %2917 = vmatpush3.bf16.msra.mxu0 %v3093_v10  ;;  %v2618_v10 = vcombine.low %v1941_v2, %v1955_v4  ;;  %v1973_v29 = vrot.slane %v1971_v18, 4 }
  0x87   : > { %2941 = vmatpush3.bf16.msra.mxu1 %v3094_v11  ;;  %2918 = vmatprep.subr.bf16.mxu0 %v3095_v12  ;;  %v1901_v11 = vshrl.u32 %v2588_v5, 16 }
  0x88   : > { %2942 = vmatprep.subr.bf16.mxu1 %v3096_v13 }
  0x89   : > { %v1903_v22 = vrot.slane %v1901_v11, 4 }
  0x8a   : > { %2919 = vmatpush3.bf16.msra.mxu0 %v3095_v12  ;;  %v1904_v12 = vshll.u32 %v2588_v5, 16 }
  0x8b   : > { %2943 = vmatpush3.bf16.msra.mxu1 %v3096_v13  ;;  %2952 = vmatprep.subr.bf16.mxu0 %v3101_v14  ;;  %v1915_v13 = vshrl.u32 %v2590_v6, 16 }
  0x8c   : > { %2976 = vmatprep.subr.bf16.mxu1 %v3101_v14  ;;  %v1906_v23 = vrot.slane %v1904_v12, 5 }
  0x8d   : > { %2921 = vmatmul.mubr.bf16.vlgmr.msra.gmra.mxu0 %v3099_v19  ;;  %v1974_v19 = vshll.u32 %v2598_v9, 16  ;;  %v1917_v24 = vrot.slane %v1915_v13, 4 }
  0x8e   : > { %2945 = vmatmul.mubr.bf16.vlgmr.msra.gmra.mxu1 %v3100_v33  ;;  %2953 = vmatpush3.bf16.msra.mxu0 %v3101_v14  ;;  %v1907_v33 = vor.u32 %v1906_v23, %v1903_v22 }
  0x8f   : > { %2984 = vmatpush3.bf16.msra.mxu1 %v3101_v14  ;;  %2954 = vmatprep.subr.bf16.mxu0 %v3102_v38  ;;  %v1918_v14 = vshll.u32 %v2590_v6, 16  ;;  %v1976_v30 = vrot.slane %v1974_v19, 5 }
  0x90   : > { %2977 = vmatprep.subr.bf16.mxu1 %v3102_v38  ;;  %2924 = vmatprep.mubr.bf16.mxu0 %v3103_v43  ;;  %v1908_v42 = vrot.slane %v1907_v33, 4  ;;  %v1912_v43 = vrot.slane %v1910_v34, 5 }
  0x91   : > { %2948 = vmatprep.mubr.bf16.mxu1 %v3106_v48  ;;  %v1920_v25 = vrot.slane %v1918_v14, 5  ;;  %v1977_v40 = vor.u32 %v1976_v30, %v1973_v29  ;;  %v1968_v48 = vrot.slane %v1966_v39, 5 }
  0x92   : > { %2955 = vmatpush3.bf16.msra.mxu0 %v3102_v38  ;;  %v1913_v51 = vsel %vm3288_vm2, %v1908_v42, %v1912_v43 }
  0x93   : > { %2985 = vmatpush3.bf16.msra.mxu1 %v3102_v38  ;;  %2956 = vmatprep.subr.bf16.mxu0 %v3105_v56  ;;  %v1921_v35 = vor.u32 %v1920_v25, %v1917_v24  ;;  %v1963_v38 = vor.u32 %v1962_v28, %v1959_v27  ;;  %v1978_v49 = vrot.slane %v1977_v40, 4 }
  0x94   : > { %2978 = vmatprep.subr.bf16.mxu1 %v3105_v56 }
  0x95   : > { %2925 = vmatmul.mubr.bf16.gmra.mxu0 %v3104_v61  ;;  %v1922_v44 = vrot.slane %v1921_v35, 4  ;;  %v1964_v47 = vrot.slane %v1963_v38, 4  ;;  %v1983_v54 = vsel %vm3288_vm2, %v1978_v49, %v1982_v50 }
  0x96   : > { %2957 = vmatpush3.bf16.msra.mxu0 %v3105_v56  ;;  %2949 = vmatmul.mubr.bf16.gmra.mxu1 %v3107_v1 }
  0x97   : > { %2986 = vmatpush3.bf16.msra.mxu1 %v3105_v56  ;;  %2958 = vmatprep.subr.bf16.mxu0 %v3108_v3  ;;  %v1927_v52 = vsel %vm3288_vm2, %v1922_v44, %v1926_v45  ;;  %v1969_v53 = vsel %vm3288_vm2, %v1964_v47, %v1968_v48 }
  0x98   : > { %2979 = vmatprep.subr.bf16.mxu1 %v3108_v3  ;;  %2968 = vmatprep.mubr.bf16.mxu0 %v2616_v7  ;;  %v2617_v55 = vcombine.low %v1913_v51, %v1927_v52  ;;  %v2619_v56 = vcombine.low %v1969_v53, %v1983_v54 }
  0x99   : > { %2972 = vmatprep.mubr.bf16.mxu1 %v2618_v10 }
  0x9a   : > { %2959 = vmatpush3.bf16.msra.mxu0 %v3108_v3 }
  0x9b   : > { %2987 = vmatpush3.bf16.msra.mxu1 %v3108_v3  ;;  %2960 = vmatprep.subr.bf16.mxu0 %v3109_v15 }
  0x9c   : > { %2980 = vmatprep.subr.bf16.mxu1 %v3109_v15 }
  0x9e   : > { %2961 = vmatpush3.bf16.msra.mxu0 %v3109_v15 }
  0x9f   : > { %2988 = vmatpush3.bf16.msra.mxu1 %v3109_v15  ;;  %2962 = vmatprep.subr.bf16.mxu0 %v3110_v20 }
  0xa0   : > { %2981 = vmatprep.subr.bf16.mxu1 %v3110_v20 }
  0xa2   : > { %2963 = vmatpush3.bf16.msra.mxu0 %v3110_v20 }
  0xa3   : > { %2989 = vmatpush3.bf16.msra.mxu1 %v3110_v20  ;;  %2964 = vmatprep.subr.bf16.mxu0 %v3111_v37 }
  0xa4   : > { %2982 = vmatprep.subr.bf16.mxu1 %v3111_v37 }
  0xa6   : > { %2965 = vmatpush3.bf16.msra.mxu0 %v3111_v37 }
  0xa7   : > { %2990 = vmatpush3.bf16.msra.mxu1 %v3111_v37  ;;  %2966 = vmatprep.subr.bf16.mxu0 %v3112_v46 }
  0xa8   : > { %2983 = vmatprep.subr.bf16.mxu1 %v3112_v46 }
  0xaa   : > { %2967 = vmatpush3.bf16.msra.mxu0 %v3112_v46 }
  0xab   : > { %2991 = vmatpush3.bf16.msra.mxu1 %v3112_v46 }
  0xad   : > { %2969 = vmatmul.mubr.bf16.vlgmr.msra.gmra.mxu0 %v2617_v55 }
  0xae   : > { %2973 = vmatmul.mubr.bf16.vlgmr.msra.gmra.mxu1 %v2619_v56 }
  0xed   : > { %v2778_v57 = vpop.f32.mrf.mxu0 }
  0xee   : > { %v2802_v60 = vpop.f32.mrf.mxu1 }
  0xef   : > { %v437_v58 = vpop.f32.mrf.mxu0  ;;  %v583_v46 = vadd.f32 %v2802_v60, %v2778_v57 }
  0xf0   : > { %v574_v62 = vpop.f32.mrf.mxu1 }
  0xf1   : > { %v2779_v61 = vpop.f32.mrf.mxu0  ;;  %v575_v50 = vadd.f32 %v574_v62, %v437_v58 }
  0xf2   : > { %v2803_v1 = vpop.f32.mrf.mxu1 }
  0xf3   : > { %v440_v63 = vpop.f32.mrf.mxu0  ;;  %v586_v54 = vadd.f32 %v2803_v1, %v2779_v61 }
  0xf4   : > { %v577_v3 = vpop.f32.mrf.mxu1 }
  0xf5   : > { %v2782_v0 = vpop.f32.mrf.mxu0 }
  0xf6   : > { %v2806_v4 = vpop.f32.mrf.mxu1 }
  0xf7   : > { %v453_v2 = vpop.f32.mrf.mxu0  ;;  %v599_v48 = vadd.f32 %v2806_v4, %v2782_v0 }
  0xf8   : > { %v590_v5 = vpop.f32.mrf.mxu1 }
  0xf9   : > { %v2783_v59 = vpop.f32.mrf.mxu0  ;;  %v591_v52 = vadd.f32 %v590_v5, %v453_v2 }
  0xfa   : > { %v2807_v8 = vpop.f32.mrf.mxu1 }
  0xfb   : > { %v456_v6 = vpop.f32.mrf.mxu0 }
  0xfc   : > { %v593_v10 = vpop.f32.mrf.mxu1 }
 0x10d   : > { %v2826_v7 = vpop.f32.mrf.mxu0 }
 0x10e   : > { %v2850_v11 = vpop.f32.mrf.mxu1  ;;  %v884_v51 = vadd.f32 %v2826_v7, %v583_v46 }
 0x10f   : > { %v851_v9 = vpop.f32.mrf.mxu0 }
 0x110   : > { %v1022_v13 = vpop.f32.mrf.mxu1  ;;  %v882_v55 = vadd.f32 %v851_v9, %v575_v50 }
 0x111   : > { %v2827_v12 = vpop.f32.mrf.mxu0 }
 0x112   : > { %v2851_v15 = vpop.f32.mrf.mxu1  ;;  %v885_v57 = vadd.f32 %v2827_v12, %v586_v54 }
 0x113   : > { %v854_v14 = vpop.f32.mrf.mxu0 }
 0x114   : > { %v3533_v17 = vpop.f32.mrf.mxu1  ;;  %v1056_v7 = vadd.f32 %v2851_v15, %v885_v57 }
 0x115   : > { %v2830_v16 = vpop.f32.mrf.mxu0  ;;  %3606 = vst [vmem:[#allocation2_spill] sm:$0xff] %v3533_v17  ;;  %v1055_v17 = vadd.f32 %v2850_v11, %v884_v51 }
 0x116   : > { %v2854_v19 = vpop.f32.mrf.mxu1  ;;  %v888_v53 = vadd.f32 %v2830_v16, %v599_v48 }
 0x117   : > { %v867_v18 = vpop.f32.mrf.mxu0 }
 0x118   : > { %v1038_v21 = vpop.f32.mrf.mxu1  ;;  %v1059_v0 = vadd.f32 %v2854_v19, %v888_v53 }
 0x119   : > { %v2831_v20 = vpop.f32.mrf.mxu0 }
 0x11a   : > { %v2855_v23 = vpop.f32.mrf.mxu1 }
 0x11b   : > { %v870_v22 = vpop.f32.mrf.mxu0 }
 0x11c   : > { %v1041_v25 = vpop.f32.mrf.mxu1 }
 0x12d   : > { %v2874_v24 = vpop.f32.mrf.mxu0 }
 0x12e   : > { %v2898_v27 = vpop.f32.mrf.mxu1  ;;  %v1226_v62 = vadd.f32 %v2874_v24, %v1055_v17 }
 0x12f   : > { %v1193_v26 = vpop.f32.mrf.mxu0 }
 0x130   : > { %v1475_v29 = vpop.f32.mrf.mxu1  ;;  %v1508_v11 = vadd.f32 %v2898_v27, %v1226_v62 }
 0x131   : > { %v2875_v28 = vpop.f32.mrf.mxu0 }
 0x132   : > { %v3535_v31 = vpop.f32.mrf.mxu1  ;;  %v1227_v12 = vadd.f32 %v2875_v28, %v1056_v7  ;;  %v3557_v28 = vld [vmem:[%s271_s21 + $0x18] sm:$0xff]  }
 0x133   : > { %v1196_v30 = vpop.f32.mrf.mxu0  ;;  %3607 = vst [vmem:[#allocation3_spill] sm:$0xff] %v3535_v31 }
 0x134   : > { %v3537_v33 = vpop.f32.mrf.mxu1 }
 0x135   : > { %v2878_v32 = vpop.f32.mrf.mxu0  ;;  %3608 = vst [vmem:[#allocation4_spill] sm:$0xff] %v3537_v33  ;;  %v886_v33 = vadd.f32 %v867_v18, %v591_v52 }
 0x136   : > { %v2902_v34 = vpop.f32.mrf.mxu1  ;;  %v1230_v61 = vadd.f32 %v2878_v32, %v1059_v0 }
 0x137   : > { %v1209_v35 = vpop.f32.mrf.mxu0  ;;  %v1057_v2 = vadd.f32 %v1038_v21, %v886_v33 }
 0x138   : > { %v1491_v36 = vpop.f32.mrf.mxu1 }
 0x139   : > { %v2879_v37 = vpop.f32.mrf.mxu0  ;;  %v1228_v16 = vadd.f32 %v1209_v35, %v1057_v2 }
 0x13a   : > { %v2903_v38 = vpop.f32.mrf.mxu1  ;;  %v3614_v24 = vld [vmem:[#allocation3_spill] sm:$0xff] }
 0x13b   : > { %v1212_v39 = vpop.f32.mrf.mxu0 }
 0x13c   : > { %v3539_v41 = vpop.f32.mrf.mxu1 }
 0x13d   : > { %3609 = vst [vmem:[#allocation5_spill] sm:$0xff] %v3539_v41  ;;  %v602_v41 = vadd.f32 %v2807_v8, %v2783_v59 }
 0x13f   : > { %v889_v4 = vadd.f32 %v2831_v20, %v602_v41  ;;  %v1510_v20 = vadd.f32 %v1491_v36, %v1228_v16 }
 0x141   : > { %v1060_v9 = vadd.f32 %v2855_v23, %v889_v4  ;;  %v3554_v23 = vld [vmem:[%s271_s21 + $0x8] sm:$0xff]  }
 0x14d   : > { %v2922_v40 = vpop.f32.mrf.mxu0 }
 0x14e   : > { %v2946_v42 = vpop.f32.mrf.mxu1  ;;  %v1679_v19 = vadd.f32 %v2922_v40, %v1508_v11  ;;  %v3616_v40 = vld [vmem:[#allocation5_spill] sm:$0xff] }
 0x14f   : > { %v1646_v43 = vpop.f32.mrf.mxu0 }
 0x150   : > { %v3541_v44 = vpop.f32.mrf.mxu1  ;;  %v1850_v35 = vadd.f32 %v2946_v42, %v1679_v19 }
 0x151   : > { %3610 = vst [vmem:[#allocation6_spill] sm:$0xff] %v3541_v44  ;;  %v2923_v45 = vpop.f32.mrf.mxu0  ;;  %v578_v44 = vadd.f32 %v577_v3, %v440_v63  ;;  %v3613_v63 = vld [vmem:[#allocation2_spill] sm:$0xff] }
 0x152   : > { %v3543_v47 = vpop.f32.mrf.mxu1 }
 0x153   : > { %3611 = vst [vmem:[#allocation7_spill] sm:$0xff] %v3543_v47  ;;  %v3545_v49 = vpop.f32.mrf.mxu0  ;;  %v594_v47 = vadd.f32 %v593_v10, %v456_v6  ;;  %v883_v58 = vadd.f32 %v854_v14, %v578_v44  ;;  %v1512_v10 = vadd.f32 %v2902_v34, %v1230_v61  ;;  %v3559_v34 = vld [vmem:[%s271_s21] sm:$0xff]  }
 0x154   : > { %3612 = vst [vmem:[#allocation8_spill] sm:$0xff] %v3545_v49  ;;  %v3547_v56 = vpop.f32.mrf.mxu1  ;;  %v1053_v49 = vadd.f32 %v1022_v13, %v882_v55  ;;  %v1231_v13 = vadd.f32 %v2879_v37, %v1060_v9  ;;  %v2635_v52 = vunpack.c.l.bf16 %v3559_v34 }
 0x155   : > { %v2926_v31 = vpop.f32.mrf.mxu0  ;;  %v887_v5 = vadd.f32 %v870_v22, %v594_v47  ;;  %v1054_v3 = vadd.f32 %v3613_v63, %v883_v58  ;;  %v2647_v47 = vunpack.c.l.bf16 %v3557_v28 }
 0x156   : > { %v2950_v60 = vpop.f32.mrf.mxu1  ;;  %v1224_v59 = vadd.f32 %v1193_v26, %v1053_v49  ;;  %v1683_v22 = vadd.f32 %v2926_v31, %v1512_v10  ;;  %v1509_v26 = vadd.f32 %v3614_v24, %v1227_v12  ;;  %v1513_v32 = vadd.f32 %v2903_v38, %v1231_v13  ;;  %v2628_v38 = vld [vmem:[%s3601_s2] ss:$0 sm:$0xff] }
 0x157   : > { %v1662_v1 = vpop.f32.mrf.mxu0  ;;  %v1058_v6 = vadd.f32 %v1041_v25, %v887_v5  ;;  %v1225_v18 = vadd.f32 %v1196_v30, %v1054_v3  ;;  %v2639_v31 = vunpack.c.l.bf16 %v3554_v23  ;;  %v2640_v5 = vunpack.c.h.bf16 %v3554_v23 }
 0x158   : > { %v1833_v8 = vpop.f32.mrf.mxu1  ;;  %v1506_v17 = vadd.f32 %v1475_v29, %v1224_v59  ;;  %v1681_v33 = vadd.f32 %v1662_v1, %v1510_v20  ;;  %v3615_v29 = vld [vmem:[#allocation4_spill] sm:$0xff]  ;;  %v1680_v37 = vadd.f32 %v2923_v45, %v1509_v26  ;;  %v1854_v44 = vadd.f32 %v2950_v60, %v1683_v22  ;;  %v3617_v48 = vld [vmem:[#allocation6_spill] sm:$0xff] }
 0x159   : > { %v2927_v14 = vpop.f32.mrf.mxu0  ;;  %v1229_v21 = vadd.f32 %v1212_v39, %v1058_v6  ;;  %v1507_v30 = vadd.f32 %v3615_v29, %v1225_v18  ;;  %v2650_v39 = vld [vmem:[%s271_s21 + $0x10] sm:$0xff]  }
 0x15a   : > { %v2951_v15 = vpop.f32.mrf.mxu1  ;;  %v1677_v27 = vadd.f32 %v1646_v43, %v1506_v17  ;;  %v1684_v43 = vadd.f32 %v2927_v14, %v1513_v32  ;;  %v1852_v53 = vadd.f32 %v1833_v8, %v1681_v33  ;;  %v2643_v60 = vunpack.c.l.bf16 %v2650_v39  ;;  %v3619_v0 = vld [vmem:[#allocation7_spill] sm:$0xff] }
 0x15b   : > { %v1665_v25 = vpop.f32.mrf.mxu0  ;;  %v1511_v41 = vadd.f32 %v3616_v40, %v1229_v21  ;;  %v3618_v50 = vld [vmem:[#allocation8_spill] sm:$0xff]  ;;  %v1851_v4 = vadd.f32 %v3619_v0, %v1680_v37  ;;  %v2648_v8 = vunpack.c.h.bf16 %v3557_v28  ;;  %v2644_v23 = vunpack.c.h.bf16 %v2650_v39 }
 0x15c   : > { %v1836_v36 = vpop.f32.mrf.mxu1  ;;  %v1848_v49 = vadd.f32 %v3617_v48, %v1677_v27  ;;  %v1678_v42 = vadd.f32 %v3618_v50, %v1507_v30  ;;  %v1855_v61 = vadd.f32 %v2951_v15, %v1684_v43 }
 0x15d   : > { %v1682_v54 = vadd.f32 %v1665_v25, %v1511_v41 }
 0x15e   : > { %v1849_v9 = vadd.f32 %v3547_v56, %v1678_v42  ;;  %v2636_v56 = vunpack.c.h.bf16 %v3559_v34 }
 0x15f   : > { %v1853_v12 = vadd.f32 %v1836_v36, %v1682_v54 }
 0x16d   : > { %v2970_v46 = vpop.f32.mrf.mxu0 }
 0x16e   : > { %v2132_v45 = vadd.f32 %v2970_v46, %v1850_v35  ;;  %v2974_v51 = vpop.f32.mrf.mxu1 }
 0x16f   : > { %v2136_v55 = vadd.f32 %v2974_v51, %v1854_v44  ;;  %v2099_v57 = vpop.f32.mrf.mxu0 }
 0x170   : > { %v2147_v58 = vadd.f32 %v2628_v38, %v2132_v45  ;;  %v2130_v62 = vadd.f32 %v2099_v57, %v1848_v49  ;;  %v2115_v2 = vpop.f32.mrf.mxu1 }
 0x171   : > { %v2151_v1 = vadd.f32 %v2628_v38, %v2136_v55  ;;  %v2134_v7 = vadd.f32 %v2115_v2, %v1852_v53  ;;  %v2971_v59 = vpop.f32.mrf.mxu0 }
 0x172   : > { %v2171_v16 = vadd.f32 %v2639_v31, %v2147_v58  ;;  %v2145_v63 = vadd.f32 %v2628_v38, %v2130_v62  ;;  %v2133_v3 = vadd.f32 %v2971_v59, %v1851_v4  ;;  %v2975_v11 = vpop.f32.mrf.mxu1 }
 0x173   : > { %v2175_v6 = vadd.f32 %v2647_v47, %v2151_v1  ;;  %v2149_v10 = vadd.f32 %v2628_v38, %v2134_v7  ;;  %v2137_v13 = vadd.f32 %v2975_v11, %v1855_v61  ;;  %v2102_v14 = vpop.f32.mrf.mxu0 }
 0x174   : > { %2179 = vst [vmem:[%s3577_s15 + $0x10] sm:$0xff] %v2171_v16  ;;  %v2169_v17 = vadd.f32 %v2635_v52, %v2145_v63  ;;  %v2148_v18 = vadd.f32 %v2628_v38, %v2133_v3  ;;  %v2131_v19 = vadd.f32 %v2102_v14, %v1849_v9  ;;  %v2118_v15 = vpop.f32.mrf.mxu1 }
 0x175   : > { %2183 = vst [vmem:[%s3577_s15 + $0x30] sm:$0xff] %v2175_v6  ;;  %v2173_v20 = vadd.f32 %v2643_v60, %v2149_v10  ;;  %v2152_v21 = vadd.f32 %v2628_v38, %v2137_v13  ;;  %v2135_v22 = vadd.f32 %v2118_v15, %v1853_v12 }
 0x176   : > { %2177 = vst [vmem:[%s3577_s15] sm:$0xff] %v2169_v17  ;;  %v2172_v24 = vadd.f32 %v2640_v5, %v2148_v18  ;;  %v2146_v26 = vadd.f32 %v2628_v38, %v2131_v19 }
 0x177   : > { %2181 = vst [vmem:[%s3577_s15 + $0x20] sm:$0xff] %v2173_v20  ;;  %v2176_v27 = vadd.f32 %v2648_v8, %v2152_v21  ;;  %v2150_v28 = vadd.f32 %v2628_v38, %v2135_v22 }
 0x178   : > { %2180 = vst [vmem:[%s3577_s15 + $0x18] sm:$0xff] %v2172_v24  ;;  %v2170_v32 = vadd.f32 %v2636_v56, %v2146_v26 }
 0x179   : > { %2184 = vst [vmem:[%s3577_s15 + $0x38] sm:$0xff] %v2176_v27  ;;  %v2174_v33 = vadd.f32 %v2644_v23, %v2150_v28 }
 0x17a   : > { %2178 = vst [vmem:[%s3577_s15 + $0x8] sm:$0xff] %v2170_v32 }
 0x17b   : > { %2182 = vst [vmem:[%s3577_s15 + $0x28] sm:$0xff] %v2174_v33 }
 0x17c PF: > { %s14_s17 = sadd.s32 1, %s3135_s17   ;;  %s3620_s15 = smov %s3131_s16 }
 0x17d   : > { %p11_p5 = scmp.ge.s32.totalorder %s14_s17, 4   ;;  %s3621_s16 = smov %s3623_s18 }
 0x17f   :  { %13 = sbr.rel (!%p11_p5) target bundleno = 2 (0x2), region = 88 }

</bundles_post_ra>
